<compile_context>
chip_gen: v6e
topology: v6e:2x2x1
jax: 0.10.0
libtpu: 0.0.40
codegen_flags: <defaults>
</compile_context>

<pallas_src>
import functools

import jax
import jax.numpy as jnp
from jax import lax
from jax.experimental import pallas as pl
from jax.experimental.pallas import tpu as pltpu

PERC_WGT = 0.01   # args.perc_wgt (only used by criterion_forward convenience)
L1_WGT = 10.0     # args.l1_wgt

VGG_MEAN = jnp.array([0.485, 0.456, 0.406], dtype=jnp.float32)
VGG_STD = jnp.array([0.229, 0.224, 0.225], dtype=jnp.float32)

_LANE = 128

_VGG_SLICE = [  # (Cin, Cout, relu_after?, pool_after?)  == VGG19 conv1_1..conv3_1
    (3,   64,  True,  False),   # conv_1
    (64,  64,  True,  True),    # conv_2 -> maxpool
    (64,  128, True,  False),   # conv_3
    (128, 128, True,  True),    # conv_4 -> maxpool
    (128, 256, False, False),   # conv_5 (loss is taken pre-ReLU; model ends here)
]


# ---------------------------------------------------------------------------
# small helpers
# ---------------------------------------------------------------------------

def _round_up(x, m):
    return ((x + m - 1) // m) * m


def _row_tile(h, target=8):
    """Largest divisor of h that is <= target (output row-band height)."""
    th = 1
    for cand in range(1, min(h, target) + 1):
        if h % cand == 0:
            th = cand
    return th


# ---------------------------------------------------------------------------
# Pallas kernels
# ---------------------------------------------------------------------------

def _conv_band_kernel(x_ref, w_ref, b_ref, o_ref, *, th, width, relu):
    """3x3 / stride-1 / pad-1 conv of one output row-band of one image.

    x_ref: (th + 2, width + 2, Cin)  bf16  -- input band incl. 1-px halo
    w_ref: (3, 3, Cin, Cout)         bf16  -- block index constant -> resident
    b_ref: (1, Cout)                 f32   -- block index constant -> resident
    o_ref: (th, width, Cout)         bf16  -- lane-dense (Cout multiple of 128)
    """
    cout = w_ref.shape[-1]

    def row_body(r, carry):
        acc = jnp.zeros((width, cout), jnp.float32)
        # 9 taps -> 9 small bf16 MXU matmuls accumulated in f32 (no im2col).
        for kh in range(3):
            for kw in range(3):
                patch = x_ref[r + kh, pl.ds(kw, width), :]       # (width, Cin)
                acc = acc + jnp.dot(patch, w_ref[kh, kw],
                                    preferred_element_type=jnp.float32)
        acc = acc + b_ref[...]
        if relu:
            acc = jnp.maximum(acc, 0.0)
        o_ref[r] = acc.astype(o_ref.dtype)
        return carry

    lax.fori_loop(0, th, row_body, 0)


def _maxpool_kernel(x_ref, o_ref):
    """2x2 stride-2 max pool on a row-band.

    x_ref: (th, 2, W/2, 2*C)  -- free (N, H/2, 2, W/2, 2C) view of the conv out
    o_ref: (th, W/2, C)
    """
    c = o_ref.shape[-1]
    m = jnp.maximum(x_ref[:, 0, :, :], x_ref[:, 1, :, :])    # max over row pair
    o_ref[...] = jnp.maximum(m[:, :, :c], m[:, :, c:])       # max over col pair


def _mse_sum_kernel(p_ref, t_ref, o_ref):
    """Accumulate sum((p - t)^2) over row tiles into a resident (1,1) f32."""
    @pl.when(pl.program_id(0) == 0)
    def _():
        o_ref[...] = jnp.zeros_like(o_ref)
    d = p_ref[...].astype(jnp.float32) - t_ref[...].astype(jnp.float32)
    o_ref[...] += jnp.sum(d * d, axis=(0, 1), keepdims=True)


# ---------------------------------------------------------------------------
# pallas_call wrappers
# ---------------------------------------------------------------------------

def conv3x3(x, wgt, bias, relu):
    """3x3, stride 1, pad 1 conv.  x: (N,H,W,Cin) bf16, wgt: (3,3,Cin,Cout) bf16."""
    n, h, w, cin = x.shape
    cout = wgt.shape[-1]
    th = _row_tile(h)
    nb = h // th

    xp = jnp.pad(x, ((0, 0), (1, 1), (1, 1), (0, 0)))
    # Row bands with a 2-row halo: (N, nb, th+2, W+2, Cin).  ~(th+2)/th extra
    # copies of the activation (vs. 9x for a materialized im2col).
    xb = jnp.stack([xp[:, i * th:i * th + th + 2] for i in range(nb)], axis=1)

    kern = functools.partial(_conv_band_kernel, th=th, width=w, relu=relu)
    out = pl.pallas_call(
        kern,
        out_shape=jax.ShapeDtypeStruct((n, nb, th, w, cout), jnp.bfloat16),
        grid=(n, nb),
        in_specs=[
            pl.BlockSpec((None, None, th + 2, w + 2, cin),
                         lambda ni, bi: (ni, bi, 0, 0, 0)),
            pl.BlockSpec((3, 3, cin, cout), lambda ni, bi: (0, 0, 0, 0)),
            pl.BlockSpec((1, cout), lambda ni, bi: (0, 0)),
        ],
        out_specs=pl.BlockSpec((None, None, th, w, cout),
                               lambda ni, bi: (ni, bi, 0, 0, 0)),
        compiler_params=pltpu.CompilerParams(
            dimension_semantics=("parallel", "parallel")),
    )(xb, wgt, bias)
    return out.reshape(n, h, w, cout)


def maxpool2x2(x):
    """2x2 stride-2 max pool on NHWC (single pass, no strided HBM copies).
    Assumes even H, W (true for VGG feature maps).
    TODO(synk): odd H/W would need PyTorch-style floor cropping."""
    n, h, w, c = x.shape
    h2, w2 = h // 2, w // 2
    xv = x.reshape(n, h2, 2, w2, 2 * c)        # free contiguous reinterpretation
    th = _row_tile(h2)
    nb = h2 // th
    return pl.pallas_call(
        _maxpool_kernel,
        out_shape=jax.ShapeDtypeStruct((n, h2, w2, c), x.dtype),
        grid=(n, nb),
        in_specs=[pl.BlockSpec((None, th, 2, w2, 2 * c),
                               lambda ni, bi: (ni, bi, 0, 0, 0))],
        out_specs=pl.BlockSpec((None, th, w2, c),
                               lambda ni, bi: (ni, bi, 0, 0)),
        compiler_params=pltpu.CompilerParams(
            dimension_semantics=("parallel", "parallel")),
    )(xv)


def mse(p, t):
    """Mean squared error over all elements (== F.mse_loss default)."""
    n_elem = p.size
    pf = p.reshape(-1)
    tf = t.reshape(-1)
    rows = pl.cdiv(n_elem, _LANE)
    tm = min(1024, _round_up(rows, 8))
    rows_p = _round_up(rows, tm)
    pad = rows_p * _LANE - n_elem           # zero padding contributes 0 to sum
    pf = jnp.pad(pf, (0, pad)).reshape(rows_p, _LANE)
    tf = jnp.pad(tf, (0, pad)).reshape(rows_p, _LANE)
    ssq = pl.pallas_call(
        _mse_sum_kernel,
        out_shape=jax.ShapeDtypeStruct((1, 1), jnp.float32),
        grid=(rows_p // tm,),
        in_specs=[pl.BlockSpec((tm, _LANE), lambda i: (i, 0)),
                  pl.BlockSpec((tm, _LANE), lambda i: (i, 0))],
        out_specs=pl.BlockSpec((1, 1), lambda i: (0, 0)),
        compiler_params=pltpu.CompilerParams(
            dimension_semantics=("arbitrary",)),
    )(pf, tf)
    return ssq[0, 0] / n_elem


# ---------------------------------------------------------------------------
# VGG19 slice (up to conv_5 == conv3_1), deterministic synthetic weights
# ---------------------------------------------------------------------------

def init_params(key):
    """Deterministic synthetic VGG19-slice weights (not the pretrained ones),
    with (a) the ImageNet 1/std scale folded into conv_1 and (b) channel dims
    zero-padded to multiples of 128 for lane-dense conv/pool stores (padded
    channels stay exactly 0 through the whole stack, so numerics are identical
    to the unpadded model)."""
    params = []
    cin_padded = 3
    for li, (cin, cout, _, _) in enumerate(_VGG_SLICE):
        key, kw, kb = jax.random.split(key, 3)
        wgt = 0.05 * jax.random.normal(kw, (3, 3, cin, cout), dtype=jnp.float32)
        bias = 0.01 * jax.random.normal(kb, (cout,), dtype=jnp.float32)
        if li == 0:
            # Fold the /std of (x - mean)/std into conv_1; the mean subtraction
            # happens (fused, in XLA) before the first conv so that zero padding
            # matches PyTorch's padding of the *normalized* image exactly.
            wgt = wgt / VGG_STD.reshape(1, 1, 3, 1)
        cout_padded = _round_up(cout, _LANE)
        wp = jnp.zeros((3, 3, cin_padded, cout_padded), jnp.float32)
        wp = wp.at[:, :, :cin, :cout].set(wgt)
        bp = jnp.zeros((cout_padded,), jnp.float32).at[:cout].set(bias)
        params.append((wp.astype(jnp.bfloat16), bp.reshape(1, cout_padded)))
        cin_padded = cout_padded
    return params
    # TODO(synk): real pretrained VGG19 weights would be loaded from a
    # checkpoint; synthetic weights keep the script self-contained.


def vgg_features(x_nhwc, params):
    """Normalization + VGG19 slice up to conv_5 (pre-ReLU), bf16 activations."""
    x = (x_nhwc - VGG_MEAN).astype(jnp.bfloat16)   # /std is folded into conv_1
    for (wgt, bias), (_, _, relu, pool) in zip(params, _VGG_SLICE):
        x = conv3x3(x, wgt, bias, relu)
        if pool:
            x = maxpool2x2(x)
    return x  # conv_5 pre-ReLU activation, (N, H/4, W/4, 256)


# ---------------------------------------------------------------------------
# PerceptualLoss.forward (mask=None path) + criterion convenience wrapper
# ---------------------------------------------------------------------------

def perceptual_loss_forward(pred_nchw, target_nchw, params):
    """PerceptualLoss.forward: MSE between conv_5 features of pred and target."""
    pred = jnp.transpose(pred_nchw, (0, 2, 3, 1)).astype(jnp.float32)
    target = jnp.transpose(target_nchw, (0, 2, 3, 1)).astype(jnp.float32)
    b = pred.shape[0]
    both = jnp.concatenate([pred, target], axis=0)   # one VGG pass, 2x batch
    feats = vgg_features(both, params)
    feats = feats[..., :_VGG_SLICE[-1][1]]           # drop channel padding (no-op here)
    return mse(feats[:b], feats[b:])                 # target.detach(): forward only
    # TODO(synk): masked branch (F.adaptive_avg_pool2d weighting) not
    # implemented; the module defaults to mask=None.


def criterion_forward(pred_nchw, target_nchw, params,
                      perc_wgt=PERC_WGT, l1_wgt=L1_WGT):
    """Criterion (mask=False): perc_wgt * PerceptualLoss + l1_wgt * mse(pred, target)."""
    perc = perceptual_loss_forward(pred_nchw, target_nchw, params)
    pred = jnp.transpose(pred_nchw, (0, 2, 3, 1)).astype(jnp.float32)
    target = jnp.transpose(target_nchw, (0, 2, 3, 1)).astype(jnp.float32)
    pix = mse(pred, target)
    return perc_wgt * perc + l1_wgt * pix


if __name__ == "__main__":
    key = jax.random.PRNGKey(0)
    k_params, k_pred, k_tgt = jax.random.split(key, 3)

    params = init_params(k_params)

    # Small NCHW RGB inputs (channels must be 3 for the VGG front end).
    pred = jax.random.uniform(k_pred, (2, 3, 16, 16), dtype=jnp.float32)
    target = jax.random.uniform(k_tgt, (2, 3, 16, 16), dtype=jnp.float32)

    loss_fn = jax.jit(lambda p, t: criterion_forward(p, t, params))
    loss = loss_fn(pred, target)
    jax.block_until_ready(loss)

    assert loss.shape == () and bool(jnp.isfinite(loss))
    print("KERNEL_OK")
</pallas_src>

<mosaic_0001>
module attributes {stable_mosaic.version = 11 : i64} {
  func.func @_conv_band_kernel(%arg0: i32, %arg1: i32, %arg2: memref<1x1x10x18x3xbf16, #tpu.memory_space<vmem>>, %arg3: memref<3x3x3x128xbf16, #tpu.memory_space<vmem>>, %arg4: memref<1x128xf32, #tpu.memory_space<vmem>>, %arg5: memref<1x1x8x16x128xbf16, #tpu.memory_space<vmem>>) attributes {dimension_semantics = [#tpu.dimension_semantics<parallel>, #tpu.dimension_semantics<parallel>], iteration_bounds = array<i64: 4, 2>, scalar_prefetch = 0 : i64, scratch_operands = 0 : i64, tpu.core_type = #tpu.core_type<tc>, window_params = [{transform_indices = @transform_0, window_bounds = array<i64: 1, 1, 10, 18, 3>}, {pipeline_mode = #tpu.pipeline_mode<synchronous>, transform_indices = @transform_1, window_bounds = array<i64: 3, 3, 3, 128>}, {pipeline_mode = #tpu.pipeline_mode<synchronous>, transform_indices = @transform_2, window_bounds = array<i64: 1, 128>}, {transform_indices = @transform_3, window_bounds = array<i64: 1, 1, 8, 16, 128>}]} {
    %c0_i32 = arith.constant 0 : i32
    %c8_i32 = arith.constant 8 : i32
    %0 = arith.addi %c0_i32, %c8_i32 : i32
    %c1_i32 = arith.constant 1 : i32
    scf.for %arg6 = %c0_i32 to %0 step %c1_i32  : i32 {
      %cst = arith.constant 0.000000e+00 : f32
      %1 = vector.broadcast %cst : f32 to vector<16x128xf32>
      %c0_i32_1 = arith.constant 0 : i32
      %2 = arith.addi %arg6, %c0_i32_1 : i32
      %c0 = arith.constant 0 : index
      %c0_2 = arith.constant 0 : index
      %3 = arith.index_cast %2 : i32 to index
      %c0_3 = arith.constant 0 : index
      %c0_4 = arith.constant 0 : index
      %4 = vector.load %arg2[%c0, %c0_2, %3, %c0_3, %c0_4] : memref<1x1x10x18x3xbf16, #tpu.memory_space<vmem>>, vector<1x1x1x16x3xbf16>
      %5 = vector.shape_cast %4 : vector<1x1x1x16x3xbf16> to vector<16x3xbf16>
      %c0_5 = arith.constant 0 : index
      %c0_6 = arith.constant 0 : index
      %c0_7 = arith.constant 0 : index
      %c0_8 = arith.constant 0 : index
      %6 = vector.load %arg3[%c0_5, %c0_6, %c0_7, %c0_8] : memref<3x3x3x128xbf16, #tpu.memory_space<vmem>>, vector<1x1x3x128xbf16>
      %7 = vector.shape_cast %6 : vector<1x1x3x128xbf16> to vector<3x128xbf16>
      %cst_9 = arith.constant dense<0.000000e+00> : vector<16x128xf32>
      %8 = tpu.matmul %5, %7, %cst_9 {dimension_numbers = #tpu.dot_dimension_numbers<[1], [0], [0], [1], [0, 0, 1, 1], [], []>} : vector<16x3xbf16>, vector<3x128xbf16>, vector<16x128xf32> -> vector<16x128xf32>
      %9 = arith.addf %1, %8 : vector<16x128xf32>
      %c0_i32_10 = arith.constant 0 : i32
      %10 = arith.addi %arg6, %c0_i32_10 : i32
      %c0_11 = arith.constant 0 : index
      %c0_12 = arith.constant 0 : index
      %11 = arith.index_cast %10 : i32 to index
      %c1 = arith.constant 1 : index
      %c0_13 = arith.constant 0 : index
      %12 = vector.load %arg2[%c0_11, %c0_12, %11, %c1, %c0_13] : memref<1x1x10x18x3xbf16, #tpu.memory_space<vmem>>, vector<1x1x1x16x3xbf16>
      %13 = vector.shape_cast %12 : vector<1x1x1x16x3xbf16> to vector<16x3xbf16>
      %c0_14 = arith.constant 0 : index
      %c1_15 = arith.constant 1 : index
      %c0_16 = arith.constant 0 : index
      %c0_17 = arith.constant 0 : index
      %14 = vector.load %arg3[%c0_14, %c1_15, %c0_16, %c0_17] : memref<3x3x3x128xbf16, #tpu.memory_space<vmem>>, vector<1x1x3x128xbf16>
      %15 = vector.shape_cast %14 : vector<1x1x3x128xbf16> to vector<3x128xbf16>
      %cst_18 = arith.constant dense<0.000000e+00> : vector<16x128xf32>
      %16 = tpu.matmul %13, %15, %cst_18 {dimension_numbers = #tpu.dot_dimension_numbers<[1], [0], [0], [1], [0, 0, 1, 1], [], []>} : vector<16x3xbf16>, vector<3x128xbf16>, vector<16x128xf32> -> vector<16x128xf32>
      %17 = arith.addf %9, %16 : vector<16x128xf32>
      %c0_i32_19 = arith.constant 0 : i32
      %18 = arith.addi %arg6, %c0_i32_19 : i32
      %c0_20 = arith.constant 0 : index
      %c0_21 = arith.constant 0 : index
      %19 = arith.index_cast %18 : i32 to index
      %c2 = arith.constant 2 : index
      %c0_22 = arith.constant 0 : index
      %20 = vector.load %arg2[%c0_20, %c0_21, %19, %c2, %c0_22] : memref<1x1x10x18x3xbf16, #tpu.memory_space<vmem>>, vector<1x1x1x16x3xbf16>
      %21 = vector.shape_cast %20 : vector<1x1x1x16x3xbf16> to vector<16x3xbf16>
      %c0_23 = arith.constant 0 : index
      %c2_24 = arith.constant 2 : index
      %c0_25 = arith.constant 0 : index
      %c0_26 = arith.constant 0 : index
      %22 = vector.load %arg3[%c0_23, %c2_24, %c0_25, %c0_26] : memref<3x3x3x128xbf16, #tpu.memory_space<vmem>>, vector<1x1x3x128xbf16>
      %23 = vector.shape_cast %22 : vector<1x1x3x128xbf16> to vector<3x128xbf16>
      %cst_27 = arith.constant dense<0.000000e+00> : vector<16x128xf32>
      %24 = tpu.matmul %21, %23, %cst_27 {dimension_numbers = #tpu.dot_dimension_numbers<[1], [0], [0], [1], [0, 0, 1, 1], [], []>} : vector<16x3xbf16>, vector<3x128xbf16>, vector<16x128xf32> -> vector<16x128xf32>
      %25 = arith.addf %17, %24 : vector<16x128xf32>
      %c1_i32_28 = arith.constant 1 : i32
      %26 = arith.addi %arg6, %c1_i32_28 : i32
      %c0_29 = arith.constant 0 : index
      %c0_30 = arith.constant 0 : index
      %27 = arith.index_cast %26 : i32 to index
      %c0_31 = arith.constant 0 : index
      %c0_32 = arith.constant 0 : index
      %28 = vector.load %arg2[%c0_29, %c0_30, %27, %c0_31, %c0_32] : memref<1x1x10x18x3xbf16, #tpu.memory_space<vmem>>, vector<1x1x1x16x3xbf16>
      %29 = vector.shape_cast %28 : vector<1x1x1x16x3xbf16> to vector<16x3xbf16>
      %c1_33 = arith.constant 1 : index
      %c0_34 = arith.constant 0 : index
      %c0_35 = arith.constant 0 : index
      %c0_36 = arith.constant 0 : index
      %30 = vector.load %arg3[%c1_33, %c0_34, %c0_35, %c0_36] : memref<3x3x3x128xbf16, #tpu.memory_space<vmem>>, vector<1x1x3x128xbf16>
      %31 = vector.shape_cast %30 : vector<1x1x3x128xbf16> to vector<3x128xbf16>
      %cst_37 = arith.constant dense<0.000000e+00> : vector<16x128xf32>
      %32 = tpu.matmul %29, %31, %cst_37 {dimension_numbers = #tpu.dot_dimension_numbers<[1], [0], [0], [1], [0, 0, 1, 1], [], []>} : vector<16x3xbf16>, vector<3x128xbf16>, vector<16x128xf32> -> vector<16x128xf32>
      %33 = arith.addf %25, %32 : vector<16x128xf32>
      %c1_i32_38 = arith.constant 1 : i32
      %34 = arith.addi %arg6, %c1_i32_38 : i32
      %c0_39 = arith.constant 0 : index
      %c0_40 = arith.constant 0 : index
      %35 = arith.index_cast %34 : i32 to index
      %c1_41 = arith.constant 1 : index
      %c0_42 = arith.constant 0 : index
      %36 = vector.load %arg2[%c0_39, %c0_40, %35, %c1_41, %c0_42] : memref<1x1x10x18x3xbf16, #tpu.memory_space<vmem>>, vector<1x1x1x16x3xbf16>
      %37 = vector.shape_cast %36 : vector<1x1x1x16x3xbf16> to vector<16x3xbf16>
      %c1_43 = arith.constant 1 : index
      %c1_44 = arith.constant 1 : index
      %c0_45 = arith.constant 0 : index
      %c0_46 = arith.constant 0 : index
      %38 = vector.load %arg3[%c1_43, %c1_44, %c0_45, %c0_46] : memref<3x3x3x128xbf16, #tpu.memory_space<vmem>>, vector<1x1x3x128xbf16>
      %39 = vector.shape_cast %38 : vector<1x1x3x128xbf16> to vector<3x128xbf16>
      %cst_47 = arith.constant dense<0.000000e+00> : vector<16x128xf32>
      %40 = tpu.matmul %37, %39, %cst_47 {dimension_numbers = #tpu.dot_dimension_numbers<[1], [0], [0], [1], [0, 0, 1, 1], [], []>} : vector<16x3xbf16>, vector<3x128xbf16>, vector<16x128xf32> -> vector<16x128xf32>
      %41 = arith.addf %33, %40 : vector<16x128xf32>
      %c1_i32_48 = arith.constant 1 : i32
      %42 = arith.addi %arg6, %c1_i32_48 : i32
      %c0_49 = arith.constant 0 : index
      %c0_50 = arith.constant 0 : index
      %43 = arith.index_cast %42 : i32 to index
      %c2_51 = arith.constant 2 : index
      %c0_52 = arith.constant 0 : index
      %44 = vector.load %arg2[%c0_49, %c0_50, %43, %c2_51, %c0_52] : memref<1x1x10x18x3xbf16, #tpu.memory_space<vmem>>, vector<1x1x1x16x3xbf16>
      %45 = vector.shape_cast %44 : vector<1x1x1x16x3xbf16> to vector<16x3xbf16>
      %c1_53 = arith.constant 1 : index
      %c2_54 = arith.constant 2 : index
      %c0_55 = arith.constant 0 : index
      %c0_56 = arith.constant 0 : index
      %46 = vector.load %arg3[%c1_53, %c2_54, %c0_55, %c0_56] : memref<3x3x3x128xbf16, #tpu.memory_space<vmem>>, vector<1x1x3x128xbf16>
      %47 = vector.shape_cast %46 : vector<1x1x3x128xbf16> to vector<3x128xbf16>
      %cst_57 = arith.constant dense<0.000000e+00> : vector<16x128xf32>
      %48 = tpu.matmul %45, %47, %cst_57 {dimension_numbers = #tpu.dot_dimension_numbers<[1], [0], [0], [1], [0, 0, 1, 1], [], []>} : vector<16x3xbf16>, vector<3x128xbf16>, vector<16x128xf32> -> vector<16x128xf32>
      %49 = arith.addf %41, %48 : vector<16x128xf32>
      %c2_i32 = arith.constant 2 : i32
      %50 = arith.addi %arg6, %c2_i32 : i32
      %c0_58 = arith.constant 0 : index
      %c0_59 = arith.constant 0 : index
      %51 = arith.index_cast %50 : i32 to index
      %c0_60 = arith.constant 0 : index
      %c0_61 = arith.constant 0 : index
      %52 = vector.load %arg2[%c0_58, %c0_59, %51, %c0_60, %c0_61] : memref<1x1x10x18x3xbf16, #tpu.memory_space<vmem>>, vector<1x1x1x16x3xbf16>
      %53 = vector.shape_cast %52 : vector<1x1x1x16x3xbf16> to vector<16x3xbf16>
      %c2_62 = arith.constant 2 : index
      %c0_63 = arith.constant 0 : index
      %c0_64 = arith.constant 0 : index
      %c0_65 = arith.constant 0 : index
      %54 = vector.load %arg3[%c2_62, %c0_63, %c0_64, %c0_65] : memref<3x3x3x128xbf16, #tpu.memory_space<vmem>>, vector<1x1x3x128xbf16>
      %55 = vector.shape_cast %54 : vector<1x1x3x128xbf16> to vector<3x128xbf16>
      %cst_66 = arith.constant dense<0.000000e+00> : vector<16x128xf32>
      %56 = tpu.matmul %53, %55, %cst_66 {dimension_numbers = #tpu.dot_dimension_numbers<[1], [0], [0], [1], [0, 0, 1, 1], [], []>} : vector<16x3xbf16>, vector<3x128xbf16>, vector<16x128xf32> -> vector<16x128xf32>
      %57 = arith.addf %49, %56 : vector<16x128xf32>
      %c2_i32_67 = arith.constant 2 : i32
      %58 = arith.addi %arg6, %c2_i32_67 : i32
      %c0_68 = arith.constant 0 : index
      %c0_69 = arith.constant 0 : index
      %59 = arith.index_cast %58 : i32 to index
      %c1_70 = arith.constant 1 : index
      %c0_71 = arith.constant 0 : index
      %60 = vector.load %arg2[%c0_68, %c0_69, %59, %c1_70, %c0_71] : memref<1x1x10x18x3xbf16, #tpu.memory_space<vmem>>, vector<1x1x1x16x3xbf16>
      %61 = vector.shape_cast %60 : vector<1x1x1x16x3xbf16> to vector<16x3xbf16>
      %c2_72 = arith.constant 2 : index
      %c1_73 = arith.constant 1 : index
      %c0_74 = arith.constant 0 : index
      %c0_75 = arith.constant 0 : index
      %62 = vector.load %arg3[%c2_72, %c1_73, %c0_74, %c0_75] : memref<3x3x3x128xbf16, #tpu.memory_space<vmem>>, vector<1x1x3x128xbf16>
      %63 = vector.shape_cast %62 : vector<1x1x3x128xbf16> to vector<3x128xbf16>
      %cst_76 = arith.constant dense<0.000000e+00> : vector<16x128xf32>
      %64 = tpu.matmul %61, %63, %cst_76 {dimension_numbers = #tpu.dot_dimension_numbers<[1], [0], [0], [1], [0, 0, 1, 1], [], []>} : vector<16x3xbf16>, vector<3x128xbf16>, vector<16x128xf32> -> vector<16x128xf32>
      %65 = arith.addf %57, %64 : vector<16x128xf32>
      %c2_i32_77 = arith.constant 2 : i32
      %66 = arith.addi %arg6, %c2_i32_77 : i32
      %c0_78 = arith.constant 0 : index
      %c0_79 = arith.constant 0 : index
      %67 = arith.index_cast %66 : i32 to index
      %c2_80 = arith.constant 2 : index
      %c0_81 = arith.constant 0 : index
      %68 = vector.load %arg2[%c0_78, %c0_79, %67, %c2_80, %c0_81] : memref<1x1x10x18x3xbf16, #tpu.memory_space<vmem>>, vector<1x1x1x16x3xbf16>
      %69 = vector.shape_cast %68 : vector<1x1x1x16x3xbf16> to vector<16x3xbf16>
      %c2_82 = arith.constant 2 : index
      %c2_83 = arith.constant 2 : index
      %c0_84 = arith.constant 0 : index
      %c0_85 = arith.constant 0 : index
      %70 = vector.load %arg3[%c2_82, %c2_83, %c0_84, %c0_85] : memref<3x3x3x128xbf16, #tpu.memory_space<vmem>>, vector<1x1x3x128xbf16>
      %71 = vector.shape_cast %70 : vector<1x1x3x128xbf16> to vector<3x128xbf16>
      %cst_86 = arith.constant dense<0.000000e+00> : vector<16x128xf32>
      %72 = tpu.matmul %69, %71, %cst_86 {dimension_numbers = #tpu.dot_dimension_numbers<[1], [0], [0], [1], [0, 0, 1, 1], [], []>} : vector<16x3xbf16>, vector<3x128xbf16>, vector<16x128xf32> -> vector<16x128xf32>
      %73 = arith.addf %65, %72 : vector<16x128xf32>
      %c0_87 = arith.constant 0 : index
      %c0_88 = arith.constant 0 : index
      %74 = vector.load %arg4[%c0_87, %c0_88] : memref<1x128xf32, #tpu.memory_space<vmem>>, vector<1x128xf32>
      %75 = vector.broadcast %74 : vector<1x128xf32> to vector<16x128xf32>
      %76 = arith.addf %73, %75 : vector<16x128xf32>
      %cst_89 = arith.constant 0.000000e+00 : f32
      %77 = vector.broadcast %cst_89 : f32 to vector<16x128xf32>
      %78 = arith.maximumf %76, %77 : vector<16x128xf32>
      %79 = arith.truncf %78 : vector<16x128xf32> to vector<16x128xbf16>
      %c0_90 = arith.constant 0 : index
      %c0_91 = arith.constant 0 : index
      %80 = arith.index_cast %arg6 : i32 to index
      %c0_92 = arith.constant 0 : index
      %c0_93 = arith.constant 0 : index
      %81 = vector.load %arg5[%c0_90, %c0_91, %80, %c0_92, %c0_93] : memref<1x1x8x16x128xbf16, #tpu.memory_space<vmem>>, vector<1x1x1x16x128xbf16>
      %82 = vector.shape_cast %81 : vector<1x1x1x16x128xbf16> to vector<16x128xbf16>
      %83 = vector.shape_cast %79 : vector<16x128xbf16> to vector<1x1x1x16x128xbf16>
      tpu.vector_store %arg5[%c0_90, %c0_91, %80, %c0_92, %c0_93], %83 {strides = array<i32>} : memref<1x1x8x16x128xbf16, #tpu.memory_space<vmem>>, vector<1x1x1x16x128xbf16>,
    }
    %c8_i32_0 = arith.constant 8 : i32
    return
  }
  func.func @transform_0(%arg0: i32, %arg1: i32) -> (i32, i32, i32, i32, i32) {
    %c0_i32 = arith.constant 0 : i32
    %c0_i32_0 = arith.constant 0 : i32
    %c0_i32_1 = arith.constant 0 : i32
    %c0_i32_2 = arith.constant 0 : i32
    return %arg0, %arg1, %c0_i32, %c0_i32_0, %c0_i32_1 : i32, i32, i32, i32, i32
  }
  func.func @transform_1(%arg0: i32, %arg1: i32) -> (i32, i32, i32, i32) {
    %c0_i32 = arith.constant 0 : i32
    %c0_i32_0 = arith.constant 0 : i32
    %c0_i32_1 = arith.constant 0 : i32
    %c0_i32_2 = arith.constant 0 : i32
    %c0_i32_3 = arith.constant 0 : i32
    return %c0_i32, %c0_i32_0, %c0_i32_1, %c0_i32_2 : i32, i32, i32, i32
  }
  func.func @transform_2(%arg0: i32, %arg1: i32) -> (i32, i32) {
    %c0_i32 = arith.constant 0 : i32
    %c0_i32_0 = arith.constant 0 : i32
    %c0_i32_1 = arith.constant 0 : i32
    return %c0_i32, %c0_i32_0 : i32, i32
  }
  func.func @transform_3(%arg0: i32, %arg1: i32) -> (i32, i32, i32, i32, i32) {
    %c0_i32 = arith.constant 0 : i32
    %c0_i32_0 = arith.constant 0 : i32
    %c0_i32_1 = arith.constant 0 : i32
    %c0_i32_2 = arith.constant 0 : i32
    return %arg0, %arg1, %c0_i32, %c0_i32_0, %c0_i32_1 : i32, i32, i32, i32, i32
  }
}

module attributes {stable_mosaic.version = 11 : i64} {
  func.func @_conv_band_kernel(%arg0: i32, %arg1: i32, %arg2: memref<1x1x10x18x128xbf16, #tpu.memory_space<vmem>>, %arg3: memref<3x3x128x128xbf16, #tpu.memory_space<vmem>>, %arg4: memref<1x128xf32, #tpu.memory_space<vmem>>, %arg5: memref<1x1x8x16x128xbf16, #tpu.memory_space<vmem>>) attributes {dimension_semantics = [#tpu.dimension_semantics<parallel>, #tpu.dimension_semantics<parallel>], iteration_bounds = array<i64: 4, 2>, scalar_prefetch = 0 : i64, scratch_operands = 0 : i64, tpu.core_type = #tpu.core_type<tc>, window_params = [{transform_indices = @transform_0, window_bounds = array<i64: 1, 1, 10, 18, 128>}, {pipeline_mode = #tpu.pipeline_mode<synchronous>, transform_indices = @transform_1, window_bounds = array<i64: 3, 3, 128, 128>}, {pipeline_mode = #tpu.pipeline_mode<synchronous>, transform_indices = @transform_2, window_bounds = array<i64: 1, 128>}, {transform_indices = @transform_3, window_bounds = array<i64: 1, 1, 8, 16, 128>}]} {
    %c0_i32 = arith.constant 0 : i32
    %c8_i32 = arith.constant 8 : i32
    %0 = arith.addi %c0_i32, %c8_i32 : i32
    %c1_i32 = arith.constant 1 : i32
    scf.for %arg6 = %c0_i32 to %0 step %c1_i32  : i32 {
      %cst = arith.constant 0.000000e+00 : f32
      %1 = vector.broadcast %cst : f32 to vector<16x128xf32>
      %c0_i32_1 = arith.constant 0 : i32
      %2 = arith.addi %arg6, %c0_i32_1 : i32
      %c0 = arith.constant 0 : index
      %c0_2 = arith.constant 0 : index
      %3 = arith.index_cast %2 : i32 to index
      %c0_3 = arith.constant 0 : index
      %c0_4 = arith.constant 0 : index
      %4 = vector.load %arg2[%c0, %c0_2, %3, %c0_3, %c0_4] : memref<1x1x10x18x128xbf16, #tpu.memory_space<vmem>>, vector<1x1x1x16x128xbf16>
      %5 = vector.shape_cast %4 : vector<1x1x1x16x128xbf16> to vector<16x128xbf16>
      %c0_5 = arith.constant 0 : index
      %c0_6 = arith.constant 0 : index
      %c0_7 = arith.constant 0 : index
      %c0_8 = arith.constant 0 : index
      %6 = vector.load %arg3[%c0_5, %c0_6, %c0_7, %c0_8] : memref<3x3x128x128xbf16, #tpu.memory_space<vmem>>, vector<1x1x128x128xbf16>
      %7 = vector.shape_cast %6 : vector<1x1x128x128xbf16> to vector<128x128xbf16>
      %cst_9 = arith.constant dense<0.000000e+00> : vector<16x128xf32>
      %8 = tpu.matmul %5, %7, %cst_9 {dimension_numbers = #tpu.dot_dimension_numbers<[1], [0], [0], [1], [0, 0, 1, 1], [], []>} : vector<16x128xbf16>, vector<128x128xbf16>, vector<16x128xf32> -> vector<16x128xf32>
      %9 = arith.addf %1, %8 : vector<16x128xf32>
      %c0_i32_10 = arith.constant 0 : i32
      %10 = arith.addi %arg6, %c0_i32_10 : i32
      %c0_11 = arith.constant 0 : index
      %c0_12 = arith.constant 0 : index
      %11 = arith.index_cast %10 : i32 to index
      %c1 = arith.constant 1 : index
      %c0_13 = arith.constant 0 : index
      %12 = vector.load %arg2[%c0_11, %c0_12, %11, %c1, %c0_13] : memref<1x1x10x18x128xbf16, #tpu.memory_space<vmem>>, vector<1x1x1x16x128xbf16>
      %13 = vector.shape_cast %12 : vector<1x1x1x16x128xbf16> to vector<16x128xbf16>
      %c0_14 = arith.constant 0 : index
      %c1_15 = arith.constant 1 : index
      %c0_16 = arith.constant 0 : index
      %c0_17 = arith.constant 0 : index
      %14 = vector.load %arg3[%c0_14, %c1_15, %c0_16, %c0_17] : memref<3x3x128x128xbf16, #tpu.memory_space<vmem>>, vector<1x1x128x128xbf16>
      %15 = vector.shape_cast %14 : vector<1x1x128x128xbf16> to vector<128x128xbf16>
      %cst_18 = arith.constant dense<0.000000e+00> : vector<16x128xf32>
      %16 = tpu.matmul %13, %15, %cst_18 {dimension_numbers = #tpu.dot_dimension_numbers<[1], [0], [0], [1], [0, 0, 1, 1], [], []>} : vector<16x128xbf16>, vector<128x128xbf16>, vector<16x128xf32> -> vector<16x128xf32>
      %17 = arith.addf %9, %16 : vector<16x128xf32>
      %c0_i32_19 = arith.constant 0 : i32
      %18 = arith.addi %arg6, %c0_i32_19 : i32
      %c0_20 = arith.constant 0 : index
      %c0_21 = arith.constant 0 : index
      %19 = arith.index_cast %18 : i32 to index
      %c2 = arith.constant 2 : index
      %c0_22 = arith.constant 0 : index
      %20 = vector.load %arg2[%c0_20, %c0_21, %19, %c2, %c0_22] : memref<1x1x10x18x128xbf16, #tpu.memory_space<vmem>>, vector<1x1x1x16x128xbf16>
      %21 = vector.shape_cast %20 : vector<1x1x1x16x128xbf16> to vector<16x128xbf16>
      %c0_23 = arith.constant 0 : index
      %c2_24 = arith.constant 2 : index
      %c0_25 = arith.constant 0 : index
      %c0_26 = arith.constant 0 : index
      %22 = vector.load %arg3[%c0_23, %c2_24, %c0_25, %c0_26] : memref<3x3x128x128xbf16, #tpu.memory_space<vmem>>, vector<1x1x128x128xbf16>
      %23 = vector.shape_cast %22 : vector<1x1x128x128xbf16> to vector<128x128xbf16>
      %cst_27 = arith.constant dense<0.000000e+00> : vector<16x128xf32>
      %24 = tpu.matmul %21, %23, %cst_27 {dimension_numbers = #tpu.dot_dimension_numbers<[1], [0], [0], [1], [0, 0, 1, 1], [], []>} : vector<16x128xbf16>, vector<128x128xbf16>, vector<16x128xf32> -> vector<16x128xf32>
      %25 = arith.addf %17, %24 : vector<16x128xf32>
      %c1_i32_28 = arith.constant 1 : i32
      %26 = arith.addi %arg6, %c1_i32_28 : i32
      %c0_29 = arith.constant 0 : index
      %c0_30 = arith.constant 0 : index
      %27 = arith.index_cast %26 : i32 to index
      %c0_31 = arith.constant 0 : index
      %c0_32 = arith.constant 0 : index
      %28 = vector.load %arg2[%c0_29, %c0_30, %27, %c0_31, %c0_32] : memref<1x1x10x18x128xbf16, #tpu.memory_space<vmem>>, vector<1x1x1x16x128xbf16>
      %29 = vector.shape_cast %28 : vector<1x1x1x16x128xbf16> to vector<16x128xbf16>
      %c1_33 = arith.constant 1 : index
      %c0_34 = arith.constant 0 : index
      %c0_35 = arith.constant 0 : index
      %c0_36 = arith.constant 0 : index
      %30 = vector.load %arg3[%c1_33, %c0_34, %c0_35, %c0_36] : memref<3x3x128x128xbf16, #tpu.memory_space<vmem>>, vector<1x1x128x128xbf16>
      %31 = vector.shape_cast %30 : vector<1x1x128x128xbf16> to vector<128x128xbf16>
      %cst_37 = arith.constant dense<0.000000e+00> : vector<16x128xf32>
      %32 = tpu.matmul %29, %31, %cst_37 {dimension_numbers = #tpu.dot_dimension_numbers<[1], [0], [0], [1], [0, 0, 1, 1], [], []>} : vector<16x128xbf16>, vector<128x128xbf16>, vector<16x128xf32> -> vector<16x128xf32>
      %33 = arith.addf %25, %32 : vector<16x128xf32>
      %c1_i32_38 = arith.constant 1 : i32
      %34 = arith.addi %arg6, %c1_i32_38 : i32
      %c0_39 = arith.constant 0 : index
      %c0_40 = arith.constant 0 : index
      %35 = arith.index_cast %34 : i32 to index
      %c1_41 = arith.constant 1 : index
      %c0_42 = arith.constant 0 : index
      %36 = vector.load %arg2[%c0_39, %c0_40, %35, %c1_41, %c0_42] : memref<1x1x10x18x128xbf16, #tpu.memory_space<vmem>>, vector<1x1x1x16x128xbf16>
      %37 = vector.shape_cast %36 : vector<1x1x1x16x128xbf16> to vector<16x128xbf16>
      %c1_43 = arith.constant 1 : index
      %c1_44 = arith.constant 1 : index
      %c0_45 = arith.constant 0 : index
      %c0_46 = arith.constant 0 : index
      %38 = vector.load %arg3[%c1_43, %c1_44, %c0_45, %c0_46] : memref<3x3x128x128xbf16, #tpu.memory_space<vmem>>, vector<1x1x128x128xbf16>
      %39 = vector.shape_cast %38 : vector<1x1x128x128xbf16> to vector<128x128xbf16>
      %cst_47 = arith.constant dense<0.000000e+00> : vector<16x128xf32>
      %40 = tpu.matmul %37, %39, %cst_47 {dimension_numbers = #tpu.dot_dimension_numbers<[1], [0], [0], [1], [0, 0, 1, 1], [], []>} : vector<16x128xbf16>, vector<128x128xbf16>, vector<16x128xf32> -> vector<16x128xf32>
      %41 = arith.addf %33, %40 : vector<16x128xf32>
      %c1_i32_48 = arith.constant 1 : i32
      %42 = arith.addi %arg6, %c1_i32_48 : i32
      %c0_49 = arith.constant 0 : index
      %c0_50 = arith.constant 0 : index
      %43 = arith.index_cast %42 : i32 to index
      %c2_51 = arith.constant 2 : index
      %c0_52 = arith.constant 0 : index
      %44 = vector.load %arg2[%c0_49, %c0_50, %43, %c2_51, %c0_52] : memref<1x1x10x18x128xbf16, #tpu.memory_space<vmem>>, vector<1x1x1x16x128xbf16>
      %45 = vector.shape_cast %44 : vector<1x1x1x16x128xbf16> to vector<16x128xbf16>
      %c1_53 = arith.constant 1 : index
      %c2_54 = arith.constant 2 : index
      %c0_55 = arith.constant 0 : index
      %c0_56 = arith.constant 0 : index
      %46 = vector.load %arg3[%c1_53, %c2_54, %c0_55, %c0_56] : memref<3x3x128x128xbf16, #tpu.memory_space<vmem>>, vector<1x1x128x128xbf16>
      %47 = vector.shape_cast %46 : vector<1x1x128x128xbf16> to vector<128x128xbf16>
      %cst_57 = arith.constant dense<0.000000e+00> : vector<16x128xf32>
      %48 = tpu.matmul %45, %47, %cst_57 {dimension_numbers = #tpu.dot_dimension_numbers<[1], [0], [0], [1], [0, 0, 1, 1], [], []>} : vector<16x128xbf16>, vector<128x128xbf16>, vector<16x128xf32> -> vector<16x128xf32>
      %49 = arith.addf %41, %48 : vector<16x128xf32>
      %c2_i32 = arith.constant 2 : i32
      %50 = arith.addi %arg6, %c2_i32 : i32
      %c0_58 = arith.constant 0 : index
      %c0_59 = arith.constant 0 : index
      %51 = arith.index_cast %50 : i32 to index
      %c0_60 = arith.constant 0 : index
      %c0_61 = arith.constant 0 : index
      %52 = vector.load %arg2[%c0_58, %c0_59, %51, %c0_60, %c0_61] : memref<1x1x10x18x128xbf16, #tpu.memory_space<vmem>>, vector<1x1x1x16x128xbf16>
      %53 = vector.shape_cast %52 : vector<1x1x1x16x128xbf16> to vector<16x128xbf16>
      %c2_62 = arith.constant 2 : index
      %c0_63 = arith.constant 0 : index
      %c0_64 = arith.constant 0 : index
      %c0_65 = arith.constant 0 : index
      %54 = vector.load %arg3[%c2_62, %c0_63, %c0_64, %c0_65] : memref<3x3x128x128xbf16, #tpu.memory_space<vmem>>, vector<1x1x128x128xbf16>
      %55 = vector.shape_cast %54 : vector<1x1x128x128xbf16> to vector<128x128xbf16>
      %cst_66 = arith.constant dense<0.000000e+00> : vector<16x128xf32>
      %56 = tpu.matmul %53, %55, %cst_66 {dimension_numbers = #tpu.dot_dimension_numbers<[1], [0], [0], [1], [0, 0, 1, 1], [], []>} : vector<16x128xbf16>, vector<128x128xbf16>, vector<16x128xf32> -> vector<16x128xf32>
      %57 = arith.addf %49, %56 : vector<16x128xf32>
      %c2_i32_67 = arith.constant 2 : i32
      %58 = arith.addi %arg6, %c2_i32_67 : i32
      %c0_68 = arith.constant 0 : index
      %c0_69 = arith.constant 0 : index
      %59 = arith.index_cast %58 : i32 to index
      %c1_70 = arith.constant 1 : index
      %c0_71 = arith.constant 0 : index
      %60 = vector.load %arg2[%c0_68, %c0_69, %59, %c1_70, %c0_71] : memref<1x1x10x18x128xbf16, #tpu.memory_space<vmem>>, vector<1x1x1x16x128xbf16>
      %61 = vector.shape_cast %60 : vector<1x1x1x16x128xbf16> to vector<16x128xbf16>
      %c2_72 = arith.constant 2 : index
      %c1_73 = arith.constant 1 : index
      %c0_74 = arith.constant 0 : index
      %c0_75 = arith.constant 0 : index
      %62 = vector.load %arg3[%c2_72, %c1_73, %c0_74, %c0_75] : memref<3x3x128x128xbf16, #tpu.memory_space<vmem>>, vector<1x1x128x128xbf16>
      %63 = vector.shape_cast %62 : vector<1x1x128x128xbf16> to vector<128x128xbf16>
      %cst_76 = arith.constant dense<0.000000e+00> : vector<16x128xf32>
      %64 = tpu.matmul %61, %63, %cst_76 {dimension_numbers = #tpu.dot_dimension_numbers<[1], [0], [0], [1], [0, 0, 1, 1], [], []>} : vector<16x128xbf16>, vector<128x128xbf16>, vector<16x128xf32> -> vector<16x128xf32>
      %65 = arith.addf %57, %64 : vector<16x128xf32>
      %c2_i32_77 = arith.constant 2 : i32
      %66 = arith.addi %arg6, %c2_i32_77 : i32
      %c0_78 = arith.constant 0 : index
      %c0_79 = arith.constant 0 : index
      %67 = arith.index_cast %66 : i32 to index
      %c2_80 = arith.constant 2 : index
      %c0_81 = arith.constant 0 : index
      %68 = vector.load %arg2[%c0_78, %c0_79, %67, %c2_80, %c0_81] : memref<1x1x10x18x128xbf16, #tpu.memory_space<vmem>>, vector<1x1x1x16x128xbf16>
      %69 = vector.shape_cast %68 : vector<1x1x1x16x128xbf16> to vector<16x128xbf16>
      %c2_82 = arith.constant 2 : index
      %c2_83 = arith.constant 2 : index
      %c0_84 = arith.constant 0 : index
      %c0_85 = arith.constant 0 : index
      %70 = vector.load %arg3[%c2_82, %c2_83, %c0_84, %c0_85] : memref<3x3x128x128xbf16, #tpu.memory_space<vmem>>, vector<1x1x128x128xbf16>
      %71 = vector.shape_cast %70 : vector<1x1x128x128xbf16> to vector<128x128xbf16>
      %cst_86 = arith.constant dense<0.000000e+00> : vector<16x128xf32>
      %72 = tpu.matmul %69, %71, %cst_86 {dimension_numbers = #tpu.dot_dimension_numbers<[1], [0], [0], [1], [0, 0, 1, 1], [], []>} : vector<16x128xbf16>, vector<128x128xbf16>, vector<16x128xf32> -> vector<16x128xf32>
      %73 = arith.addf %65, %72 : vector<16x128xf32>
      %c0_87 = arith.constant 0 : index
      %c0_88 = arith.constant 0 : index
      %74 = vector.load %arg4[%c0_87, %c0_88] : memref<1x128xf32, #tpu.memory_space<vmem>>, vector<1x128xf32>
      %75 = vector.broadcast %74 : vector<1x128xf32> to vector<16x128xf32>
      %76 = arith.addf %73, %75 : vector<16x128xf32>
      %cst_89 = arith.constant 0.000000e+00 : f32
      %77 = vector.broadcast %cst_89 : f32 to vector<16x128xf32>
      %78 = arith.maximumf %76, %77 : vector<16x128xf32>
      %79 = arith.truncf %78 : vector<16x128xf32> to vector<16x128xbf16>
      %c0_90 = arith.constant 0 : index
      %c0_91 = arith.constant 0 : index
      %80 = arith.index_cast %arg6 : i32 to index
      %c0_92 = arith.constant 0 : index
      %c0_93 = arith.constant 0 : index
      %81 = vector.load %arg5[%c0_90, %c0_91, %80, %c0_92, %c0_93] : memref<1x1x8x16x128xbf16, #tpu.memory_space<vmem>>, vector<1x1x1x16x128xbf16>
      %82 = vector.shape_cast %81 : vector<1x1x1x16x128xbf16> to vector<16x128xbf16>
      %83 = vector.shape_cast %79 : vector<16x128xbf16> to vector<1x1x1x16x128xbf16>
      tpu.vector_store %arg5[%c0_90, %c0_91, %80, %c0_92, %c0_93], %83 {strides = array<i32>} : memref<1x1x8x16x128xbf16, #tpu.memory_space<vmem>>, vector<1x1x1x16x128xbf16>,
    }
    %c8_i32_0 = arith.constant 8 : i32
    return
  }
  func.func @transform_0(%arg0: i32, %arg1: i32) -> (i32, i32, i32, i32, i32) {
    %c0_i32 = arith.constant 0 : i32
    %c0_i32_0 = arith.constant 0 : i32
    %c0_i32_1 = arith.constant 0 : i32
    %c0_i32_2 = arith.constant 0 : i32
    return %arg0, %arg1, %c0_i32, %c0_i32_0, %c0_i32_1 : i32, i32, i32, i32, i32
  }
  func.func @transform_1(%arg0: i32, %arg1: i32) -> (i32, i32, i32, i32) {
    %c0_i32 = arith.constant 0 : i32
    %c0_i32_0 = arith.constant 0 : i32
    %c0_i32_1 = arith.constant 0 : i32
    %c0_i32_2 = arith.constant 0 : i32
    %c0_i32_3 = arith.constant 0 : i32
    return %c0_i32, %c0_i32_0, %c0_i32_1, %c0_i32_2 : i32, i32, i32, i32
  }
  func.func @transform_2(%arg0: i32, %arg1: i32) -> (i32, i32) {
    %c0_i32 = arith.constant 0 : i32
    %c0_i32_0 = arith.constant 0 : i32
    %c0_i32_1 = arith.constant 0 : i32
    return %c0_i32, %c0_i32_0 : i32, i32
  }
  func.func @transform_3(%arg0: i32, %arg1: i32) -> (i32, i32, i32, i32, i32) {
    %c0_i32 = arith.constant 0 : i32
    %c0_i32_0 = arith.constant 0 : i32
    %c0_i32_1 = arith.constant 0 : i32
    %c0_i32_2 = arith.constant 0 : i32
    return %arg0, %arg1, %c0_i32, %c0_i32_0, %c0_i32_1 : i32, i32, i32, i32, i32
  }
}

module attributes {stable_mosaic.version = 11 : i64} {
  func.func @_maxpool_kernel(%arg0: i32, %arg1: i32, %arg2: memref<1x8x2x8x256xbf16, #tpu.memory_space<vmem>>, %arg3: memref<1x8x8x128xbf16, #tpu.memory_space<vmem>>) attributes {dimension_semantics = [#tpu.dimension_semantics<parallel>, #tpu.dimension_semantics<parallel>], iteration_bounds = array<i64: 4, 1>, scalar_prefetch = 0 : i64, scratch_operands = 0 : i64, tpu.core_type = #tpu.core_type<tc>, window_params = [{transform_indices = @transform_0, window_bounds = array<i64: 1, 8, 2, 8, 256>}, {transform_indices = @transform_1, window_bounds = array<i64: 1, 8, 8, 128>}]} {
    %c0 = arith.constant 0 : index
    %c0_0 = arith.constant 0 : index
    %c0_1 = arith.constant 0 : index
    %c0_2 = arith.constant 0 : index
    %c0_3 = arith.constant 0 : index
    %0 = vector.load %arg2[%c0, %c0_0, %c0_1, %c0_2, %c0_3] : memref<1x8x2x8x256xbf16, #tpu.memory_space<vmem>>, vector<1x8x1x8x256xbf16>
    %1 = vector.shape_cast %0 : vector<1x8x1x8x256xbf16> to vector<8x8x256xbf16>
    %c0_4 = arith.constant 0 : index
    %c0_5 = arith.constant 0 : index
    %c1 = arith.constant 1 : index
    %c0_6 = arith.constant 0 : index
    %c0_7 = arith.constant 0 : index
    %2 = vector.load %arg2[%c0_4, %c0_5, %c1, %c0_6, %c0_7] : memref<1x8x2x8x256xbf16, #tpu.memory_space<vmem>>, vector<1x8x1x8x256xbf16>
    %3 = vector.shape_cast %2 : vector<1x8x1x8x256xbf16> to vector<8x8x256xbf16>
    %4 = arith.maximumf %1, %3 : vector<8x8x256xbf16>
    %5 = vector.extract_strided_slice %4 {offsets = [0, 0, 0], sizes = [8, 8, 128], strides = [1, 1, 1]} : vector<8x8x256xbf16> to vector<8x8x128xbf16>
    %6 = vector.extract_strided_slice %4 {offsets = [0, 0, 128], sizes = [8, 8, 128], strides = [1, 1, 1]} : vector<8x8x256xbf16> to vector<8x8x128xbf16>
    %7 = arith.maximumf %5, %6 : vector<8x8x128xbf16>
    %c0_8 = arith.constant 0 : index
    %c0_9 = arith.constant 0 : index
    %c0_10 = arith.constant 0 : index
    %c0_11 = arith.constant 0 : index
    %8 = vector.load %arg3[%c0_8, %c0_9, %c0_10, %c0_11] : memref<1x8x8x128xbf16, #tpu.memory_space<vmem>>, vector<1x8x8x128xbf16>
    %9 = vector.shape_cast %8 : vector<1x8x8x128xbf16> to vector<8x8x128xbf16>
    %10 = vector.shape_cast %7 : vector<8x8x128xbf16> to vector<1x8x8x128xbf16>
    tpu.vector_store %arg3[%c0_8, %c0_9, %c0_10, %c0_11], %10 {strides = array<i32>} : memref<1x8x8x128xbf16, #tpu.memory_space<vmem>>, vector<1x8x8x128xbf16>,
    return
  }
  func.func @transform_0(%arg0: i32, %arg1: i32) -> (i32, i32, i32, i32, i32) {
    %c0_i32 = arith.constant 0 : i32
    %c0_i32_0 = arith.constant 0 : i32
    %c0_i32_1 = arith.constant 0 : i32
    %c0_i32_2 = arith.constant 0 : i32
    return %arg0, %arg1, %c0_i32, %c0_i32_0, %c0_i32_1 : i32, i32, i32, i32, i32
  }
  func.func @transform_1(%arg0: i32, %arg1: i32) -> (i32, i32, i32, i32) {
    %c0_i32 = arith.constant 0 : i32
    %c0_i32_0 = arith.constant 0 : i32
    %c0_i32_1 = arith.constant 0 : i32
    return %arg0, %arg1, %c0_i32, %c0_i32_0 : i32, i32, i32, i32
  }
}

module attributes {stable_mosaic.version = 11 : i64} {
  func.func @_conv_band_kernel(%arg0: i32, %arg1: i32, %arg2: memref<1x1x10x10x128xbf16, #tpu.memory_space<vmem>>, %arg3: memref<3x3x128x128xbf16, #tpu.memory_space<vmem>>, %arg4: memref<1x128xf32, #tpu.memory_space<vmem>>, %arg5: memref<1x1x8x8x128xbf16, #tpu.memory_space<vmem>>) attributes {dimension_semantics = [#tpu.dimension_semantics<parallel>, #tpu.dimension_semantics<parallel>], iteration_bounds = array<i64: 4, 1>, scalar_prefetch = 0 : i64, scratch_operands = 0 : i64, tpu.core_type = #tpu.core_type<tc>, window_params = [{transform_indices = @transform_0, window_bounds = array<i64: 1, 1, 10, 10, 128>}, {pipeline_mode = #tpu.pipeline_mode<synchronous>, transform_indices = @transform_1, window_bounds = array<i64: 3, 3, 128, 128>}, {pipeline_mode = #tpu.pipeline_mode<synchronous>, transform_indices = @transform_2, window_bounds = array<i64: 1, 128>}, {transform_indices = @transform_3, window_bounds = array<i64: 1, 1, 8, 8, 128>}]} {
    %c0_i32 = arith.constant 0 : i32
    %c8_i32 = arith.constant 8 : i32
    %0 = arith.addi %c0_i32, %c8_i32 : i32
    %c1_i32 = arith.constant 1 : i32
    scf.for %arg6 = %c0_i32 to %0 step %c1_i32  : i32 {
      %cst = arith.constant 0.000000e+00 : f32
      %1 = vector.broadcast %cst : f32 to vector<8x128xf32>
      %c0_i32_1 = arith.constant 0 : i32
      %2 = arith.addi %arg6, %c0_i32_1 : i32
      %c0 = arith.constant 0 : index
      %c0_2 = arith.constant 0 : index
      %3 = arith.index_cast %2 : i32 to index
      %c0_3 = arith.constant 0 : index
      %c0_4 = arith.constant 0 : index
      %4 = vector.load %arg2[%c0, %c0_2, %3, %c0_3, %c0_4] : memref<1x1x10x10x128xbf16, #tpu.memory_space<vmem>>, vector<1x1x1x8x128xbf16>
      %5 = vector.shape_cast %4 : vector<1x1x1x8x128xbf16> to vector<8x128xbf16>
      %c0_5 = arith.constant 0 : index
      %c0_6 = arith.constant 0 : index
      %c0_7 = arith.constant 0 : index
      %c0_8 = arith.constant 0 : index
      %6 = vector.load %arg3[%c0_5, %c0_6, %c0_7, %c0_8] : memref<3x3x128x128xbf16, #tpu.memory_space<vmem>>, vector<1x1x128x128xbf16>
      %7 = vector.shape_cast %6 : vector<1x1x128x128xbf16> to vector<128x128xbf16>
      %cst_9 = arith.constant dense<0.000000e+00> : vector<8x128xf32>
      %8 = tpu.matmul %5, %7, %cst_9 {dimension_numbers = #tpu.dot_dimension_numbers<[1], [0], [0], [1], [0, 0, 1, 1], [], []>} : vector<8x128xbf16>, vector<128x128xbf16>, vector<8x128xf32> -> vector<8x128xf32>
      %9 = arith.addf %1, %8 : vector<8x128xf32>
      %c0_i32_10 = arith.constant 0 : i32
      %10 = arith.addi %arg6, %c0_i32_10 : i32
      %c0_11 = arith.constant 0 : index
      %c0_12 = arith.constant 0 : index
      %11 = arith.index_cast %10 : i32 to index
      %c1 = arith.constant 1 : index
      %c0_13 = arith.constant 0 : index
      %12 = vector.load %arg2[%c0_11, %c0_12, %11, %c1, %c0_13] : memref<1x1x10x10x128xbf16, #tpu.memory_space<vmem>>, vector<1x1x1x8x128xbf16>
      %13 = vector.shape_cast %12 : vector<1x1x1x8x128xbf16> to vector<8x128xbf16>
      %c0_14 = arith.constant 0 : index
      %c1_15 = arith.constant 1 : index
      %c0_16 = arith.constant 0 : index
      %c0_17 = arith.constant 0 : index
      %14 = vector.load %arg3[%c0_14, %c1_15, %c0_16, %c0_17] : memref<3x3x128x128xbf16, #tpu.memory_space<vmem>>, vector<1x1x128x128xbf16>
      %15 = vector.shape_cast %14 : vector<1x1x128x128xbf16> to vector<128x128xbf16>
      %cst_18 = arith.constant dense<0.000000e+00> : vector<8x128xf32>
      %16 = tpu.matmul %13, %15, %cst_18 {dimension_numbers = #tpu.dot_dimension_numbers<[1], [0], [0], [1], [0, 0, 1, 1], [], []>} : vector<8x128xbf16>, vector<128x128xbf16>, vector<8x128xf32> -> vector<8x128xf32>
      %17 = arith.addf %9, %16 : vector<8x128xf32>
      %c0_i32_19 = arith.constant 0 : i32
      %18 = arith.addi %arg6, %c0_i32_19 : i32
      %c0_20 = arith.constant 0 : index
      %c0_21 = arith.constant 0 : index
      %19 = arith.index_cast %18 : i32 to index
      %c2 = arith.constant 2 : index
      %c0_22 = arith.constant 0 : index
      %20 = vector.load %arg2[%c0_20, %c0_21, %19, %c2, %c0_22] : memref<1x1x10x10x128xbf16, #tpu.memory_space<vmem>>, vector<1x1x1x8x128xbf16>
      %21 = vector.shape_cast %20 : vector<1x1x1x8x128xbf16> to vector<8x128xbf16>
      %c0_23 = arith.constant 0 : index
      %c2_24 = arith.constant 2 : index
      %c0_25 = arith.constant 0 : index
      %c0_26 = arith.constant 0 : index
      %22 = vector.load %arg3[%c0_23, %c2_24, %c0_25, %c0_26] : memref<3x3x128x128xbf16, #tpu.memory_space<vmem>>, vector<1x1x128x128xbf16>
      %23 = vector.shape_cast %22 : vector<1x1x128x128xbf16> to vector<128x128xbf16>
      %cst_27 = arith.constant dense<0.000000e+00> : vector<8x128xf32>
      %24 = tpu.matmul %21, %23, %cst_27 {dimension_numbers = #tpu.dot_dimension_numbers<[1], [0], [0], [1], [0, 0, 1, 1], [], []>} : vector<8x128xbf16>, vector<128x128xbf16>, vector<8x128xf32> -> vector<8x128xf32>
      %25 = arith.addf %17, %24 : vector<8x128xf32>
      %c1_i32_28 = arith.constant 1 : i32
      %26 = arith.addi %arg6, %c1_i32_28 : i32
      %c0_29 = arith.constant 0 : index
      %c0_30 = arith.constant 0 : index
      %27 = arith.index_cast %26 : i32 to index
      %c0_31 = arith.constant 0 : index
      %c0_32 = arith.constant 0 : index
      %28 = vector.load %arg2[%c0_29, %c0_30, %27, %c0_31, %c0_32] : memref<1x1x10x10x128xbf16, #tpu.memory_space<vmem>>, vector<1x1x1x8x128xbf16>
      %29 = vector.shape_cast %28 : vector<1x1x1x8x128xbf16> to vector<8x128xbf16>
      %c1_33 = arith.constant 1 : index
      %c0_34 = arith.constant 0 : index
      %c0_35 = arith.constant 0 : index
      %c0_36 = arith.constant 0 : index
      %30 = vector.load %arg3[%c1_33, %c0_34, %c0_35, %c0_36] : memref<3x3x128x128xbf16, #tpu.memory_space<vmem>>, vector<1x1x128x128xbf16>
      %31 = vector.shape_cast %30 : vector<1x1x128x128xbf16> to vector<128x128xbf16>
      %cst_37 = arith.constant dense<0.000000e+00> : vector<8x128xf32>
      %32 = tpu.matmul %29, %31, %cst_37 {dimension_numbers = #tpu.dot_dimension_numbers<[1], [0], [0], [1], [0, 0, 1, 1], [], []>} : vector<8x128xbf16>, vector<128x128xbf16>, vector<8x128xf32> -> vector<8x128xf32>
      %33 = arith.addf %25, %32 : vector<8x128xf32>
      %c1_i32_38 = arith.constant 1 : i32
      %34 = arith.addi %arg6, %c1_i32_38 : i32
      %c0_39 = arith.constant 0 : index
      %c0_40 = arith.constant 0 : index
      %35 = arith.index_cast %34 : i32 to index
      %c1_41 = arith.constant 1 : index
      %c0_42 = arith.constant 0 : index
      %36 = vector.load %arg2[%c0_39, %c0_40, %35, %c1_41, %c0_42] : memref<1x1x10x10x128xbf16, #tpu.memory_space<vmem>>, vector<1x1x1x8x128xbf16>
      %37 = vector.shape_cast %36 : vector<1x1x1x8x128xbf16> to vector<8x128xbf16>
      %c1_43 = arith.constant 1 : index
      %c1_44 = arith.constant 1 : index
      %c0_45 = arith.constant 0 : index
      %c0_46 = arith.constant 0 : index
      %38 = vector.load %arg3[%c1_43, %c1_44, %c0_45, %c0_46] : memref<3x3x128x128xbf16, #tpu.memory_space<vmem>>, vector<1x1x128x128xbf16>
      %39 = vector.shape_cast %38 : vector<1x1x128x128xbf16> to vector<128x128xbf16>
      %cst_47 = arith.constant dense<0.000000e+00> : vector<8x128xf32>
      %40 = tpu.matmul %37, %39, %cst_47 {dimension_numbers = #tpu.dot_dimension_numbers<[1], [0], [0], [1], [0, 0, 1, 1], [], []>} : vector<8x128xbf16>, vector<128x128xbf16>, vector<8x128xf32> -> vector<8x128xf32>
      %41 = arith.addf %33, %40 : vector<8x128xf32>
      %c1_i32_48 = arith.constant 1 : i32
      %42 = arith.addi %arg6, %c1_i32_48 : i32
      %c0_49 = arith.constant 0 : index
      %c0_50 = arith.constant 0 : index
      %43 = arith.index_cast %42 : i32 to index
      %c2_51 = arith.constant 2 : index
      %c0_52 = arith.constant 0 : index
      %44 = vector.load %arg2[%c0_49, %c0_50, %43, %c2_51, %c0_52] : memref<1x1x10x10x128xbf16, #tpu.memory_space<vmem>>, vector<1x1x1x8x128xbf16>
      %45 = vector.shape_cast %44 : vector<1x1x1x8x128xbf16> to vector<8x128xbf16>
      %c1_53 = arith.constant 1 : index
      %c2_54 = arith.constant 2 : index
      %c0_55 = arith.constant 0 : index
      %c0_56 = arith.constant 0 : index
      %46 = vector.load %arg3[%c1_53, %c2_54, %c0_55, %c0_56] : memref<3x3x128x128xbf16, #tpu.memory_space<vmem>>, vector<1x1x128x128xbf16>
      %47 = vector.shape_cast %46 : vector<1x1x128x128xbf16> to vector<128x128xbf16>
      %cst_57 = arith.constant dense<0.000000e+00> : vector<8x128xf32>
      %48 = tpu.matmul %45, %47, %cst_57 {dimension_numbers = #tpu.dot_dimension_numbers<[1], [0], [0], [1], [0, 0, 1, 1], [], []>} : vector<8x128xbf16>, vector<128x128xbf16>, vector<8x128xf32> -> vector<8x128xf32>
      %49 = arith.addf %41, %48 : vector<8x128xf32>
      %c2_i32 = arith.constant 2 : i32
      %50 = arith.addi %arg6, %c2_i32 : i32
      %c0_58 = arith.constant 0 : index
      %c0_59 = arith.constant 0 : index
      %51 = arith.index_cast %50 : i32 to index
      %c0_60 = arith.constant 0 : index
      %c0_61 = arith.constant 0 : index
      %52 = vector.load %arg2[%c0_58, %c0_59, %51, %c0_60, %c0_61] : memref<1x1x10x10x128xbf16, #tpu.memory_space<vmem>>, vector<1x1x1x8x128xbf16>
      %53 = vector.shape_cast %52 : vector<1x1x1x8x128xbf16> to vector<8x128xbf16>
      %c2_62 = arith.constant 2 : index
      %c0_63 = arith.constant 0 : index
      %c0_64 = arith.constant 0 : index
      %c0_65 = arith.constant 0 : index
      %54 = vector.load %arg3[%c2_62, %c0_63, %c0_64, %c0_65] : memref<3x3x128x128xbf16, #tpu.memory_space<vmem>>, vector<1x1x128x128xbf16>
      %55 = vector.shape_cast %54 : vector<1x1x128x128xbf16> to vector<128x128xbf16>
      %cst_66 = arith.constant dense<0.000000e+00> : vector<8x128xf32>
      %56 = tpu.matmul %53, %55, %cst_66 {dimension_numbers = #tpu.dot_dimension_numbers<[1], [0], [0], [1], [0, 0, 1, 1], [], []>} : vector<8x128xbf16>, vector<128x128xbf16>, vector<8x128xf32> -> vector<8x128xf32>
      %57 = arith.addf %49, %56 : vector<8x128xf32>
      %c2_i32_67 = arith.constant 2 : i32
      %58 = arith.addi %arg6, %c2_i32_67 : i32
      %c0_68 = arith.constant 0 : index
      %c0_69 = arith.constant 0 : index
      %59 = arith.index_cast %58 : i32 to index
      %c1_70 = arith.constant 1 : index
      %c0_71 = arith.constant 0 : index
      %60 = vector.load %arg2[%c0_68, %c0_69, %59, %c1_70, %c0_71] : memref<1x1x10x10x128xbf16, #tpu.memory_space<vmem>>, vector<1x1x1x8x128xbf16>
      %61 = vector.shape_cast %60 : vector<1x1x1x8x128xbf16> to vector<8x128xbf16>
      %c2_72 = arith.constant 2 : index
      %c1_73 = arith.constant 1 : index
      %c0_74 = arith.constant 0 : index
      %c0_75 = arith.constant 0 : index
      %62 = vector.load %arg3[%c2_72, %c1_73, %c0_74, %c0_75] : memref<3x3x128x128xbf16, #tpu.memory_space<vmem>>, vector<1x1x128x128xbf16>
      %63 = vector.shape_cast %62 : vector<1x1x128x128xbf16> to vector<128x128xbf16>
      %cst_76 = arith.constant dense<0.000000e+00> : vector<8x128xf32>
      %64 = tpu.matmul %61, %63, %cst_76 {dimension_numbers = #tpu.dot_dimension_numbers<[1], [0], [0], [1], [0, 0, 1, 1], [], []>} : vector<8x128xbf16>, vector<128x128xbf16>, vector<8x128xf32> -> vector<8x128xf32>
      %65 = arith.addf %57, %64 : vector<8x128xf32>
      %c2_i32_77 = arith.constant 2 : i32
      %66 = arith.addi %arg6, %c2_i32_77 : i32
      %c0_78 = arith.constant 0 : index
      %c0_79 = arith.constant 0 : index
      %67 = arith.index_cast %66 : i32 to index
      %c2_80 = arith.constant 2 : index
      %c0_81 = arith.constant 0 : index
      %68 = vector.load %arg2[%c0_78, %c0_79, %67, %c2_80, %c0_81] : memref<1x1x10x10x128xbf16, #tpu.memory_space<vmem>>, vector<1x1x1x8x128xbf16>
      %69 = vector.shape_cast %68 : vector<1x1x1x8x128xbf16> to vector<8x128xbf16>
      %c2_82 = arith.constant 2 : index
      %c2_83 = arith.constant 2 : index
      %c0_84 = arith.constant 0 : index
      %c0_85 = arith.constant 0 : index
      %70 = vector.load %arg3[%c2_82, %c2_83, %c0_84, %c0_85] : memref<3x3x128x128xbf16, #tpu.memory_space<vmem>>, vector<1x1x128x128xbf16>
      %71 = vector.shape_cast %70 : vector<1x1x128x128xbf16> to vector<128x128xbf16>
      %cst_86 = arith.constant dense<0.000000e+00> : vector<8x128xf32>
      %72 = tpu.matmul %69, %71, %cst_86 {dimension_numbers = #tpu.dot_dimension_numbers<[1], [0], [0], [1], [0, 0, 1, 1], [], []>} : vector<8x128xbf16>, vector<128x128xbf16>, vector<8x128xf32> -> vector<8x128xf32>
      %73 = arith.addf %65, %72 : vector<8x128xf32>
      %c0_87 = arith.constant 0 : index
      %c0_88 = arith.constant 0 : index
      %74 = vector.load %arg4[%c0_87, %c0_88] : memref<1x128xf32, #tpu.memory_space<vmem>>, vector<1x128xf32>
      %75 = vector.broadcast %74 : vector<1x128xf32> to vector<8x128xf32>
      %76 = arith.addf %73, %75 : vector<8x128xf32>
      %cst_89 = arith.constant 0.000000e+00 : f32
      %77 = vector.broadcast %cst_89 : f32 to vector<8x128xf32>
      %78 = arith.maximumf %76, %77 : vector<8x128xf32>
      %79 = arith.truncf %78 : vector<8x128xf32> to vector<8x128xbf16>
      %c0_90 = arith.constant 0 : index
      %c0_91 = arith.constant 0 : index
      %80 = arith.index_cast %arg6 : i32 to index
      %c0_92 = arith.constant 0 : index
      %c0_93 = arith.constant 0 : index
      %81 = vector.load %arg5[%c0_90, %c0_91, %80, %c0_92, %c0_93] : memref<1x1x8x8x128xbf16, #tpu.memory_space<vmem>>, vector<1x1x1x8x128xbf16>
      %82 = vector.shape_cast %81 : vector<1x1x1x8x128xbf16> to vector<8x128xbf16>
      %83 = vector.shape_cast %79 : vector<8x128xbf16> to vector<1x1x1x8x128xbf16>
      tpu.vector_store %arg5[%c0_90, %c0_91, %80, %c0_92, %c0_93], %83 {strides = array<i32>} : memref<1x1x8x8x128xbf16, #tpu.memory_space<vmem>>, vector<1x1x1x8x128xbf16>,
    }
    %c8_i32_0 = arith.constant 8 : i32
    return
  }
  func.func @transform_0(%arg0: i32, %arg1: i32) -> (i32, i32, i32, i32, i32) {
    %c0_i32 = arith.constant 0 : i32
    %c0_i32_0 = arith.constant 0 : i32
    %c0_i32_1 = arith.constant 0 : i32
    %c0_i32_2 = arith.constant 0 : i32
    return %arg0, %arg1, %c0_i32, %c0_i32_0, %c0_i32_1 : i32, i32, i32, i32, i32
  }
  func.func @transform_1(%arg0: i32, %arg1: i32) -> (i32, i32, i32, i32) {
    %c0_i32 = arith.constant 0 : i32
    %c0_i32_0 = arith.constant 0 : i32
    %c0_i32_1 = arith.constant 0 : i32
    %c0_i32_2 = arith.constant 0 : i32
    %c0_i32_3 = arith.constant 0 : i32
    return %c0_i32, %c0_i32_0, %c0_i32_1, %c0_i32_2 : i32, i32, i32, i32
  }
  func.func @transform_2(%arg0: i32, %arg1: i32) -> (i32, i32) {
    %c0_i32 = arith.constant 0 : i32
    %c0_i32_0 = arith.constant 0 : i32
    %c0_i32_1 = arith.constant 0 : i32
    return %c0_i32, %c0_i32_0 : i32, i32
  }
  func.func @transform_3(%arg0: i32, %arg1: i32) -> (i32, i32, i32, i32, i32) {
    %c0_i32 = arith.constant 0 : i32
    %c0_i32_0 = arith.constant 0 : i32
    %c0_i32_1 = arith.constant 0 : i32
    %c0_i32_2 = arith.constant 0 : i32
    return %arg0, %arg1, %c0_i32, %c0_i32_0, %c0_i32_1 : i32, i32, i32, i32, i32
  }
}

module attributes {stable_mosaic.version = 11 : i64} {
  func.func @_maxpool_kernel(%arg0: i32, %arg1: i32, %arg2: memref<1x4x2x4x256xbf16, #tpu.memory_space<vmem>>, %arg3: memref<1x4x4x128xbf16, #tpu.memory_space<vmem>>) attributes {dimension_semantics = [#tpu.dimension_semantics<parallel>, #tpu.dimension_semantics<parallel>], iteration_bounds = array<i64: 4, 1>, scalar_prefetch = 0 : i64, scratch_operands = 0 : i64, tpu.core_type = #tpu.core_type<tc>, window_params = [{transform_indices = @transform_0, window_bounds = array<i64: 1, 4, 2, 4, 256>}, {transform_indices = @transform_1, window_bounds = array<i64: 1, 4, 4, 128>}]} {
    %c0 = arith.constant 0 : index
    %c0_0 = arith.constant 0 : index
    %c0_1 = arith.constant 0 : index
    %c0_2 = arith.constant 0 : index
    %c0_3 = arith.constant 0 : index
    %0 = vector.load %arg2[%c0, %c0_0, %c0_1, %c0_2, %c0_3] : memref<1x4x2x4x256xbf16, #tpu.memory_space<vmem>>, vector<1x4x1x4x256xbf16>
    %1 = vector.shape_cast %0 : vector<1x4x1x4x256xbf16> to vector<4x4x256xbf16>
    %c0_4 = arith.constant 0 : index
    %c0_5 = arith.constant 0 : index
    %c1 = arith.constant 1 : index
    %c0_6 = arith.constant 0 : index
    %c0_7 = arith.constant 0 : index
    %2 = vector.load %arg2[%c0_4, %c0_5, %c1, %c0_6, %c0_7] : memref<1x4x2x4x256xbf16, #tpu.memory_space<vmem>>, vector<1x4x1x4x256xbf16>
    %3 = vector.shape_cast %2 : vector<1x4x1x4x256xbf16> to vector<4x4x256xbf16>
    %4 = arith.maximumf %1, %3 : vector<4x4x256xbf16>
    %5 = vector.extract_strided_slice %4 {offsets = [0, 0, 0], sizes = [4, 4, 128], strides = [1, 1, 1]} : vector<4x4x256xbf16> to vector<4x4x128xbf16>
    %6 = vector.extract_strided_slice %4 {offsets = [0, 0, 128], sizes = [4, 4, 128], strides = [1, 1, 1]} : vector<4x4x256xbf16> to vector<4x4x128xbf16>
    %7 = arith.maximumf %5, %6 : vector<4x4x128xbf16>
    %c0_8 = arith.constant 0 : index
    %c0_9 = arith.constant 0 : index
    %c0_10 = arith.constant 0 : index
    %c0_11 = arith.constant 0 : index
    %8 = vector.load %arg3[%c0_8, %c0_9, %c0_10, %c0_11] : memref<1x4x4x128xbf16, #tpu.memory_space<vmem>>, vector<1x4x4x128xbf16>
    %9 = vector.shape_cast %8 : vector<1x4x4x128xbf16> to vector<4x4x128xbf16>
    %10 = vector.shape_cast %7 : vector<4x4x128xbf16> to vector<1x4x4x128xbf16>
    tpu.vector_store %arg3[%c0_8, %c0_9, %c0_10, %c0_11], %10 {strides = array<i32>} : memref<1x4x4x128xbf16, #tpu.memory_space<vmem>>, vector<1x4x4x128xbf16>,
    return
  }
  func.func @transform_0(%arg0: i32, %arg1: i32) -> (i32, i32, i32, i32, i32) {
    %c0_i32 = arith.constant 0 : i32
    %c0_i32_0 = arith.constant 0 : i32
    %c0_i32_1 = arith.constant 0 : i32
    %c0_i32_2 = arith.constant 0 : i32
    return %arg0, %arg1, %c0_i32, %c0_i32_0, %c0_i32_1 : i32, i32, i32, i32, i32
  }
  func.func @transform_1(%arg0: i32, %arg1: i32) -> (i32, i32, i32, i32) {
    %c0_i32 = arith.constant 0 : i32
    %c0_i32_0 = arith.constant 0 : i32
    %c0_i32_1 = arith.constant 0 : i32
    return %arg0, %arg1, %c0_i32, %c0_i32_0 : i32, i32, i32, i32
  }
}

module attributes {stable_mosaic.version = 11 : i64} {
  func.func @_mse_sum_kernel(%arg0: i32, %arg1: memref<64x128xbf16, #tpu.memory_space<vmem>>, %arg2: memref<64x128xbf16, #tpu.memory_space<vmem>>, %arg3: memref<1x1xf32, #tpu.memory_space<vmem>>) attributes {dimension_semantics = [#tpu.dimension_semantics<arbitrary>], iteration_bounds = array<i64: 1>, scalar_prefetch = 0 : i64, scratch_operands = 0 : i64, tpu.core_type = #tpu.core_type<tc>, window_params = [{transform_indices = @transform_0, window_bounds = array<i64: 64, 128>}, {transform_indices = @transform_1, window_bounds = array<i64: 64, 128>}, {pipeline_mode = #tpu.pipeline_mode<synchronous>, transform_indices = @transform_2, window_bounds = array<i64: 1, 1>}]} {
    %c0_i32 = arith.constant 0 : i32
    %0 = arith.cmpi eq, %arg0, %c0_i32 : i32
    %1 = arith.extui %0 : i1 to i32
    %c0_i32_0 = arith.constant 0 : i32
    %2 = arith.cmpi ne, %1, %c0_i32_0 : i32
    scf.if %2 {
      %cst_8 = arith.constant 0.000000e+00 : f32
      %17 = vector.broadcast %cst_8 : f32 to vector<1x1xf32>
      %c0_9 = arith.constant 0 : index
      %c0_10 = arith.constant 0 : index
      %18 = vector.load %arg3[%c0_9, %c0_10] : memref<1x1xf32, #tpu.memory_space<vmem>>, vector<1x1xf32>
      tpu.vector_store %arg3[%c0_9, %c0_10], %17 {strides = array<i32>} : memref<1x1xf32, #tpu.memory_space<vmem>>, vector<1x1xf32>,
    } else {
    }
    %c0 = arith.constant 0 : index
    %c0_1 = arith.constant 0 : index
    %3 = vector.load %arg1[%c0, %c0_1] : memref<64x128xbf16, #tpu.memory_space<vmem>>, vector<64x128xbf16>
    %4 = arith.extf %3 : vector<64x128xbf16> to vector<64x128xf32>
    %c0_2 = arith.constant 0 : index
    %c0_3 = arith.constant 0 : index
    %5 = vector.load %arg2[%c0_2, %c0_3] : memref<64x128xbf16, #tpu.memory_space<vmem>>, vector<64x128xbf16>
    %6 = arith.extf %5 : vector<64x128xbf16> to vector<64x128xf32>
    %7 = arith.subf %4, %6 : vector<64x128xf32>
    %c0_4 = arith.constant 0 : index
    %c0_5 = arith.constant 0 : index
    %8 = vector.load %arg3[%c0_4, %c0_5] : memref<1x1xf32, #tpu.memory_space<vmem>>, vector<1x1xf32>
    %9 = arith.mulf %7, %7 : vector<64x128xf32>
    %10 = vector.shape_cast %9 : vector<64x128xf32> to vector<1x64x128xf32>
    %cst = arith.constant dense<0.000000e+00> : vector<1xf32>
    %11 = vector.multi_reduction <add>, %10, %cst [1, 2] : vector<1x64x128xf32> to vector<1xf32>
    %12 = vector.shape_cast %11 : vector<1xf32> to vector<1x1x1xf32>
    %13 = vector.extract %12[0, 0, 0] : f32 from vector<1x1x1xf32>
    %14 = vector.broadcast %13 : f32 to vector<1x1xf32>
    %15 = arith.addf %8, %14 : vector<1x1xf32>
    %c0_6 = arith.constant 0 : index
    %c0_7 = arith.constant 0 : index
    %16 = vector.load %arg3[%c0_6, %c0_7] : memref<1x1xf32, #tpu.memory_space<vmem>>, vector<1x1xf32>
    tpu.vector_store %arg3[%c0_6, %c0_7], %15 {strides = array<i32>} : memref<1x1xf32, #tpu.memory_space<vmem>>, vector<1x1xf32>,
    return
  }
  func.func @transform_0(%arg0: i32) -> (i32, i32) {
    %c0_i32 = arith.constant 0 : i32
    %c0_i32_0 = arith.constant 0 : i32
    return %arg0, %c0_i32 : i32, i32
  }
  func.func @transform_1(%arg0: i32) -> (i32, i32) {
    %c0_i32 = arith.constant 0 : i32
    %c0_i32_0 = arith.constant 0 : i32
    return %arg0, %c0_i32 : i32, i32
  }
  func.func @transform_2(%arg0: i32) -> (i32, i32) {
    %c0_i32 = arith.constant 0 : i32
    %c0_i32_0 = arith.constant 0 : i32
    %c0_i32_1 = arith.constant 0 : i32
    return %c0_i32, %c0_i32_0 : i32, i32
  }
}

module attributes {stable_mosaic.version = 11 : i64} {
  func.func @_conv_band_kernel(%arg0: i32, %arg1: i32, %arg2: memref<1x1x6x6x128xbf16, #tpu.memory_space<vmem>>, %arg3: memref<3x3x128x256xbf16, #tpu.memory_space<vmem>>, %arg4: memref<1x256xf32, #tpu.memory_space<vmem>>, %arg5: memref<1x1x4x4x256xbf16, #tpu.memory_space<vmem>>) attributes {dimension_semantics = [#tpu.dimension_semantics<parallel>, #tpu.dimension_semantics<parallel>], iteration_bounds = array<i64: 4, 1>, scalar_prefetch = 0 : i64, scratch_operands = 0 : i64, tpu.core_type = #tpu.core_type<tc>, window_params = [{transform_indices = @transform_0, window_bounds = array<i64: 1, 1, 6, 6, 128>}, {pipeline_mode = #tpu.pipeline_mode<synchronous>, transform_indices = @transform_1, window_bounds = array<i64: 3, 3, 128, 256>}, {pipeline_mode = #tpu.pipeline_mode<synchronous>, transform_indices = @transform_2, window_bounds = array<i64: 1, 256>}, {transform_indices = @transform_3, window_bounds = array<i64: 1, 1, 4, 4, 256>}]} {
    %c0_i32 = arith.constant 0 : i32
    %c4_i32 = arith.constant 4 : i32
    %0 = arith.addi %c0_i32, %c4_i32 : i32
    %c1_i32 = arith.constant 1 : i32
    scf.for %arg6 = %c0_i32 to %0 step %c1_i32  : i32 {
      %cst = arith.constant 0.000000e+00 : f32
      %1 = vector.broadcast %cst : f32 to vector<4x256xf32>
      %c0_i32_1 = arith.constant 0 : i32
      %2 = arith.addi %arg6, %c0_i32_1 : i32
      %c0 = arith.constant 0 : index
      %c0_2 = arith.constant 0 : index
      %3 = arith.index_cast %2 : i32 to index
      %c0_3 = arith.constant 0 : index
      %c0_4 = arith.constant 0 : index
      %4 = vector.load %arg2[%c0, %c0_2, %3, %c0_3, %c0_4] : memref<1x1x6x6x128xbf16, #tpu.memory_space<vmem>>, vector<1x1x1x4x128xbf16>
      %5 = vector.shape_cast %4 : vector<1x1x1x4x128xbf16> to vector<4x128xbf16>
      %c0_5 = arith.constant 0 : index
      %c0_6 = arith.constant 0 : index
      %c0_7 = arith.constant 0 : index
      %c0_8 = arith.constant 0 : index
      %6 = vector.load %arg3[%c0_5, %c0_6, %c0_7, %c0_8] : memref<3x3x128x256xbf16, #tpu.memory_space<vmem>>, vector<1x1x128x256xbf16>
      %7 = vector.shape_cast %6 : vector<1x1x128x256xbf16> to vector<128x256xbf16>
      %cst_9 = arith.constant dense<0.000000e+00> : vector<4x256xf32>
      %8 = tpu.matmul %5, %7, %cst_9 {dimension_numbers = #tpu.dot_dimension_numbers<[1], [0], [0], [1], [0, 0, 1, 1], [], []>} : vector<4x128xbf16>, vector<128x256xbf16>, vector<4x256xf32> -> vector<4x256xf32>
      %9 = arith.addf %1, %8 : vector<4x256xf32>
      %c0_i32_10 = arith.constant 0 : i32
      %10 = arith.addi %arg6, %c0_i32_10 : i32
      %c0_11 = arith.constant 0 : index
      %c0_12 = arith.constant 0 : index
      %11 = arith.index_cast %10 : i32 to index
      %c1 = arith.constant 1 : index
      %c0_13 = arith.constant 0 : index
      %12 = vector.load %arg2[%c0_11, %c0_12, %11, %c1, %c0_13] : memref<1x1x6x6x128xbf16, #tpu.memory_space<vmem>>, vector<1x1x1x4x128xbf16>
      %13 = vector.shape_cast %12 : vector<1x1x1x4x128xbf16> to vector<4x128xbf16>
      %c0_14 = arith.constant 0 : index
      %c1_15 = arith.constant 1 : index
      %c0_16 = arith.constant 0 : index
      %c0_17 = arith.constant 0 : index
      %14 = vector.load %arg3[%c0_14, %c1_15, %c0_16, %c0_17] : memref<3x3x128x256xbf16, #tpu.memory_space<vmem>>, vector<1x1x128x256xbf16>
      %15 = vector.shape_cast %14 : vector<1x1x128x256xbf16> to vector<128x256xbf16>
      %cst_18 = arith.constant dense<0.000000e+00> : vector<4x256xf32>
      %16 = tpu.matmul %13, %15, %cst_18 {dimension_numbers = #tpu.dot_dimension_numbers<[1], [0], [0], [1], [0, 0, 1, 1], [], []>} : vector<4x128xbf16>, vector<128x256xbf16>, vector<4x256xf32> -> vector<4x256xf32>
      %17 = arith.addf %9, %16 : vector<4x256xf32>
      %c0_i32_19 = arith.constant 0 : i32
      %18 = arith.addi %arg6, %c0_i32_19 : i32
      %c0_20 = arith.constant 0 : index
      %c0_21 = arith.constant 0 : index
      %19 = arith.index_cast %18 : i32 to index
      %c2 = arith.constant 2 : index
      %c0_22 = arith.constant 0 : index
      %20 = vector.load %arg2[%c0_20, %c0_21, %19, %c2, %c0_22] : memref<1x1x6x6x128xbf16, #tpu.memory_space<vmem>>, vector<1x1x1x4x128xbf16>
      %21 = vector.shape_cast %20 : vector<1x1x1x4x128xbf16> to vector<4x128xbf16>
      %c0_23 = arith.constant 0 : index
      %c2_24 = arith.constant 2 : index
      %c0_25 = arith.constant 0 : index
      %c0_26 = arith.constant 0 : index
      %22 = vector.load %arg3[%c0_23, %c2_24, %c0_25, %c0_26] : memref<3x3x128x256xbf16, #tpu.memory_space<vmem>>, vector<1x1x128x256xbf16>
      %23 = vector.shape_cast %22 : vector<1x1x128x256xbf16> to vector<128x256xbf16>
      %cst_27 = arith.constant dense<0.000000e+00> : vector<4x256xf32>
      %24 = tpu.matmul %21, %23, %cst_27 {dimension_numbers = #tpu.dot_dimension_numbers<[1], [0], [0], [1], [0, 0, 1, 1], [], []>} : vector<4x128xbf16>, vector<128x256xbf16>, vector<4x256xf32> -> vector<4x256xf32>
      %25 = arith.addf %17, %24 : vector<4x256xf32>
      %c1_i32_28 = arith.constant 1 : i32
      %26 = arith.addi %arg6, %c1_i32_28 : i32
      %c0_29 = arith.constant 0 : index
      %c0_30 = arith.constant 0 : index
      %27 = arith.index_cast %26 : i32 to index
      %c0_31 = arith.constant 0 : index
      %c0_32 = arith.constant 0 : index
      %28 = vector.load %arg2[%c0_29, %c0_30, %27, %c0_31, %c0_32] : memref<1x1x6x6x128xbf16, #tpu.memory_space<vmem>>, vector<1x1x1x4x128xbf16>
      %29 = vector.shape_cast %28 : vector<1x1x1x4x128xbf16> to vector<4x128xbf16>
      %c1_33 = arith.constant 1 : index
      %c0_34 = arith.constant 0 : index
      %c0_35 = arith.constant 0 : index
      %c0_36 = arith.constant 0 : index
      %30 = vector.load %arg3[%c1_33, %c0_34, %c0_35, %c0_36] : memref<3x3x128x256xbf16, #tpu.memory_space<vmem>>, vector<1x1x128x256xbf16>
      %31 = vector.shape_cast %30 : vector<1x1x128x256xbf16> to vector<128x256xbf16>
      %cst_37 = arith.constant dense<0.000000e+00> : vector<4x256xf32>
      %32 = tpu.matmul %29, %31, %cst_37 {dimension_numbers = #tpu.dot_dimension_numbers<[1], [0], [0], [1], [0, 0, 1, 1], [], []>} : vector<4x128xbf16>, vector<128x256xbf16>, vector<4x256xf32> -> vector<4x256xf32>
      %33 = arith.addf %25, %32 : vector<4x256xf32>
      %c1_i32_38 = arith.constant 1 : i32
      %34 = arith.addi %arg6, %c1_i32_38 : i32
      %c0_39 = arith.constant 0 : index
      %c0_40 = arith.constant 0 : index
      %35 = arith.index_cast %34 : i32 to index
      %c1_41 = arith.constant 1 : index
      %c0_42 = arith.constant 0 : index
      %36 = vector.load %arg2[%c0_39, %c0_40, %35, %c1_41, %c0_42] : memref<1x1x6x6x128xbf16, #tpu.memory_space<vmem>>, vector<1x1x1x4x128xbf16>
      %37 = vector.shape_cast %36 : vector<1x1x1x4x128xbf16> to vector<4x128xbf16>
      %c1_43 = arith.constant 1 : index
      %c1_44 = arith.constant 1 : index
      %c0_45 = arith.constant 0 : index
      %c0_46 = arith.constant 0 : index
      %38 = vector.load %arg3[%c1_43, %c1_44, %c0_45, %c0_46] : memref<3x3x128x256xbf16, #tpu.memory_space<vmem>>, vector<1x1x128x256xbf16>
      %39 = vector.shape_cast %38 : vector<1x1x128x256xbf16> to vector<128x256xbf16>
      %cst_47 = arith.constant dense<0.000000e+00> : vector<4x256xf32>
      %40 = tpu.matmul %37, %39, %cst_47 {dimension_numbers = #tpu.dot_dimension_numbers<[1], [0], [0], [1], [0, 0, 1, 1], [], []>} : vector<4x128xbf16>, vector<128x256xbf16>, vector<4x256xf32> -> vector<4x256xf32>
      %41 = arith.addf %33, %40 : vector<4x256xf32>
      %c1_i32_48 = arith.constant 1 : i32
      %42 = arith.addi %arg6, %c1_i32_48 : i32
      %c0_49 = arith.constant 0 : index
      %c0_50 = arith.constant 0 : index
      %43 = arith.index_cast %42 : i32 to index
      %c2_51 = arith.constant 2 : index
      %c0_52 = arith.constant 0 : index
      %44 = vector.load %arg2[%c0_49, %c0_50, %43, %c2_51, %c0_52] : memref<1x1x6x6x128xbf16, #tpu.memory_space<vmem>>, vector<1x1x1x4x128xbf16>
      %45 = vector.shape_cast %44 : vector<1x1x1x4x128xbf16> to vector<4x128xbf16>
      %c1_53 = arith.constant 1 : index
      %c2_54 = arith.constant 2 : index
      %c0_55 = arith.constant 0 : index
      %c0_56 = arith.constant 0 : index
      %46 = vector.load %arg3[%c1_53, %c2_54, %c0_55, %c0_56] : memref<3x3x128x256xbf16, #tpu.memory_space<vmem>>, vector<1x1x128x256xbf16>
      %47 = vector.shape_cast %46 : vector<1x1x128x256xbf16> to vector<128x256xbf16>
      %cst_57 = arith.constant dense<0.000000e+00> : vector<4x256xf32>
      %48 = tpu.matmul %45, %47, %cst_57 {dimension_numbers = #tpu.dot_dimension_numbers<[1], [0], [0], [1], [0, 0, 1, 1], [], []>} : vector<4x128xbf16>, vector<128x256xbf16>, vector<4x256xf32> -> vector<4x256xf32>
      %49 = arith.addf %41, %48 : vector<4x256xf32>
      %c2_i32 = arith.constant 2 : i32
      %50 = arith.addi %arg6, %c2_i32 : i32
      %c0_58 = arith.constant 0 : index
      %c0_59 = arith.constant 0 : index
      %51 = arith.index_cast %50 : i32 to index
      %c0_60 = arith.constant 0 : index
      %c0_61 = arith.constant 0 : index
      %52 = vector.load %arg2[%c0_58, %c0_59, %51, %c0_60, %c0_61] : memref<1x1x6x6x128xbf16, #tpu.memory_space<vmem>>, vector<1x1x1x4x128xbf16>
      %53 = vector.shape_cast %52 : vector<1x1x1x4x128xbf16> to vector<4x128xbf16>
      %c2_62 = arith.constant 2 : index
      %c0_63 = arith.constant 0 : index
      %c0_64 = arith.constant 0 : index
      %c0_65 = arith.constant 0 : index
      %54 = vector.load %arg3[%c2_62, %c0_63, %c0_64, %c0_65] : memref<3x3x128x256xbf16, #tpu.memory_space<vmem>>, vector<1x1x128x256xbf16>
      %55 = vector.shape_cast %54 : vector<1x1x128x256xbf16> to vector<128x256xbf16>
      %cst_66 = arith.constant dense<0.000000e+00> : vector<4x256xf32>
      %56 = tpu.matmul %53, %55, %cst_66 {dimension_numbers = #tpu.dot_dimension_numbers<[1], [0], [0], [1], [0, 0, 1, 1], [], []>} : vector<4x128xbf16>, vector<128x256xbf16>, vector<4x256xf32> -> vector<4x256xf32>
      %57 = arith.addf %49, %56 : vector<4x256xf32>
      %c2_i32_67 = arith.constant 2 : i32
      %58 = arith.addi %arg6, %c2_i32_67 : i32
      %c0_68 = arith.constant 0 : index
      %c0_69 = arith.constant 0 : index
      %59 = arith.index_cast %58 : i32 to index
      %c1_70 = arith.constant 1 : index
      %c0_71 = arith.constant 0 : index
      %60 = vector.load %arg2[%c0_68, %c0_69, %59, %c1_70, %c0_71] : memref<1x1x6x6x128xbf16, #tpu.memory_space<vmem>>, vector<1x1x1x4x128xbf16>
      %61 = vector.shape_cast %60 : vector<1x1x1x4x128xbf16> to vector<4x128xbf16>
      %c2_72 = arith.constant 2 : index
      %c1_73 = arith.constant 1 : index
      %c0_74 = arith.constant 0 : index
      %c0_75 = arith.constant 0 : index
      %62 = vector.load %arg3[%c2_72, %c1_73, %c0_74, %c0_75] : memref<3x3x128x256xbf16, #tpu.memory_space<vmem>>, vector<1x1x128x256xbf16>
      %63 = vector.shape_cast %62 : vector<1x1x128x256xbf16> to vector<128x256xbf16>
      %cst_76 = arith.constant dense<0.000000e+00> : vector<4x256xf32>
      %64 = tpu.matmul %61, %63, %cst_76 {dimension_numbers = #tpu.dot_dimension_numbers<[1], [0], [0], [1], [0, 0, 1, 1], [], []>} : vector<4x128xbf16>, vector<128x256xbf16>, vector<4x256xf32> -> vector<4x256xf32>
      %65 = arith.addf %57, %64 : vector<4x256xf32>
      %c2_i32_77 = arith.constant 2 : i32
      %66 = arith.addi %arg6, %c2_i32_77 : i32
      %c0_78 = arith.constant 0 : index
      %c0_79 = arith.constant 0 : index
      %67 = arith.index_cast %66 : i32 to index
      %c2_80 = arith.constant 2 : index
      %c0_81 = arith.constant 0 : index
      %68 = vector.load %arg2[%c0_78, %c0_79, %67, %c2_80, %c0_81] : memref<1x1x6x6x128xbf16, #tpu.memory_space<vmem>>, vector<1x1x1x4x128xbf16>
      %69 = vector.shape_cast %68 : vector<1x1x1x4x128xbf16> to vector<4x128xbf16>
      %c2_82 = arith.constant 2 : index
      %c2_83 = arith.constant 2 : index
      %c0_84 = arith.constant 0 : index
      %c0_85 = arith.constant 0 : index
      %70 = vector.load %arg3[%c2_82, %c2_83, %c0_84, %c0_85] : memref<3x3x128x256xbf16, #tpu.memory_space<vmem>>, vector<1x1x128x256xbf16>
      %71 = vector.shape_cast %70 : vector<1x1x128x256xbf16> to vector<128x256xbf16>
      %cst_86 = arith.constant dense<0.000000e+00> : vector<4x256xf32>
      %72 = tpu.matmul %69, %71, %cst_86 {dimension_numbers = #tpu.dot_dimension_numbers<[1], [0], [0], [1], [0, 0, 1, 1], [], []>} : vector<4x128xbf16>, vector<128x256xbf16>, vector<4x256xf32> -> vector<4x256xf32>
      %73 = arith.addf %65, %72 : vector<4x256xf32>
      %c0_87 = arith.constant 0 : index
      %c0_88 = arith.constant 0 : index
      %74 = vector.load %arg4[%c0_87, %c0_88] : memref<1x256xf32, #tpu.memory_space<vmem>>, vector<1x256xf32>
      %75 = vector.broadcast %74 : vector<1x256xf32> to vector<4x256xf32>
      %76 = arith.addf %73, %75 : vector<4x256xf32>
      %77 = arith.truncf %76 : vector<4x256xf32> to vector<4x256xbf16>
      %c0_89 = arith.constant 0 : index
      %c0_90 = arith.constant 0 : index
      %78 = arith.index_cast %arg6 : i32 to index
      %c0_91 = arith.constant 0 : index
      %c0_92 = arith.constant 0 : index
      %79 = vector.load %arg5[%c0_89, %c0_90, %78, %c0_91, %c0_92] : memref<1x1x4x4x256xbf16, #tpu.memory_space<vmem>>, vector<1x1x1x4x256xbf16>
      %80 = vector.shape_cast %79 : vector<1x1x1x4x256xbf16> to vector<4x256xbf16>
      %81 = vector.shape_cast %77 : vector<4x256xbf16> to vector<1x1x1x4x256xbf16>
      tpu.vector_store %arg5[%c0_89, %c0_90, %78, %c0_91, %c0_92], %81 {strides = array<i32>} : memref<1x1x4x4x256xbf16, #tpu.memory_space<vmem>>, vector<1x1x1x4x256xbf16>,
    }
    %c4_i32_0 = arith.constant 4 : i32
    return
  }
  func.func @transform_0(%arg0: i32, %arg1: i32) -> (i32, i32, i32, i32, i32) {
    %c0_i32 = arith.constant 0 : i32
    %c0_i32_0 = arith.constant 0 : i32
    %c0_i32_1 = arith.constant 0 : i32
    %c0_i32_2 = arith.constant 0 : i32
    return %arg0, %arg1, %c0_i32, %c0_i32_0, %c0_i32_1 : i32, i32, i32, i32, i32
  }
  func.func @transform_1(%arg0: i32, %arg1: i32) -> (i32, i32, i32, i32) {
    %c0_i32 = arith.constant 0 : i32
    %c0_i32_0 = arith.constant 0 : i32
    %c0_i32_1 = arith.constant 0 : i32
    %c0_i32_2 = arith.constant 0 : i32
    %c0_i32_3 = arith.constant 0 : i32
    return %c0_i32, %c0_i32_0, %c0_i32_1, %c0_i32_2 : i32, i32, i32, i32
  }
  func.func @transform_2(%arg0: i32, %arg1: i32) -> (i32, i32) {
    %c0_i32 = arith.constant 0 : i32
    %c0_i32_0 = arith.constant 0 : i32
    %c0_i32_1 = arith.constant 0 : i32
    return %c0_i32, %c0_i32_0 : i32, i32
  }
  func.func @transform_3(%arg0: i32, %arg1: i32) -> (i32, i32, i32, i32, i32) {
    %c0_i32 = arith.constant 0 : i32
    %c0_i32_0 = arith.constant 0 : i32
    %c0_i32_1 = arith.constant 0 : i32
    %c0_i32_2 = arith.constant 0 : i32
    return %arg0, %arg1, %c0_i32, %c0_i32_0, %c0_i32_1 : i32, i32, i32, i32, i32
  }
}

module attributes {stable_mosaic.version = 11 : i64} {
  func.func @_mse_sum_kernel(%arg0: i32, %arg1: memref<16x128xf32, #tpu.memory_space<vmem>>, %arg2: memref<16x128xf32, #tpu.memory_space<vmem>>, %arg3: memref<1x1xf32, #tpu.memory_space<vmem>>) attributes {dimension_semantics = [#tpu.dimension_semantics<arbitrary>], iteration_bounds = array<i64: 1>, scalar_prefetch = 0 : i64, scratch_operands = 0 : i64, tpu.core_type = #tpu.core_type<tc>, window_params = [{transform_indices = @transform_0, window_bounds = array<i64: 16, 128>}, {transform_indices = @transform_1, window_bounds = array<i64: 16, 128>}, {pipeline_mode = #tpu.pipeline_mode<synchronous>, transform_indices = @transform_2, window_bounds = array<i64: 1, 1>}]} {
    %c0_i32 = arith.constant 0 : i32
    %0 = arith.cmpi eq, %arg0, %c0_i32 : i32
    %1 = arith.extui %0 : i1 to i32
    %c0_i32_0 = arith.constant 0 : i32
    %2 = arith.cmpi ne, %1, %c0_i32_0 : i32
    scf.if %2 {
      %cst_8 = arith.constant 0.000000e+00 : f32
      %15 = vector.broadcast %cst_8 : f32 to vector<1x1xf32>
      %c0_9 = arith.constant 0 : index
      %c0_10 = arith.constant 0 : index
      %16 = vector.load %arg3[%c0_9, %c0_10] : memref<1x1xf32, #tpu.memory_space<vmem>>, vector<1x1xf32>
      tpu.vector_store %arg3[%c0_9, %c0_10], %15 {strides = array<i32>} : memref<1x1xf32, #tpu.memory_space<vmem>>, vector<1x1xf32>,
    } else {
    }
    %c0 = arith.constant 0 : index
    %c0_1 = arith.constant 0 : index
    %3 = vector.load %arg1[%c0, %c0_1] : memref<16x128xf32, #tpu.memory_space<vmem>>, vector<16x128xf32>
    %c0_2 = arith.constant 0 : index
    %c0_3 = arith.constant 0 : index
    %4 = vector.load %arg2[%c0_2, %c0_3] : memref<16x128xf32, #tpu.memory_space<vmem>>, vector<16x128xf32>
    %5 = arith.subf %3, %4 : vector<16x128xf32>
    %c0_4 = arith.constant 0 : index
    %c0_5 = arith.constant 0 : index
    %6 = vector.load %arg3[%c0_4, %c0_5] : memref<1x1xf32, #tpu.memory_space<vmem>>, vector<1x1xf32>
    %7 = arith.mulf %5, %5 : vector<16x128xf32>
    %8 = vector.shape_cast %7 : vector<16x128xf32> to vector<1x16x128xf32>
    %cst = arith.constant dense<0.000000e+00> : vector<1xf32>
    %9 = vector.multi_reduction <add>, %8, %cst [1, 2] : vector<1x16x128xf32> to vector<1xf32>
    %10 = vector.shape_cast %9 : vector<1xf32> to vector<1x1x1xf32>
    %11 = vector.extract %10[0, 0, 0] : f32 from vector<1x1x1xf32>
    %12 = vector.broadcast %11 : f32 to vector<1x1xf32>
    %13 = arith.addf %6, %12 : vector<1x1xf32>
    %c0_6 = arith.constant 0 : index
    %c0_7 = arith.constant 0 : index
    %14 = vector.load %arg3[%c0_6, %c0_7] : memref<1x1xf32, #tpu.memory_space<vmem>>, vector<1x1xf32>
    tpu.vector_store %arg3[%c0_6, %c0_7], %13 {strides = array<i32>} : memref<1x1xf32, #tpu.memory_space<vmem>>, vector<1x1xf32>,
    return
  }
  func.func @transform_0(%arg0: i32) -> (i32, i32) {
    %c0_i32 = arith.constant 0 : i32
    %c0_i32_0 = arith.constant 0 : i32
    return %arg0, %c0_i32 : i32, i32
  }
  func.func @transform_1(%arg0: i32) -> (i32, i32) {
    %c0_i32 = arith.constant 0 : i32
    %c0_i32_0 = arith.constant 0 : i32
    return %arg0, %c0_i32 : i32, i32
  }
  func.func @transform_2(%arg0: i32) -> (i32, i32) {
    %c0_i32 = arith.constant 0 : i32
    %c0_i32_0 = arith.constant 0 : i32
    %c0_i32_1 = arith.constant 0 : i32
    return %c0_i32, %c0_i32_0 : i32, i32
  }
}

</mosaic_0001>

<bundles_post_ra>
// kernel: _lambda_.9
= control target key start
LH: loop header
LB: loop body
LE: loop exit
PB: predicated region body
PF: predicated region fallthrough
CT: control target
= control target key end

     0   :  { %s1196_s12 = smov 0   ;;  %s1198_s13 = smov 0   ;;  %s1366_s0 = inlined_call_operand.vmem [shape: bf16[4,2,10,18,3], index: 0, kind: input, shape index: {}]   ;;  %s1367_s1 = inlined_call_operand.vmem [shape: bf16[3,3,3,128], index: 1, kind: input, shape index: {}]   ;;  %s1368_s2 = inlined_call_operand.vmem [shape: f32[1,128], index: 2, kind: input, shape index: {}]   ;;  %s1369_s3 = inlined_call_operand.vmem [shape: bf16[4,2,8,16,128], index: 3, kind: output, shape index: {}]  }
   0x1   :  { %s1200_s14 = smov 0   ;;  %s1202_s15 = smov 0  }
   0x2   :  { %s1204_s16 = smov 0  }
   0x3 LB: > { %s22_s17 = sadd.s32 1, %s1159_s14  ;;  %s25_s18 = sadd.s32 1, %s1163_s15  ;;  %s1167_s16 = sphi %s1204_s16, %s13_s16   ;;  %s1163_s15 = sphi %s1202_s15, %s1373_s15   ;;  %s1159_s14 = sphi %s1200_s14, %s1372_s14   ;;  %s1155_s13 = sphi %s1198_s13, %s1371_s13   ;;  %s1151_s12 = sphi %s1196_s12, %s1370_s12  }
   0x4   : > { %p23_p0 = scmp.ge.s32.totalorder %s22_s17, 2  ;;  %p927_p1 = scmp.ge.s32.totalorder %s1167_s16, 1 }
   0x5   : > { %p157_p2 = scmp.lt.s32.totalorder %s1167_s16, 9 }
   0x6   : > { %s1375_s17 = smov (%p23_p0, %s22_s17), 0  ;;  %s1377_s18 = smov (!%p23_p0, %s25_s18), %s1163_s15 }
   0x7   : > { %p158_p3 = pnand %p927_p1, %p157_p2  ;;  %p27_p4 = scmp.ge.s32.totalorder %s1377_s18, 4 }
   0x8   : > { %p189_p5 = scmp.lt.s32.totalorder (!%p158_p3), %s1155_s13, 3  ;;  %p191_p6 = scmp.lt.s32.totalorder (!%p158_p3), %s1151_s12, 1 }
   0x9   : > { %s1379_s18 = smov (%p27_p4, %s1377_s18), 0  ;;  %161 = sbr.rel (%p158_p3) target bundleno = 273 (0x111), region = 32 }
   0xa   : > { %s1236_s6 = smov (!%p158_p3), 0  }
   0xe   : > { %s1381_s13 = smov (!%p189_p5, %s1155_s13), 3  ;;  %s1383_s12 = smov (!%p191_p6, %s1151_s12), 1 }
   0xf   : > { %s1062_s19 = smul.u32 60, %s1381_s13  ;;  %s930_s20 = sshll.u32 %s1381_s13, 5 }
  0x10   : > { %s1061_s21 = smul.u32 30, %s1383_s12  ;;  %s929_s22 = sshll.u32 %s1383_s12, 4 }
  0x11   : > { %s204_s23 = sadd.s32 %s930_s20, %s929_s22 }
  0x12   : > { %s195_s24 = sadd.s32 %s1062_s19, %s1061_s21  ;;  %s931_s25 = sshll.u32 %s204_s23, 2 }
  0x13   : > { %s928_s26 = sshll.u32 %s195_s24, 2  ;;  %s1229_s29 = scalar_lea.vmem %s1369_s3, %s931_s25 }
  0x14   : > { %s1234_s5 = scalar_lea.vmem %s1366_s0, %s928_s26 }
  0x15 LB: >> { %v933_v0 = vld [vmem:[%s1367_s1 + $0x2] sm:$0x3]  ;;  %vm248_vm0 = vcmask 1040384   ;;  %vm249_vm1 = vcmask 1041408   ;;  %v1173_v1 = vmov 0.0   ;;  %v1174_v2 = vmov 65535   ;;  %s1171_s6 = sphi %s1236_s6, %s213_s6  }
  0x16   : >> { %1007 = vmatprep.subr.bf16.mxu0 %v1173_v1  ;;  %v250_v3 = vsel %vm248_vm0, 4294967295, %v1174_v2  ;;  %1013 = vmatprep.subr.bf16.mxu1 %v1173_v1  ;;  %v219_v4 = vld [vmem:[%s1367_s1] sm:$0x3]  ;;  %vm1175_vm2 = vmmov 0   ;;  %s980_s11 = smul.u32 12, %s1171_s6  ;;  %vm244_vm3 = vcmask 23552  }
  0x17   : >> { %v1249_v5 = vsel %vm249_vm1, %v250_v3, 0  ;;  %1009 = vmatprep.mubr.msk.bf16.mxu0 %vm1175_vm2, %v1173_v1  ;;  %1015 = vmatprep.mubr.msk.bf16.mxu1 %vm1175_vm2, %v1173_v1  ;;  %v943_v8 = vld [vmem:[%s1367_s1 + $0x6] sm:$0x3]  ;;  %v938_v14 = vld [vmem:[%s1367_s1 + $0x4] sm:$0x3]  ;;  %vm348_vm5 = vcmask 1046528  }
  0x18   : >> { %v253_v6 = vand.u32 %v933_v0, %v1249_v5  ;;  %v299_v7 = vand.u32 %v1249_v5, %v219_v4  ;;  %s1262_s19 = scalar_lea.vmem %s1234_s5, %s980_s11  ;;  %v418_v11 = vand.u32 %v943_v8, %v1249_v5  ;;  %vm231_vm4 = vsmask.f32 7424  ;;  %v954_v23 = vld [vmem:[%s1367_s1 + $0xa] sm:$0x3]  ;;  %v949_v36 = vld [vmem:[%s1367_s1 + $0x8] sm:$0x3] }
  0x19   : >> { %v217_v9 = vld [vmem:[%s1262_s19] sm:$0xf]  ;;  %v218_v10 = vld [vmem:[%s1262_s19 + $0x4] sm:$0xf]  ;;  %v946_v19 = vld [vmem:[%s1262_s19 + $0xc] sm:$0xf]  ;;  %v356_v26 = vand.u32 %v938_v14, %v1249_v5  ;;  %v550_v33 = vand.u32 %v954_v23, %v1249_v5  ;;  %v492_v46 = vand.u32 %v949_v36, %v1249_v5 }
  0x1a   : >> { %1008 = vmatpush3.bf16.msra.mxu0 %v253_v6  ;;  %1014 = vmatpush3.bf16.msra.mxu1 %v299_v7  ;;  %v934_v12 = vcombine.low %v217_v9, %v218_v10  ;;  %v1115_v13 = vld [vmem:[%s1262_s19 + $0x8] ss:$0 sps:$4 sm:$0x11]   ;;  %v342_v18 = vld [vmem:[%s1262_s19] sm:$0xe]  ;;  %v1117_v31 = vld [vmem:[%s1262_s19 + $0xc] sm:$0xff]  }
  0x1b   : >> { %1019 = vmatprep.subr.bf16.mxu0 %v1173_v1  ;;  %1025 = vmatprep.subr.bf16.mxu1 %v1173_v1  ;;  %v240_v17 = vshll.u32 %v1115_v13, 16  ;;  %v947_v20 = vld [vmem:[%s1262_s19 + $0x10] sm:$0xf]  ;;  %v953_v24 = vld [vmem:[%s1262_s19 + $0xc] sm:$0xe]  ;;  %v939_v27 = vcombine.low %v342_v18, %v218_v10  ;;  %v350_v38 = vrot.slane %v1115_v13, 1 }
  0x1c   : >> { %v233_v15 = vshrl.u32 %v934_v12, 16  ;;  %v235_v16 = vshll.u32 %v934_v12, 16  ;;  %v950_v28 = vcombine.low %v946_v19, %v947_v20  ;;  %v962_v29 = vld [vmem:[%s1262_s19 + $0x18] sm:$0xf]  ;;  %v1287_v30 = vld [vmem:[%s1262_s19 + $0x1c] sm:$0xf]  ;;  %v955_v34 = vcombine.low %v953_v24, %v947_v20 }
  0x1d   : >> { %1016 = vmatmul.mubr.msk.bf16.vlgmr.msra.gmra.mxu1 %vm244_vm3, %v934_v12  ;;  %v242_v22 = vrot.slane %v240_v17, 1  ;;  %v966_v35 = vcombine.low %v962_v29, %v1287_v30  ;;  %v349_v37 = vrot.slane %v939_v27, 1  ;;  %v1119_v39 = vld [vmem:[%s1262_s19 + $0x14] ss:$0 sps:$4 sm:$0x11]   ;;  %v1121_v3 = vld [vmem:[%s1262_s19 + $0x18] sm:$0xff]  }
  0x1e   : >> { %1026 = vmatpush3.bf16.msra.mxu1 %v418_v11  ;;  %1027 = vmatprep.mubr.msk.bf16.mxu1 %vm1175_vm2, %v1173_v1  ;;  %v237_v21 = vrot.slane %v235_v16, 1  ;;  %v479_v40 = vshll.u32 %v950_v28, 16  ;;  %v965_v41 = vld [vmem:[%s1367_s1 + $0xe] sm:$0x3]  ;;  %v543_v42 = vrot.slane %v955_v34, 1  ;;  %v544_v43 = vrot.slane %v1119_v39, 1 }
  0x1f   : >> { %1037 = vmatprep.subr.bf16.mxu1 %v1173_v1  ;;  %v1123_v44 = vld [vmem:[%s1262_s19 + $0x20] ss:$0 sps:$4 sm:$0x11]   ;;  %v673_v45 = vshll.u32 %v966_v35, 16  ;;  %v351_v47 = vsel %vm348_vm5, %v349_v37, %v350_v38  ;;  %v477_v48 = vshrl.u32 %v950_v28, 16  ;;  %v484_v50 = vshll.u32 %v1119_v39, 16 }
  0x20   : >> { %v238_v25 = vor.u32 %v237_v21, %v233_v15  ;;  %v481_v49 = vrot.slane %v479_v40, 1  ;;  %v686_v51 = vand.u32 %v965_v41, %v1249_v5  ;;  %v545_v52 = vsel %vm348_vm5, %v543_v42, %v544_v43  ;;  %v959_v58 = vld [vmem:[%s1367_s1 + $0xc] sm:$0x3]  ;;  %v970_v0 = vld [vmem:[%s1367_s1 + $0x10] sm:$0x3]  ;;  %s983_s10 = sshll.u32 %s1171_s6, 3 }
  0x21   : >> { %v671_v53 = vshrl.u32 %v966_v35, 16  ;;  %v675_v54 = vrot.slane %v673_v45, 1  ;;  %v678_v55 = vshll.u32 %v1123_v44, 16  ;;  %v486_v57 = vrot.slane %v484_v50, 1  ;;  %v969_v2 = vld [vmem:[%s1262_s19 + $0x18] sm:$0xe]  ;;  %s810_s11 = scalar_lea.vmem %s1229_s29, %s983_s10 }
  0x22   : >> { %v243_v32 = vsel %vm231_vm4, %v238_v25, %v242_v22  ;;  %v482_v56 = vor.u32 %v481_v49, %v477_v48  ;;  %v612_v62 = vand.u32 %v959_v58, %v1249_v5  ;;  %v744_v4 = vand.u32 %v970_v0, %v1249_v5  ;;  %s213_s6 = sadd.s32 1, %s1171_s6  }
  0x23   : >> { %1010 = vmatmul.mubr.msk.bf16.vlgmr.msra.gmra.mxu0 %vm244_vm3, %v243_v32  ;;  %v676_v59 = vor.u32 %v675_v54, %v671_v53  ;;  %v680_v60 = vrot.slane %v678_v55, 1  ;;  %v971_v6 = vcombine.low %v969_v2, %v1287_v30  ;;  %v738_v8 = vrot.slane %v1123_v44, 1  ;;  %v973_v55 = vld [vmem:[%s1368_s2] ss:$0 sm:$0xff]  ;;  %p210_p7 = scmp.ge.s32.totalorder %s213_s6, 8  }
  0x24   : >> { %1020 = vmatpush3.bf16.msra.mxu0 %v356_v26  ;;  %1021 = vmatprep.mubr.msk.bf16.mxu0 %vm1175_vm2, %v1173_v1  ;;  %v487_v61 = vsel %vm231_vm4, %v482_v56, %v486_v57 }
  0x25   : >> { %1031 = vmatprep.subr.bf16.mxu0 %v1173_v1  ;;  %1028 = vmatmul.mubr.msk.bf16.vlgmr.msra.gmra.mxu1 %vm244_vm3, %v1117_v31  ;;  %v681_v63 = vsel %vm231_vm4, %v676_v59, %v680_v60  ;;  %v737_v7 = vrot.slane %v971_v6, 1 }
  0x26   : >> { %1038 = vmatpush3.bf16.msra.mxu1 %v550_v33  ;;  %1039 = vmatprep.mubr.msk.bf16.mxu1 %vm1175_vm2, %v1173_v1 }
  0x27   : >> { %1049 = vmatprep.subr.bf16.mxu1 %v1173_v1  ;;  %v739_v9 = vsel %vm348_vm5, %v737_v7, %v738_v8 }
  0x2b   : >> { %1022 = vmatmul.mubr.msk.bf16.vlgmr.msra.gmra.mxu0 %vm244_vm3, %v351_v47 }
  0x2c   : >> { %1032 = vmatpush3.bf16.msra.mxu0 %v492_v46  ;;  %1033 = vmatprep.mubr.msk.bf16.mxu0 %vm1175_vm2, %v1173_v1 }
  0x2d   : >> { %1043 = vmatprep.subr.bf16.mxu0 %v1173_v1  ;;  %1040 = vmatmul.mubr.msk.bf16.vlgmr.msra.gmra.mxu1 %vm244_vm3, %v545_v52 }
  0x2e   : >> { %1050 = vmatpush3.bf16.msra.mxu1 %v686_v51  ;;  %1051 = vmatprep.mubr.msk.bf16.mxu1 %vm1175_vm2, %v1173_v1 }
  0x33   : >> { %1034 = vmatmul.mubr.msk.bf16.vlgmr.msra.gmra.mxu0 %vm244_vm3, %v487_v61 }
  0x34   : >> { %1044 = vmatpush3.bf16.msra.mxu0 %v612_v62  ;;  %1045 = vmatprep.mubr.msk.bf16.mxu0 %vm1175_vm2, %v1173_v1 }
  0x35   : >> { %1055 = vmatprep.subr.bf16.mxu0 %v1173_v1  ;;  %1052 = vmatmul.mubr.msk.bf16.vlgmr.msra.gmra.mxu1 %vm244_vm3, %v681_v63 }
  0x3b   : >> { %1046 = vmatmul.mubr.msk.bf16.vlgmr.msra.gmra.mxu0 %vm244_vm3, %v1121_v3 }
  0x3c   : >> { %1056 = vmatpush3.bf16.msra.mxu0 %v744_v4  ;;  %1057 = vmatprep.mubr.msk.bf16.mxu0 %vm1175_vm2, %v1173_v1 }
  0x43   : >> { %1058 = vmatmul.mubr.msk.bf16.vlgmr.msra.gmra.mxu0 %vm244_vm3, %v739_v9 }
  0xdd   : >> { %v335_v10 = vpop.f32.mrf.mxu1 }
  0xdf   : >> { %v1017_v11 = vpop.f32.mrf.mxu1 }
  0xe1   : >> { %v338_v12 = vpop.f32.mrf.mxu1 }
  0xe3   : >> { %v1018_v13 = vpop.f32.mrf.mxu1  ;;  %v289_v14 = vpop.f32.mrf.mxu0 }
  0xe4   : >> { %v336_v25 = vadd.f32 %v335_v10, %v289_v14 }
  0xe5   : >> { %v1011_v5 = vpop.f32.mrf.mxu0  ;;  %v454_v15 = vpop.f32.mrf.mxu1 }
  0xe7   : >> { %v292_v16 = vpop.f32.mrf.mxu0  ;;  %v1029_v17 = vpop.f32.mrf.mxu1 }
  0xe8   : >> { %v339_v31 = vadd.f32 %v338_v12, %v292_v16 }
  0xe9   : >> { %v1012_v18 = vpop.f32.mrf.mxu0  ;;  %v457_v19 = vpop.f32.mrf.mxu1 }
  0xeb   : >> { %v392_v20 = vpop.f32.mrf.mxu0  ;;  %v1030_v21 = vpop.f32.mrf.mxu1 }
  0xec   : >> { %v399_v28 = vadd.f32 %v392_v20, %v336_v25 }
  0xed   : >> { %v1023_v1 = vpop.f32.mrf.mxu0  ;;  %v586_v22 = vpop.f32.mrf.mxu1 }
  0xee   : >> { %v461_v34 = vadd.f32 %v454_v15, %v399_v28 }
  0xef   : >> { %v395_v23 = vpop.f32.mrf.mxu0  ;;  %v1041_v24 = vpop.f32.mrf.mxu1 }
  0xf0   : >> { %v400_v35 = vadd.f32 %v395_v23, %v339_v31 }
  0xf1   : >> { %v1024_v26 = vpop.f32.mrf.mxu0  ;;  %v589_v27 = vpop.f32.mrf.mxu1 }
  0xf2   : >> { %v462_v41 = vadd.f32 %v457_v19, %v400_v35 }
  0xf3   : >> { %v528_v29 = vpop.f32.mrf.mxu0  ;;  %v1042_v30 = vpop.f32.mrf.mxu1 }
  0xf4   : >> { %v535_v38 = vadd.f32 %v528_v29, %v461_v34 }
  0xf5   : >> { %v1035_v32 = vpop.f32.mrf.mxu0  ;;  %v722_v33 = vpop.f32.mrf.mxu1 }
  0xf6   : >> { %v593_v44 = vadd.f32 %v586_v22, %v535_v38 }
  0xf7   : >> { %v531_v36 = vpop.f32.mrf.mxu0  ;;  %v1053_v37 = vpop.f32.mrf.mxu1 }
  0xf8   : >> { %v536_v45 = vadd.f32 %v531_v36, %v462_v41 }
  0xf9   : >> { %v1036_v39 = vpop.f32.mrf.mxu0  ;;  %v725_v40 = vpop.f32.mrf.mxu1 }
  0xfa   : >> { %v594_v49 = vadd.f32 %v589_v27, %v536_v45 }
  0xfb   : >> { %v648_v42 = vpop.f32.mrf.mxu0  ;;  %v1054_v43 = vpop.f32.mrf.mxu1 }
  0xfc   : >> { %v655_v47 = vadd.f32 %v648_v42, %v593_v44 }
  0xfd   : >> { %v1047_v46 = vpop.f32.mrf.mxu0 }
  0xfe   : >> { %v729_v51 = vadd.f32 %v722_v33, %v655_v47 }
  0xff   : >> { %v651_v48 = vpop.f32.mrf.mxu0 }
 0x100   : >> { %v656_v52 = vadd.f32 %v651_v48, %v594_v49 }
 0x101   : >> { %v1048_v50 = vpop.f32.mrf.mxu0 }
 0x102   : >> { %v730_v57 = vadd.f32 %v725_v40, %v656_v52 }
 0x103   : >> { %v780_v53 = vpop.f32.mrf.mxu0 }
 0x104   : >> { %v787_v54 = vadd.f32 %v780_v53, %v729_v51 }
 0x105   : >> { %v1059_v56 = vpop.f32.mrf.mxu0 }
 0x106   : >> { %v796_v59 = vadd.f32 %v973_v55, %v787_v54 }
 0x107   : >> { %v783_v58 = vpop.f32.mrf.mxu0 }
 0x108   : >> { %v788_v60 = vadd.f32 %v783_v58, %v730_v57  ;;  %v798_v63 = vmax.f32 %v796_v59, 0.0 }
 0x109   : >> { %v1060_v61 = vpop.f32.mrf.mxu0 }
 0x10a   : >> { %v797_v62 = vadd.f32 %v973_v55, %v788_v60 }
 0x10c   : >> { %v799_v0 = vmax.f32 %v797_v62, 0.0  ;;  %212 = sbr.rel (!%p210_p7) target bundleno = 21 (0x15), region = 81 }
 0x10e   : >> { %v987_v2 = vpack.c.bf16 %v799_v0, %v798_v63 }
 0x110   : >> { %988 = vst [vmem:[%s810_s11] sm:$0xff] %v987_v2  }
 0x111 PF: > { %s13_s16 = sadd.s32 1, %s1167_s16   ;;  %s1370_s12 = smov %s1159_s14 }
 0x112   : > { %p10_p8 = scmp.ge.s32.totalorder %s13_s16, 10   ;;  %s1371_s13 = smov %s1163_s15 }
 0x113   : > { %s1372_s14 = smov %s1375_s17  ;;  %s1373_s15 = smov %s1379_s18 }
 0x114   :  { %12 = sbr.rel (!%p10_p8) target bundleno = 3 (0x3), region = 92 }

// kernel: _lambda_.11
= control target key start
LH: loop header
LB: loop body
LE: loop exit
PB: predicated region body
PF: predicated region fallthrough
CT: control target
= control target key end

     0   :  { %s420_s6 = smov 0   ;;  %s422_s7 = smov 0   ;;  %s457_s0 = inlined_call_operand.vmem [shape: bf16[4,8,2,8,256], index: 0, kind: input, shape index: {}]   ;;  %s458_s1 = inlined_call_operand.vmem [shape: bf16[4,8,8,128], index: 1, kind: output, shape index: {}]  }
   0x1   :  { %s424_s8 = smov 0  }
   0x2 LB: > { %s23_s9 = sadd.s32 1, %s404_s7  ;;  %p318_p0 = scmp.ge.s32.totalorder %s408_s8, 1  ;;  %s408_s8 = sphi %s424_s8, %s11_s8   ;;  %s404_s7 = sphi %s422_s7, %s460_s7   ;;  %s400_s6 = sphi %s420_s6, %s459_s6  }
   0x3   : > { %p25_p1 = scmp.ge.s32.totalorder %s23_s9, 4  ;;  %p109_p2 = scmp.lt.s32.totalorder %s408_s8, 5 }
   0x5   : > { %s462_s9 = smov (%p25_p1, %s23_s9), 0  ;;  %p110_p3 = pnand %p318_p0, %p109_p2 }
   0x6   : > { %p139_p4 = scmp.lt.s32.totalorder (!%p110_p3), %s400_s6, 3 }
   0x7   : > { %113 = sbr.rel (%p110_p3) target bundleno = 30 (0x1e), region = 24 }
   0xc   : > { %s464_s6 = smov (!%p139_p4, %s400_s6), 3 }
   0xd   : > { %s333_s10 = sshll.u32 %s464_s6, 7  ;;  %s334_s14 = sshll.u32 %s464_s6, 5 }
   0xe   : > { %s147_s13 = scalar_lea.vmem %s457_s0, %s333_s10  ;;  %s157_s17 = scalar_lea.vmem %s458_s1, %s334_s14 }
   0xf   : > { %v159_v0 = vld [vmem:[%s147_s13] sm:$0xff]  ;;  %v160_v1 = vld [vmem:[%s147_s13 + $0x10] sm:$0xff]  ;;  %v323_v2 = vld [vmem:[%s147_s13 + $0x8] sm:$0xff] }
  0x10   : > { %v324_v3 = vld [vmem:[%s147_s13 + $0x18] sm:$0xff]  ;;  %v176_v4 = vmax.bf16 %v323_v2, %v159_v0  ;;  %v161_v5 = vld [vmem:[%s147_s13 + $0x20] sm:$0xff]  ;;  %v162_v6 = vld [vmem:[%s147_s13 + $0x30] sm:$0xff] }
  0x11   : > { %v177_v7 = vmax.bf16 %v324_v3, %v160_v1  ;;  %v325_v8 = vld [vmem:[%s147_s13 + $0x28] sm:$0xff]  ;;  %v326_v9 = vld [vmem:[%s147_s13 + $0x38] sm:$0xff]  ;;  %v163_v10 = vld [vmem:[%s147_s13 + $0x40] sm:$0xff] }
  0x12   : > { %v192_v11 = vrot.slane %v176_v4, 4  ;;  %v178_v12 = vmax.bf16 %v325_v8, %v161_v5  ;;  %v179_v13 = vmax.bf16 %v326_v9, %v162_v6  ;;  %v164_v14 = vld [vmem:[%s147_s13 + $0x50] sm:$0xff]  ;;  %v327_v15 = vld [vmem:[%s147_s13 + $0x48] sm:$0xff]  ;;  %v328_v16 = vld [vmem:[%s147_s13 + $0x58] sm:$0xff] }
  0x13   : > { %v193_v17 = vrot.slane %v177_v7, 4  ;;  %v180_v18 = vmax.bf16 %v327_v15, %v163_v10  ;;  %v181_v19 = vmax.bf16 %v328_v16, %v164_v14  ;;  %v165_v20 = vld [vmem:[%s147_s13 + $0x60] sm:$0xff]  ;;  %v166_v21 = vld [vmem:[%s147_s13 + $0x70] sm:$0xff]  ;;  %v329_v22 = vld [vmem:[%s147_s13 + $0x68] sm:$0xff] }
  0x14   : > { %v208_v23 = vmax.bf16 %v192_v11, %v176_v4  ;;  %v194_v24 = vrot.slane %v178_v12, 4  ;;  %v195_v25 = vrot.slane %v179_v13, 4  ;;  %v330_v26 = vld [vmem:[%s147_s13 + $0x78] sm:$0xff]  ;;  %v182_v27 = vmax.bf16 %v329_v22, %v165_v20 }
  0x15   : > { %v209_v28 = vmax.bf16 %v193_v17, %v177_v7  ;;  %v196_v29 = vrot.slane %v180_v18, 4  ;;  %v197_v30 = vrot.slane %v181_v19, 4  ;;  %v183_v31 = vmax.bf16 %v330_v26, %v166_v21 }
  0x16   : > { %v210_v32 = vmax.bf16 %v194_v24, %v178_v12  ;;  %v211_v33 = vmax.bf16 %v195_v25, %v179_v13  ;;  %v198_v34 = vrot.slane %v182_v27, 4 }
  0x17   : > { %v355_v35 = vcombine.low %v208_v23, %v209_v28  ;;  %v212_v36 = vmax.bf16 %v196_v29, %v180_v18  ;;  %v213_v37 = vmax.bf16 %v197_v30, %v181_v19  ;;  %v199_v38 = vrot.slane %v183_v31, 4 }
  0x18   : > { %v356_v39 = vcombine.low %v210_v32, %v211_v33  ;;  %v214_v40 = vmax.bf16 %v198_v34, %v182_v27 }
  0x19   : > { %339 = vst [vmem:[%s157_s17] sm:$0xff] %v355_v35   ;;  %v358_v41 = vcombine.low %v212_v36, %v213_v37  ;;  %v215_v42 = vmax.bf16 %v199_v38, %v183_v31 }
  0x1a   : > { %357 = vst [vmem:[%s157_s17 + $0x8] sm:$0xff] %v356_v39  }
  0x1b   : > { %359 = vst [vmem:[%s157_s17 + $0x10] sm:$0xff] %v358_v41   ;;  %v360_v43 = vcombine.low %v214_v40, %v215_v42 }
  0x1d   : > { %361 = vst [vmem:[%s157_s17 + $0x18] sm:$0xff] %v360_v43  }
  0x1e PF: > { %s11_s8 = sadd.s32 1, %s408_s8   ;;  %s459_s6 = smov %s404_s7 }
  0x1f   : > { %p8_p5 = scmp.ge.s32.totalorder %s11_s8, 6   ;;  %s460_s7 = smov %s462_s9 }
  0x21   :  { %10 = sbr.rel (!%p8_p5) target bundleno = 2 (0x2), region = 55 }

// kernel: _lambda_.10
= control target key start
LH: loop header
LB: loop body
LE: loop exit
PB: predicated region body
PF: predicated region fallthrough
CT: control target
= control target key end

     0   :  { %s2156_s12 = smov 0   ;;  %s2158_s13 = smov 0   ;;  %s2579_s0 = inlined_call_operand.vmem [shape: bf16[4,2,10,18,128], index: 0, kind: input, shape index: {}]   ;;  %s2580_s1 = inlined_call_operand.vmem [shape: bf16[3,3,128,128], index: 1, kind: input, shape index: {}]   ;;  %s2581_s2 = inlined_call_operand.vmem [shape: f32[1,128], index: 2, kind: input, shape index: {}]   ;;  %s2582_s3 = inlined_call_operand.vmem [shape: bf16[4,2,8,16,128], index: 3, kind: output, shape index: {}]  }
   0x1   :  { %s2160_s14 = smov 0   ;;  %s2162_s15 = smov 0  }
   0x2   :  { %s2164_s16 = smov 0  }
   0x3 LB: > { %s22_s17 = sadd.s32 1, %s2120_s14  ;;  %s25_s18 = sadd.s32 1, %s2124_s15  ;;  %s2128_s16 = sphi %s2164_s16, %s13_s16   ;;  %s2124_s15 = sphi %s2162_s15, %s2586_s15   ;;  %s2120_s14 = sphi %s2160_s14, %s2585_s14   ;;  %s2116_s13 = sphi %s2158_s13, %s2584_s13   ;;  %s2112_s12 = sphi %s2156_s12, %s2583_s12  }
   0x4   : > { %p23_p0 = scmp.ge.s32.totalorder %s22_s17, 2  ;;  %p1445_p1 = scmp.ge.s32.totalorder %s2128_s16, 1 }
   0x5   : > { %p157_p2 = scmp.lt.s32.totalorder %s2128_s16, 9 }
   0x6   : > { %s2588_s17 = smov (%p23_p0, %s22_s17), 0  ;;  %s2590_s18 = smov (!%p23_p0, %s25_s18), %s2124_s15 }
   0x7   : > { %p158_p3 = pnand %p1445_p1, %p157_p2  ;;  %p27_p4 = scmp.ge.s32.totalorder %s2590_s18, 4 }
   0x8   : > { %p189_p5 = scmp.lt.s32.totalorder (!%p158_p3), %s2116_s13, 3  ;;  %p191_p6 = scmp.lt.s32.totalorder (!%p158_p3), %s2112_s12, 1 }
   0x9   : > { %s2592_s18 = smov (%p27_p4, %s2590_s18), 0  ;;  %161 = sbr.rel (%p158_p3) target bundleno = 388 (0x184), region = 32 }
   0xa   : > { %s2196_s6 = smov (!%p158_p3), 0  }
   0xe   : > { %s2594_s13 = smov (!%p189_p5, %s2116_s13), 3  ;;  %s2596_s12 = smov (!%p191_p6, %s2112_s12), 1 }
   0xf   : > { %s1952_s19 = smul.u32 60, %s2594_s13  ;;  %s1448_s20 = sshll.u32 %s2594_s13, 5 }
  0x10   : > { %s1951_s21 = smul.u32 30, %s2596_s12  ;;  %s1447_s22 = sshll.u32 %s2596_s12, 4 }
  0x11   : > { %s204_s23 = sadd.s32 %s1448_s20, %s1447_s22 }
  0x12   : > { %s195_s24 = sadd.s32 %s1952_s19, %s1951_s21  ;;  %s1449_s25 = sshll.u32 %s204_s23, 2 }
  0x13   : > { %s1446_s26 = sshll.u32 %s195_s24, 2  ;;  %s2189_s29 = scalar_lea.vmem %s2582_s3, %s1449_s25 }
  0x14   : > { %s2194_s5 = scalar_lea.vmem %s2579_s0, %s1446_s26 }
  0x15 LB: >> { %v2003_v0 = vld [vmem:[%s2580_s1 + $0x78] sm:$0xff]   ;;  %v2134_v1 = vmov 0.0   ;;  %v2005_v3 = vld [vmem:[%s2580_s1 + $0x70] sm:$0xff]   ;;  %vm2135_vm0 = vmmov 0   ;;  %v2007_v5 = vld [vmem:[%s2580_s1 + $0x68] sm:$0xff]   ;;  %s1681_s24 = smul.u32 12, %s2132_s6  ;;  %s2132_s6 = sphi %s2196_s6, %s213_s6  }
  0x16   : >> { %1771 = vmatprep.subr.bf16.mxu0 %v2134_v1  ;;  %1791 = vmatprep.subr.bf16.mxu1 %v2134_v1  ;;  %v2004_v2 = vld [vmem:[%s2580_s1 + $0x38] sm:$0xff]   ;;  %v2006_v4 = vld [vmem:[%s2580_s1 + $0x30] sm:$0xff]   ;;  %v2008_v6 = vld [vmem:[%s2580_s1 + $0x28] sm:$0xff]   ;;  %vm261_vm1 = vsmask.f32 7424  ;;  %vm475_vm2 = vcmask 1046528  }
  0x17   : >> { %1772 = vmatpush3.bf16.msra.mxu0 %v2003_v0  ;;  %1787 = vmatprep.mubr.msk.bf16.mxu0 %vm2135_vm0, %v2134_v1  ;;  %v2009_v7 = vld [vmem:[%s2580_s1 + $0x60] sm:$0xff]   ;;  %s2239_s30 = scalar_lea.vmem %s2194_s5, %s1681_s24  ;;  %v2011_v9 = vld [vmem:[%s2580_s1 + $0x58] sm:$0xff]   ;;  %v2013_v13 = vld [vmem:[%s2580_s1 + $0x50] sm:$0xff]   ;;  %s1684_s9 = sshll.u32 %s2132_s6, 3 }
  0x18   : >> { %1792 = vmatpush3.bf16.msra.mxu1 %v2004_v2  ;;  %1773 = vmatprep.subr.bf16.mxu0 %v2134_v1  ;;  %v2010_v8 = vld [vmem:[%s2580_s1 + $0x20] sm:$0xff]   ;;  %v2012_v10 = vld [vmem:[%s2580_s1 + $0x18] sm:$0xff]   ;;  %v2258_v15 = vld [vmem:[%s2239_s30 + $0x8] ss:$0 sps:$4 sm:$0x11]   ;;  %s1328_s10 = scalar_lea.vmem %s2189_s29, %s1684_s9  ;;  %s213_s6 = sadd.s32 1, %s2132_s6  }
  0x19   : >> { %1793 = vmatprep.subr.bf16.mxu1 %v2134_v1  ;;  %1807 = vmatprep.mubr.msk.bf16.mxu1 %vm2135_vm0, %v2134_v1  ;;  %v217_v11 = vld [vmem:[%s2239_s30] sm:$0xf]  ;;  %v2251_v12 = vld [vmem:[%s2239_s30 + $0x4] sm:$0xf]  ;;  %v2014_v16 = vld [vmem:[%s2580_s1 + $0x10] sm:$0xff]   ;;  %v270_v21 = vshll.u32 %v2258_v15, 16 }
  0x1a   : >> { %v1467_v14 = vcombine.low %v217_v11, %v2251_v12  ;;  %v2015_v18 = vld [vmem:[%s2580_s1 + $0x48] sm:$0xff]   ;;  %v2017_v23 = vld [vmem:[%s2580_s1 + $0x40] sm:$0xff]   ;;  %v2021_v28 = vld [vmem:[%s2580_s1 + $0xb8] sm:$0xff]   ;;  %v477_v51 = vrot.slane %v2258_v15, 1  ;;  %p210_p7 = scmp.ge.s32.totalorder %s213_s6, 8  }
  0x1b   : >> { %1774 = vmatpush3.bf16.msra.mxu0 %v2005_v3  ;;  %v2016_v22 = vld [vmem:[%s2580_s1 + $0x8] sm:$0xff]   ;;  %v2018_v24 = vld [vmem:[%s2580_s1] sm:$0xff]   ;;  %v272_v26 = vrot.slane %v270_v21, 1  ;;  %v2022_v29 = vld [vmem:[%s2580_s1 + $0xf8] sm:$0xff]  }
  0x1c   : >> { %1794 = vmatpush3.bf16.msra.mxu1 %v2006_v4  ;;  %1775 = vmatprep.subr.bf16.mxu0 %v2134_v1  ;;  %v265_v17 = vshll.u32 %v1467_v14, 16  ;;  %v263_v19 = vshrl.u32 %v1467_v14, 16  ;;  %v2023_v30 = vld [vmem:[%s2580_s1 + $0xb0] sm:$0xff]   ;;  %v2025_v32 = vld [vmem:[%s2580_s1 + $0xa8] sm:$0xff]   ;;  %v2027_v34 = vld [vmem:[%s2580_s1 + $0xa0] sm:$0xff]  }
  0x1d   : >> { %1795 = vmatprep.subr.bf16.mxu1 %v2134_v1  ;;  %v2024_v31 = vld [vmem:[%s2580_s1 + $0xf0] sm:$0xff]   ;;  %v2026_v33 = vld [vmem:[%s2580_s1 + $0xe8] sm:$0xff]   ;;  %v2028_v35 = vld [vmem:[%s2580_s1 + $0xe0] sm:$0xff]  }
  0x1e   : >> { %v267_v20 = vrot.slane %v265_v17, 1  ;;  %v2029_v36 = vld [vmem:[%s2580_s1 + $0x98] sm:$0xff]   ;;  %v2031_v38 = vld [vmem:[%s2580_s1 + $0x90] sm:$0xff]   ;;  %v454_v40 = vld [vmem:[%s2239_s30] sm:$0xe] }
  0x1f   : >> { %1776 = vmatpush3.bf16.msra.mxu0 %v2007_v5  ;;  %v2030_v37 = vld [vmem:[%s2580_s1 + $0xd8] sm:$0xff]   ;;  %v2032_v39 = vld [vmem:[%s2580_s1 + $0xd0] sm:$0xff]   ;;  %v1537_v41 = vld [vmem:[%s2239_s30 + $0xc] sm:$0xf]  ;;  %v1501_v46 = vcombine.low %v454_v40, %v2251_v12 }
  0x20   : >> { %1796 = vmatpush3.bf16.msra.mxu1 %v2008_v6  ;;  %1777 = vmatprep.subr.bf16.mxu0 %v2134_v1  ;;  %v268_v25 = vor.u32 %v267_v20, %v263_v19  ;;  %v2338_v42 = vld [vmem:[%s2239_s30 + $0x10] sm:$0xf]  ;;  %v2342_v44 = vld [vmem:[%s2239_s30 + $0x14] ss:$0 sps:$4 sm:$0x11]   ;;  %v2033_v45 = vld [vmem:[%s2580_s1 + $0x88] sm:$0xff]  }
  0x21   : >> { %1797 = vmatprep.subr.bf16.mxu1 %v2134_v1  ;;  %v1556_v43 = vcombine.low %v1537_v41, %v2338_v42  ;;  %v2034_v47 = vld [vmem:[%s2580_s1 + $0xc8] sm:$0xff]   ;;  %v727_v50 = vshll.u32 %v2342_v44, 16  ;;  %v2035_v54 = vld [vmem:[%s2580_s1 + $0x80] sm:$0xff]   ;;  %v476_v55 = vrot.slane %v1501_v46, 1  ;;  %v2038_v58 = vld [vmem:[%s2580_s1 + $0x138] sm:$0xff]  }
  0x22   : >> { %v273_v27 = vsel %vm261_vm1, %v268_v25, %v272_v26  ;;  %v2036_v56 = vld [vmem:[%s2580_s1 + $0xc0] sm:$0xff]   ;;  %v2039_v61 = vld [vmem:[%s2239_s30 + $0xc] sm:$0xff]   ;;  %v2040_v62 = vld [vmem:[%s2580_s1 + $0x178] sm:$0xff]  }
  0x23   : >> { %1778 = vmatpush3.bf16.msra.mxu0 %v2009_v7  ;;  %v720_v48 = vshrl.u32 %v1556_v43, 16  ;;  %v722_v49 = vshll.u32 %v1556_v43, 16  ;;  %v729_v53 = vrot.slane %v727_v50, 1  ;;  %v478_v60 = vsel %vm475_vm2, %v476_v55, %v477_v51  ;;  %v2041_v63 = vld [vmem:[%s2580_s1 + $0x130] sm:$0xff]   ;;  %v2043_v2 = vld [vmem:[%s2580_s1 + $0x128] sm:$0xff]   ;;  %v2045_v6 = vld [vmem:[%s2580_s1 + $0x120] sm:$0xff]  }
  0x24   : >> { %1798 = vmatpush3.bf16.msra.mxu1 %v2010_v8  ;;  %1779 = vmatprep.subr.bf16.mxu0 %v2134_v1  ;;  %v2042_v0 = vld [vmem:[%s2580_s1 + $0x170] sm:$0xff]   ;;  %v2044_v3 = vld [vmem:[%s2580_s1 + $0x168] sm:$0xff]   ;;  %v1619_v4 = vld [vmem:[%s2239_s30 + $0x18] sm:$0xf] }
  0x25   : >> { %1799 = vmatprep.subr.bf16.mxu1 %v2134_v1  ;;  %v724_v52 = vrot.slane %v722_v49, 1  ;;  %v1620_v5 = vld [vmem:[%s2239_s30 + $0x1c] sm:$0xf]  ;;  %v2077_v8 = vld [vmem:[%s2239_s30 + $0x20] ss:$0 sps:$4 sm:$0x11]  }
  0x26   : >> { %v1638_v7 = vcombine.low %v1619_v4, %v1620_v5  ;;  %v1095_v12 = vshll.u32 %v2077_v8, 16  ;;  %v1213_v21 = vrot.slane %v2077_v8, 1  ;;  %v1566_v25 = vld [vmem:[%s2239_s30 + $0xc] sm:$0xe]  ;;  %v2064_v41 = vld [vmem:[%s2580_s1 + $0x1a0] sm:$0xff]   ;;  %v2066_v43 = vld [vmem:[%s2580_s1 + $0x198] sm:$0xff]  }
  0x27   : >> { %1780 = vmatpush3.bf16.msra.mxu0 %v2011_v9  ;;  %v725_v57 = vor.u32 %v724_v52, %v720_v48  ;;  %v2046_v9 = vld [vmem:[%s2580_s1 + $0x160] sm:$0xff]   ;;  %v2063_v40 = vld [vmem:[%s2580_s1 + $0x1e8] sm:$0xff]   ;;  %v2069_v46 = vld [vmem:[%s2580_s1 + $0x1d0] sm:$0xff]  }
  0x28   : >> { %1800 = vmatpush3.bf16.msra.mxu1 %v2012_v10  ;;  %1781 = vmatprep.subr.bf16.mxu0 %v2134_v1  ;;  %v1088_v10 = vshrl.u32 %v1638_v7, 16  ;;  %v1090_v11 = vshll.u32 %v1638_v7, 16  ;;  %v1097_v15 = vrot.slane %v1095_v12, 1  ;;  %v2071_v48 = vld [vmem:[%s2580_s1 + $0x1c8] sm:$0xff]   ;;  %v2072_v49 = vld [vmem:[%s2580_s1 + $0x180] sm:$0xff]   ;;  %v2074_v51 = vld [vmem:[%s2239_s30 + $0x18] sm:$0xff]  }
  0x29   : >> { %1801 = vmatprep.subr.bf16.mxu1 %v2134_v1  ;;  %v2367_v59 = vsel %vm261_vm1, %v725_v57, %v729_v53  ;;  %v2073_v50 = vld [vmem:[%s2580_s1 + $0x1c0] sm:$0xff]   ;;  %v2075_v52 = vld [vmem:[%s2580_s1 + $0x238] sm:$0xff]   ;;  %v2078_v53 = vld [vmem:[%s2580_s1 + $0x230] sm:$0xff]  }
  0x2a   : >> { %v2080_v55 = vld [vmem:[%s2580_s1 + $0x220] sm:$0xff]   ;;  %v2082_v57 = vld [vmem:[%s2580_s1 + $0x210] sm:$0xff]  }
  0x2b   : >> { %1782 = vmatpush3.bf16.msra.mxu0 %v2013_v13  ;;  %v2047_v13 = vld [vmem:[%s2580_s1 + $0x118] sm:$0xff]  }
  0x2c   : >> { %1802 = vmatpush3.bf16.msra.mxu1 %v2014_v16  ;;  %1783 = vmatprep.subr.bf16.mxu0 %v2134_v1  ;;  %v2048_v16 = vld [vmem:[%s2580_s1 + $0x158] sm:$0xff]  }
  0x2d   : >> { %1803 = vmatprep.subr.bf16.mxu1 %v2134_v1 }
  0x2f   : >> { %1784 = vmatpush3.bf16.msra.mxu0 %v2015_v18  ;;  %v1648_v18 = vld [vmem:[%s2239_s30 + $0x18] sm:$0xe] }
  0x30   : >> { %1804 = vmatpush3.bf16.msra.mxu1 %v2016_v22  ;;  %1785 = vmatprep.subr.bf16.mxu0 %v2134_v1  ;;  %v1665_v20 = vcombine.low %v1648_v18, %v1620_v5  ;;  %v2049_v22 = vld [vmem:[%s2580_s1 + $0x110] sm:$0xff]  }
  0x31   : >> { %1805 = vmatprep.subr.bf16.mxu1 %v2134_v1 }
  0x33   : >> { %1786 = vmatpush3.bf16.msra.mxu0 %v2017_v23  ;;  %v2050_v23 = vld [vmem:[%s2580_s1 + $0x150] sm:$0xff]  }
  0x34   : >> { %1806 = vmatpush3.bf16.msra.mxu1 %v2018_v24  ;;  %1811 = vmatprep.subr.bf16.mxu0 %v2134_v1  ;;  %v1212_v24 = vrot.slane %v1665_v20, 1 }
  0x35   : >> { %1831 = vmatprep.subr.bf16.mxu1 %v2134_v1 }
  0x36   : >> { %1788 = vmatmul.mubr.bf16.vlgmr.msra.gmra.mxu0 %v273_v27  ;;  %v2429_v26 = vsel %vm475_vm2, %v1212_v24, %v1213_v21  ;;  %v2051_v27 = vld [vmem:[%s2580_s1 + $0x108] sm:$0xff]  }
  0x37   : >> { %1808 = vmatmul.mubr.bf16.vlgmr.msra.gmra.mxu1 %v1467_v14  ;;  %1812 = vmatpush3.bf16.msra.mxu0 %v2021_v28  ;;  %v1092_v14 = vrot.slane %v1090_v11, 1  ;;  %v2052_v28 = vld [vmem:[%s2580_s1 + $0x148] sm:$0xff]  }
  0x38   : >> { %1832 = vmatpush3.bf16.msra.mxu1 %v2022_v29  ;;  %1813 = vmatprep.subr.bf16.mxu0 %v2134_v1  ;;  %v1583_v29 = vcombine.low %v1566_v25, %v2338_v42  ;;  %v2065_v42 = vld [vmem:[%s2580_s1 + $0x1e0] sm:$0xff]  }
  0x39   : >> { %1833 = vmatprep.subr.bf16.mxu1 %v2134_v1  ;;  %1827 = vmatprep.mubr.msk.bf16.mxu0 %vm2135_vm0, %v2134_v1  ;;  %v1093_v17 = vor.u32 %v1092_v14, %v1088_v10 }
  0x3a   : >> { %1847 = vmatprep.mubr.msk.bf16.mxu1 %vm2135_vm0, %v2134_v1 }
  0x3b   : >> { %1814 = vmatpush3.bf16.msra.mxu0 %v2023_v30  ;;  %v2417_v19 = vsel %vm261_vm1, %v1093_v17, %v1097_v15  ;;  %v2053_v30 = vld [vmem:[%s2580_s1 + $0x100] sm:$0xff]  }
  0x3c   : >> { %1834 = vmatpush3.bf16.msra.mxu1 %v2024_v31  ;;  %1815 = vmatprep.subr.bf16.mxu0 %v2134_v1  ;;  %v2054_v31 = vld [vmem:[%s2580_s1 + $0x140] sm:$0xff]  }
  0x3d   : >> { %1835 = vmatprep.subr.bf16.mxu1 %v2134_v1 }
  0x3f   : >> { %1816 = vmatpush3.bf16.msra.mxu0 %v2025_v32  ;;  %v844_v32 = vrot.slane %v1583_v29, 1 }
  0x40   : >> { %1836 = vmatpush3.bf16.msra.mxu1 %v2026_v33  ;;  %1817 = vmatprep.subr.bf16.mxu0 %v2134_v1  ;;  %v845_v33 = vrot.slane %v2342_v44, 1  ;;  %v2067_v44 = vld [vmem:[%s2580_s1 + $0x1d8] sm:$0xff]  }
  0x41   : >> { %1837 = vmatprep.subr.bf16.mxu1 %v2134_v1 }
  0x43   : >> { %1818 = vmatpush3.bf16.msra.mxu0 %v2027_v34  ;;  %v2057_v34 = vld [vmem:[%s2580_s1 + $0x1b8] sm:$0xff]  }
  0x44   : >> { %1838 = vmatpush3.bf16.msra.mxu1 %v2028_v35  ;;  %1819 = vmatprep.subr.bf16.mxu0 %v2134_v1  ;;  %v846_v35 = vsel %vm475_vm2, %v844_v32, %v845_v33 }
  0x45   : >> { %1839 = vmatprep.subr.bf16.mxu1 %v2134_v1 }
  0x47   : >> { %1820 = vmatpush3.bf16.msra.mxu0 %v2029_v36  ;;  %v2059_v36 = vld [vmem:[%s2580_s1 + $0x1f8] sm:$0xff]  }
  0x48   : >> { %1840 = vmatpush3.bf16.msra.mxu1 %v2030_v37  ;;  %1821 = vmatprep.subr.bf16.mxu0 %v2134_v1  ;;  %v2060_v37 = vld [vmem:[%s2580_s1 + $0x1b0] sm:$0xff]  }
  0x49   : >> { %1841 = vmatprep.subr.bf16.mxu1 %v2134_v1 }
  0x4b   : >> { %1822 = vmatpush3.bf16.msra.mxu0 %v2031_v38  ;;  %v2061_v38 = vld [vmem:[%s2580_s1 + $0x1f0] sm:$0xff]  }
  0x4c   : >> { %1842 = vmatpush3.bf16.msra.mxu1 %v2032_v39  ;;  %1823 = vmatprep.subr.bf16.mxu0 %v2134_v1  ;;  %v2062_v39 = vld [vmem:[%s2580_s1 + $0x1a8] sm:$0xff]  }
  0x4d   : >> { %1843 = vmatprep.subr.bf16.mxu1 %v2134_v1 }
  0x4f   : >> { %1824 = vmatpush3.bf16.msra.mxu0 %v2033_v45  ;;  %v2068_v45 = vld [vmem:[%s2580_s1 + $0x190] sm:$0xff]  }
  0x50   : >> { %1844 = vmatpush3.bf16.msra.mxu1 %v2034_v47  ;;  %1825 = vmatprep.subr.bf16.mxu0 %v2134_v1  ;;  %v2070_v47 = vld [vmem:[%s2580_s1 + $0x188] sm:$0xff]  }
  0x51   : >> { %1845 = vmatprep.subr.bf16.mxu1 %v2134_v1 }
  0x53   : >> { %1826 = vmatpush3.bf16.msra.mxu0 %v2035_v54  ;;  %v2079_v54 = vld [vmem:[%s2580_s1 + $0x228] sm:$0xff]  }
  0x54   : >> { %1846 = vmatpush3.bf16.msra.mxu1 %v2036_v56  ;;  %1851 = vmatprep.subr.bf16.mxu0 %v2134_v1  ;;  %v2081_v56 = vld [vmem:[%s2580_s1 + $0x218] sm:$0xff]  }
  0x55   : >> { %1871 = vmatprep.subr.bf16.mxu1 %v2134_v1 }
  0x56   : >> { %1828 = vmatmul.mubr.bf16.vlgmr.msra.gmra.mxu0 %v478_v60 }
  0x57   : >> { %1852 = vmatpush3.bf16.msra.mxu0 %v2038_v58  ;;  %1848 = vmatmul.mubr.bf16.vlgmr.msra.gmra.mxu1 %v2039_v61  ;;  %v2083_v58 = vld [vmem:[%s2580_s1 + $0x208] sm:$0xff]  }
  0x58   : >> { %1872 = vmatpush3.bf16.msra.mxu1 %v2040_v62  ;;  %1853 = vmatprep.subr.bf16.mxu0 %v2134_v1 }
  0x59   : >> { %1873 = vmatprep.subr.bf16.mxu1 %v2134_v1  ;;  %1867 = vmatprep.mubr.msk.bf16.mxu0 %vm2135_vm0, %v2134_v1 }
  0x5a   : >> { %1887 = vmatprep.mubr.msk.bf16.mxu1 %vm2135_vm0, %v2134_v1 }
  0x5b   : >> { %1854 = vmatpush3.bf16.msra.mxu0 %v2041_v63 }
  0x5c   : >> { %1874 = vmatpush3.bf16.msra.mxu1 %v2042_v0  ;;  %1855 = vmatprep.subr.bf16.mxu0 %v2134_v1 }
  0x5d   : >> { %1875 = vmatprep.subr.bf16.mxu1 %v2134_v1 }
  0x5f   : >> { %1856 = vmatpush3.bf16.msra.mxu0 %v2043_v2 }
  0x60   : >> { %1876 = vmatpush3.bf16.msra.mxu1 %v2044_v3  ;;  %1857 = vmatprep.subr.bf16.mxu0 %v2134_v1 }
  0x61   : >> { %1877 = vmatprep.subr.bf16.mxu1 %v2134_v1 }
  0x63   : >> { %1858 = vmatpush3.bf16.msra.mxu0 %v2045_v6 }
  0x64   : >> { %1878 = vmatpush3.bf16.msra.mxu1 %v2046_v9  ;;  %1859 = vmatprep.subr.bf16.mxu0 %v2134_v1 }
  0x65   : >> { %1879 = vmatprep.subr.bf16.mxu1 %v2134_v1 }
  0x67   : >> { %1860 = vmatpush3.bf16.msra.mxu0 %v2047_v13 }
  0x68   : >> { %1880 = vmatpush3.bf16.msra.mxu1 %v2048_v16  ;;  %1861 = vmatprep.subr.bf16.mxu0 %v2134_v1 }
  0x69   : >> { %1881 = vmatprep.subr.bf16.mxu1 %v2134_v1 }
  0x6b   : >> { %1862 = vmatpush3.bf16.msra.mxu0 %v2049_v22 }
  0x6c   : >> { %1882 = vmatpush3.bf16.msra.mxu1 %v2050_v23  ;;  %1863 = vmatprep.subr.bf16.mxu0 %v2134_v1 }
  0x6d   : >> { %1883 = vmatprep.subr.bf16.mxu1 %v2134_v1 }
  0x6f   : >> { %1864 = vmatpush3.bf16.msra.mxu0 %v2051_v27 }
  0x70   : >> { %1884 = vmatpush3.bf16.msra.mxu1 %v2052_v28  ;;  %1865 = vmatprep.subr.bf16.mxu0 %v2134_v1 }
  0x71   : >> { %1885 = vmatprep.subr.bf16.mxu1 %v2134_v1 }
  0x73   : >> { %1866 = vmatpush3.bf16.msra.mxu0 %v2053_v30 }
  0x74   : >> { %1886 = vmatpush3.bf16.msra.mxu1 %v2054_v31  ;;  %1891 = vmatprep.subr.bf16.mxu0 %v2134_v1 }
  0x75   : >> { %1911 = vmatprep.subr.bf16.mxu1 %v2134_v1 }
  0x76   : >> { %1868 = vmatmul.mubr.bf16.vlgmr.msra.gmra.mxu0 %v2367_v59  ;;  %v2084_v59 = vld [vmem:[%s2580_s1 + $0x200] sm:$0xff]  }
  0x77   : >> { %1892 = vmatpush3.bf16.msra.mxu0 %v2057_v34  ;;  %1888 = vmatmul.mubr.bf16.vlgmr.msra.gmra.mxu1 %v846_v35 }
  0x78   : >> { %1912 = vmatpush3.bf16.msra.mxu1 %v2059_v36  ;;  %1893 = vmatprep.subr.bf16.mxu0 %v2134_v1 }
  0x79   : >> { %1913 = vmatprep.subr.bf16.mxu1 %v2134_v1  ;;  %1907 = vmatprep.mubr.msk.bf16.mxu0 %vm2135_vm0, %v2134_v1 }
  0x7a   : >> { %1927 = vmatprep.mubr.msk.bf16.mxu1 %vm2135_vm0, %v2134_v1 }
  0x7b   : >> { %1894 = vmatpush3.bf16.msra.mxu0 %v2060_v37 }
  0x7c   : >> { %1914 = vmatpush3.bf16.msra.mxu1 %v2061_v38  ;;  %1895 = vmatprep.subr.bf16.mxu0 %v2134_v1 }
  0x7d   : >> { %1915 = vmatprep.subr.bf16.mxu1 %v2134_v1 }
  0x7f   : >> { %1896 = vmatpush3.bf16.msra.mxu0 %v2062_v39 }
  0x80   : >> { %1916 = vmatpush3.bf16.msra.mxu1 %v2063_v40  ;;  %1897 = vmatprep.subr.bf16.mxu0 %v2134_v1 }
  0x81   : >> { %1917 = vmatprep.subr.bf16.mxu1 %v2134_v1 }
  0x83   : >> { %1898 = vmatpush3.bf16.msra.mxu0 %v2064_v41 }
  0x84   : >> { %1918 = vmatpush3.bf16.msra.mxu1 %v2065_v42  ;;  %1899 = vmatprep.subr.bf16.mxu0 %v2134_v1 }
  0x85   : >> { %1919 = vmatprep.subr.bf16.mxu1 %v2134_v1 }
  0x87   : >> { %1900 = vmatpush3.bf16.msra.mxu0 %v2066_v43  ;;  %v1674_v43 = vld [vmem:[%s2581_s2] ss:$0 sm:$0xff] }
  0x88   : >> { %1920 = vmatpush3.bf16.msra.mxu1 %v2067_v44  ;;  %1901 = vmatprep.subr.bf16.mxu0 %v2134_v1 }
  0x89   : >> { %1921 = vmatprep.subr.bf16.mxu1 %v2134_v1 }
  0x8b   : >> { %1902 = vmatpush3.bf16.msra.mxu0 %v2068_v45 }
  0x8c   : >> { %1922 = vmatpush3.bf16.msra.mxu1 %v2069_v46  ;;  %1903 = vmatprep.subr.bf16.mxu0 %v2134_v1 }
  0x8d   : >> { %1923 = vmatprep.subr.bf16.mxu1 %v2134_v1 }
  0x8f   : >> { %1904 = vmatpush3.bf16.msra.mxu0 %v2070_v47 }
  0x90   : >> { %1924 = vmatpush3.bf16.msra.mxu1 %v2071_v48  ;;  %1905 = vmatprep.subr.bf16.mxu0 %v2134_v1 }
  0x91   : >> { %1925 = vmatprep.subr.bf16.mxu1 %v2134_v1 }
  0x93   : >> { %1906 = vmatpush3.bf16.msra.mxu0 %v2072_v49 }
  0x94   : >> { %1926 = vmatpush3.bf16.msra.mxu1 %v2073_v50  ;;  %1931 = vmatprep.subr.bf16.mxu0 %v2134_v1 }
  0x96   : >> { %1908 = vmatmul.mubr.bf16.vlgmr.msra.gmra.mxu0 %v2074_v51 }
  0x97   : >> { %1932 = vmatpush3.bf16.msra.mxu0 %v2075_v52  ;;  %1928 = vmatmul.mubr.bf16.vlgmr.msra.gmra.mxu1 %v2417_v19 }
  0x98   : >> { %1933 = vmatprep.subr.bf16.mxu0 %v2134_v1  ;;  %1947 = vmatprep.mubr.msk.bf16.mxu0 %vm2135_vm0, %v2134_v1 }
  0x9b   : >> { %1934 = vmatpush3.bf16.msra.mxu0 %v2078_v53 }
  0x9c   : >> { %1935 = vmatprep.subr.bf16.mxu0 %v2134_v1 }
  0x9f   : >> { %1936 = vmatpush3.bf16.msra.mxu0 %v2079_v54 }
  0xa0   : >> { %1937 = vmatprep.subr.bf16.mxu0 %v2134_v1 }
  0xa3   : >> { %1938 = vmatpush3.bf16.msra.mxu0 %v2080_v55 }
  0xa4   : >> { %1939 = vmatprep.subr.bf16.mxu0 %v2134_v1 }
  0xa7   : >> { %1940 = vmatpush3.bf16.msra.mxu0 %v2081_v56 }
  0xa8   : >> { %1941 = vmatprep.subr.bf16.mxu0 %v2134_v1 }
  0xab   : >> { %1942 = vmatpush3.bf16.msra.mxu0 %v2082_v57 }
  0xac   : >> { %1943 = vmatprep.subr.bf16.mxu0 %v2134_v1 }
  0xaf   : >> { %1944 = vmatpush3.bf16.msra.mxu0 %v2083_v58 }
  0xb0   : >> { %1945 = vmatprep.subr.bf16.mxu0 %v2134_v1 }
  0xb3   : >> { %1946 = vmatpush3.bf16.msra.mxu0 %v2084_v59 }
  0xb6   : >> { %1948 = vmatmul.mubr.bf16.vlgmr.msra.gmra.mxu0 %v2429_v26 }
  0xf6   : >> { %v357_v60 = vpop.f32.mrf.mxu0 }
  0xf7   : >> { %v447_v61 = vpop.f32.mrf.mxu1 }
  0xf8   : >> { %v448_v62 = vadd.f32 %v447_v61, %v357_v60  ;;  %v1789_v63 = vpop.f32.mrf.mxu0 }
  0xf9   : >> { %v1809_v0 = vpop.f32.mrf.mxu1 }
  0xfa   : >> { %v360_v2 = vpop.f32.mrf.mxu0 }
  0xfb   : >> { %v450_v3 = vpop.f32.mrf.mxu1 }
  0xfc   : >> { %v451_v4 = vadd.f32 %v450_v3, %v360_v2  ;;  %v1790_v5 = vpop.f32.mrf.mxu0 }
  0xfd   : >> { %v1810_v6 = vpop.f32.mrf.mxu1 }
 0x116   : >> { %v562_v7 = vpop.f32.mrf.mxu0 }
 0x117   : >> { %v569_v8 = vadd.f32 %v562_v7, %v448_v62  ;;  %v682_v9 = vpop.f32.mrf.mxu1 }
 0x118   : >> { %v1829_v10 = vpop.f32.mrf.mxu0 }
 0x119   : >> { %v689_v11 = vadd.f32 %v682_v9, %v569_v8  ;;  %v1849_v12 = vpop.f32.mrf.mxu1 }
 0x11a   : >> { %v565_v1 = vpop.f32.mrf.mxu0 }
 0x11b   : >> { %v570_v13 = vadd.f32 %v565_v1, %v451_v4  ;;  %v685_v14 = vpop.f32.mrf.mxu1 }
 0x11c   : >> { %v1830_v15 = vpop.f32.mrf.mxu0 }
 0x11d   : >> { %v690_v16 = vadd.f32 %v685_v14, %v570_v13  ;;  %v1850_v17 = vpop.f32.mrf.mxu1 }
 0x136   : >> { %v814_v18 = vpop.f32.mrf.mxu0 }
 0x137   : >> { %v930_v19 = vpop.f32.mrf.mxu1  ;;  %v821_v34 = vadd.f32 %v814_v18, %v689_v11 }
 0x138   : >> { %v1869_v20 = vpop.f32.mrf.mxu0 }
 0x139   : >> { %v1889_v21 = vpop.f32.mrf.mxu1  ;;  %v937_v35 = vadd.f32 %v930_v19, %v821_v34 }
 0x13a   : >> { %v817_v22 = vpop.f32.mrf.mxu0 }
 0x13b   : >> { %v933_v23 = vpop.f32.mrf.mxu1  ;;  %v822_v36 = vadd.f32 %v817_v22, %v690_v16 }
 0x13c   : >> { %v1870_v24 = vpop.f32.mrf.mxu0 }
 0x13d   : >> { %v1890_v25 = vpop.f32.mrf.mxu1  ;;  %v938_v38 = vadd.f32 %v933_v23, %v822_v36 }
 0x156   : >> { %v1050_v26 = vpop.f32.mrf.mxu0 }
 0x157   : >> { %v1182_v27 = vpop.f32.mrf.mxu1  ;;  %v1057_v37 = vadd.f32 %v1050_v26, %v937_v35 }
 0x158   : >> { %v1909_v28 = vpop.f32.mrf.mxu0 }
 0x159   : >> { %v1929_v29 = vpop.f32.mrf.mxu1  ;;  %v1189_v39 = vadd.f32 %v1182_v27, %v1057_v37 }
 0x15a   : >> { %v1053_v30 = vpop.f32.mrf.mxu0 }
 0x15b   : >> { %v1185_v31 = vpop.f32.mrf.mxu1  ;;  %v1058_v40 = vadd.f32 %v1053_v30, %v938_v38 }
 0x15c   : >> { %v1910_v32 = vpop.f32.mrf.mxu0 }
 0x15d   : >> { %v1930_v33 = vpop.f32.mrf.mxu1  ;;  %v1190_v45 = vadd.f32 %v1185_v31, %v1058_v40 }
 0x176   : >> { %v1298_v41 = vpop.f32.mrf.mxu0 }
 0x177   : >> { %v1305_v42 = vadd.f32 %v1298_v41, %v1189_v39 }
 0x178   : >> { %v1949_v44 = vpop.f32.mrf.mxu0 }
 0x179   : >> { %v1314_v47 = vadd.f32 %v1674_v43, %v1305_v42 }
 0x17a   : >> { %v1301_v46 = vpop.f32.mrf.mxu0 }
 0x17b   : >> { %v1306_v48 = vadd.f32 %v1301_v46, %v1190_v45  ;;  %v1316_v51 = vmax.f32 %v1314_v47, 0.0 }
 0x17c   : >> { %v1950_v49 = vpop.f32.mrf.mxu0 }
 0x17d   : >> { %v1315_v50 = vadd.f32 %v1674_v43, %v1306_v48 }
 0x17f   : >> { %v1317_v52 = vmax.f32 %v1315_v50, 0.0  ;;  %212 = sbr.rel (!%p210_p7) target bundleno = 21 (0x15), region = 81 }
 0x181   : >> { %v1688_v53 = vpack.c.bf16 %v1317_v52, %v1316_v51 }
 0x183   : >> { %1689 = vst [vmem:[%s1328_s10] sm:$0xff] %v1688_v53  }
 0x184 PF: > { %s13_s16 = sadd.s32 1, %s2128_s16   ;;  %s2583_s12 = smov %s2120_s14 }
 0x185   : > { %p10_p8 = scmp.ge.s32.totalorder %s13_s16, 10   ;;  %s2584_s13 = smov %s2124_s15 }
 0x186   : > { %s2585_s14 = smov %s2588_s17  ;;  %s2586_s15 = smov %s2592_s18 }
 0x187   :  { %12 = sbr.rel (!%p10_p8) target bundleno = 3 (0x3), region = 92 }

// kernel: _lambda_.14
= control target key start
LH: loop header
LB: loop body
LE: loop exit
PB: predicated region body
PF: predicated region fallthrough
CT: control target
= control target key end

     0   :  { %s357_s6 = smov 0   ;;  %s359_s7 = smov 0   ;;  %s390_s0 = inlined_call_operand.vmem [shape: bf16[4,4,2,4,256], index: 0, kind: input, shape index: {}]   ;;  %s391_s1 = inlined_call_operand.vmem [shape: bf16[4,4,4,128], index: 1, kind: output, shape index: {}]  }
   0x1   :  { %s361_s8 = smov 0  }
   0x2 LB: > { %s23_s9 = sadd.s32 1, %s341_s7  ;;  %p286_p0 = scmp.ge.s32.totalorder %s345_s8, 1  ;;  %s345_s8 = sphi %s361_s8, %s11_s8   ;;  %s341_s7 = sphi %s359_s7, %s393_s7   ;;  %s337_s6 = sphi %s357_s6, %s392_s6  }
   0x3   : > { %p25_p1 = scmp.ge.s32.totalorder %s23_s9, 4  ;;  %p109_p2 = scmp.lt.s32.totalorder %s345_s8, 5 }
   0x5   : > { %s395_s9 = smov (%p25_p1, %s23_s9), 0  ;;  %p110_p3 = pnand %p286_p0, %p109_p2 }
   0x6   : > { %p139_p4 = scmp.lt.s32.totalorder (!%p110_p3), %s337_s6, 3 }
   0x7   : > { %113 = sbr.rel (%p110_p3) target bundleno = 25 (0x19), region = 24 }
   0xc   : > { %s397_s6 = smov (!%p139_p4, %s337_s6), 3 }
   0xd   : > { %s297_s10 = sshll.u32 %s397_s6, 5  ;;  %s298_s14 = sshll.u32 %s397_s6, 3 }
   0xe   : > { %s147_s13 = scalar_lea.vmem %s390_s0, %s297_s10  ;;  %s157_s17 = scalar_lea.vmem %s391_s1, %s298_s14 }
   0xf   : > { %v159_v0 = vld [vmem:[%s147_s13] sm:$0xf]  ;;  %v291_v1 = vld [vmem:[%s147_s13 + $0x4] sm:$0xf]  ;;  %v160_v2 = vld [vmem:[%s147_s13 + $0x8] sm:$0xf] }
  0x10   : > { %v168_v3 = vmax.bf16 %v291_v1, %v159_v0  ;;  %v292_v4 = vld [vmem:[%s147_s13 + $0xc] sm:$0xf]  ;;  %v161_v5 = vld [vmem:[%s147_s13 + $0x10] sm:$0xf]  ;;  %v293_v6 = vld [vmem:[%s147_s13 + $0x14] sm:$0xf] }
  0x11   : > { %v169_v7 = vmax.bf16 %v292_v4, %v160_v2  ;;  %v170_v8 = vmax.bf16 %v293_v6, %v161_v5  ;;  %v162_v9 = vld [vmem:[%s147_s13 + $0x18] sm:$0xf]  ;;  %v294_v10 = vld [vmem:[%s147_s13 + $0x1c] sm:$0xf] }
  0x12   : > { %v176_v11 = vrot.slane %v168_v3, 2  ;;  %v171_v12 = vmax.bf16 %v294_v10, %v162_v9 }
  0x13   : > { %v177_v13 = vrot.slane %v169_v7, 2  ;;  %v178_v14 = vrot.slane %v170_v8, 2 }
  0x14   : > { %v184_v15 = vmax.bf16 %v176_v11, %v168_v3  ;;  %v179_v16 = vrot.slane %v171_v12, 2 }
  0x15   : > { %v185_v17 = vmax.bf16 %v177_v13, %v169_v7  ;;  %v186_v18 = vmax.bf16 %v178_v14, %v170_v8 }
  0x16   : > { %188 = vst [vmem:[%s157_s17] sm:$0x3] %v184_v15  ;;  %v187_v19 = vmax.bf16 %v179_v16, %v171_v12 }
  0x17   : > { %189 = vst [vmem:[%s157_s17 + $0x2] sm:$0x3] %v185_v17  ;;  %190 = vst [vmem:[%s157_s17 + $0x4] sm:$0x3] %v186_v18 }
  0x18   : > { %191 = vst [vmem:[%s157_s17 + $0x6] sm:$0x3] %v187_v19 }
  0x19 PF: > { %s11_s8 = sadd.s32 1, %s345_s8   ;;  %s392_s6 = smov %s341_s7 }
  0x1a   : > { %p8_p5 = scmp.ge.s32.totalorder %s11_s8, 6   ;;  %s393_s7 = smov %s395_s9 }
  0x1c   :  { %10 = sbr.rel (!%p8_p5) target bundleno = 2 (0x2), region = 55 }

// kernel: _lambda_.16
= control target key start
LH: loop header
LB: loop body
LE: loop exit
PB: predicated region body
PF: predicated region fallthrough
CT: control target
= control target key end

     0   :  { %s211_s0 = inlined_call_operand.vmem [shape: bf16[64,128], index: 0, kind: input, shape index: {}]   ;;  %s212_s1 = inlined_call_operand.vmem [shape: bf16[64,128], index: 1, kind: input, shape index: {}]   ;;  %s213_s2 = inlined_call_operand.hbm [shape: f32[1,1], index: 2, kind: output, shape index: {}]  }
   0x1   :  { %v102_v0 = vld [vmem:[%s211_s0] sm:$0xff]   ;;  %v133_v1 = vld [vmem:[%s211_s0 + $0x8] sm:$0xff]   ;;  %v134_v2 = vld [vmem:[%s211_s0 + $0x10] sm:$0xff]  }
   0x2   :  { %v103_v3 = vunpack.c.l.bf16 %v102_v0  ;;  %v104_v4 = vunpack.c.h.bf16 %v102_v0  ;;  %v107_v5 = vunpack.c.l.bf16 %v133_v1  ;;  %v108_v6 = vunpack.c.h.bf16 %v133_v1  ;;  %v118_v7 = vld [vmem:[%s212_s1] sm:$0xff]   ;;  %v136_v8 = vld [vmem:[%s212_s1 + $0x8] sm:$0xff]   ;;  %v137_v10 = vld [vmem:[%s212_s1 + $0x10] sm:$0xff]  }
   0x3   :  { %v111_v9 = vunpack.c.l.bf16 %v134_v2 }
   0x4   :  { %7 = vsyncpa [#allocation3], 0  ;;  %v135_v11 = vld [vmem:[%s211_s0 + $0x18] sm:$0xff]   ;;  %v119_v12 = vunpack.c.l.bf16 %v118_v7  ;;  %v120_v13 = vunpack.c.h.bf16 %v118_v7  ;;  %v123_v14 = vunpack.c.l.bf16 %v136_v8  ;;  %v124_v15 = vunpack.c.h.bf16 %v136_v8  ;;  %s166_s0 = smov [#allocation2]  }
   0x5   :  { %v138_v16 = vld [vmem:[%s212_s1 + $0x18] sm:$0xff]   ;;  %v112_v17 = vunpack.c.h.bf16 %v134_v2  ;;  %v127_v18 = vunpack.c.l.bf16 %v137_v10  ;;  %v128_v19 = vunpack.c.h.bf16 %v137_v10  ;;  %v115_v24 = vunpack.c.l.bf16 %v135_v11  ;;  %s93_s1 = sshll.u32 %s166_s0, 4  ;;  %s94_s1 = int_to_ptr.vmem [resolvable:$true] %s93_s1 }
   0x6   :  { %v50_v20 = vsub.f32 %v103_v3, %v119_v12  ;;  %v51_v21 = vsub.f32 %v104_v4, %v120_v13  ;;  %v52_v22 = vsub.f32 %v107_v5, %v123_v14  ;;  %v53_v23 = vsub.f32 %v108_v6, %v124_v15  ;;  %s143_s26 = scalar_lea.vmem %s94_s1, 16  ;;  %s147_s27 = scalar_lea.vmem %s94_s1, 32 }
   0x7   :  { %v131_v25 = vunpack.c.l.bf16 %v138_v16  ;;  %v54_v26 = vsub.f32 %v111_v9, %v127_v18  ;;  %v116_v30 = vunpack.c.h.bf16 %v135_v11  ;;  %v132_v31 = vunpack.c.h.bf16 %v138_v16  ;;  %p144_p0 = scmp.ne.s32.totalorder %s94_s1, %s143_s26  ;;  %p148_p1 = scmp.lt.s32.totalorder %s94_s1, %s94_s1 }
   0x8   :  { %v59_v27 = vmul.f32 %v50_v20, %v50_v20  ;;  %v60_v28 = vmul.f32 %v51_v21, %v51_v21  ;;  %v61_v29 = vmul.f32 %v52_v22, %v52_v22  ;;  %v55_v32 = vsub.f32 %v112_v17, %v128_v19  ;;  %p149_p2 = scmp.lt.s32.totalorder %s147_s27, %s143_s26 }
   0x9   :  { %v62_v33 = vmul.f32 %v53_v23, %v53_v23  ;;  %v56_v35 = vsub.f32 %v115_v24, %v131_v25  ;;  %v63_v36 = vmul.f32 %v54_v26, %v54_v26  ;;  %v57_v38 = vsub.f32 %v116_v30, %v132_v31 }
   0xa   :  { %v67_v34 = vadd.f32 %v60_v28, %v59_v27  ;;  %v64_v39 = vmul.f32 %v55_v32, %v55_v32  ;;  %vm16_vm0 = vcmask 0   ;;  %v165_v47 = vmov 0.0   ;;  %p150_p3 = por %p149_p2, %p148_p1 }
   0xb   :  { %v65_v41 = vmul.f32 %v56_v35, %v56_v35  ;;  %v66_v43 = vmul.f32 %v57_v38, %v57_v38  ;;  %17 = vst.msk [vmem:[#allocation2] sm:$0x1] %vm16_vm0, %v165_v47 }
   0xc   :  { %v68_v37 = vadd.f32 %v67_v34, %v61_v29  ;;  %p151_p4 = pnand %p150_p3, %p144_p0 }
   0xe   :  { %v69_v40 = vadd.f32 %v68_v37, %v62_v33 }
  0x10   :  { %v70_v42 = vadd.f32 %v69_v40, %v63_v36 }
  0x12   :  { %v71_v44 = vadd.f32 %v70_v42, %v64_v39  ;;  %v58_v55 = vld [vmem:[#allocation2] sm:$0x1] }
  0x14   :  { %v72_v45 = vadd.f32 %v71_v44, %v65_v41 }
  0x16   :  { %v73_v46 = vadd.f32 %v72_v45, %v66_v43 }
  0x18   :  { %74 = vadd.xlane.f32.xlu0 %v73_v46 }
  0xa1   :  { %v75_v48 = vpop.xlane.xlu0 %74 }
  0xa2   :  { %v76_v49 = vrot.slane %v75_v48, 4 }
  0xa4   :  { %v77_v50 = vadd.f32 %v76_v49, %v75_v48 }
  0xa6   :  { %v78_v51 = vrot.slane %v77_v50, 2 }
  0xa8   :  { %v79_v52 = vadd.f32 %v78_v51, %v77_v50 }
  0xaa   :  { %v80_v53 = vrot.slane %v79_v52, 1 }
  0xac   :  { %v81_v54 = vadd.f32 %v80_v53, %v79_v52 }
  0xae   :  { %139 = vpush %v81_v54 }
  0xdf   :  { %s140_s25 = spop %139 }
  0xe0   :  { %v83_v56 = vstv %s140_s25 }
  0xe1   :  { %v84_v57 = vadd.f32 %v83_v56, %v58_v55 }
  0xe3   :  { %86 = vst.msk [vmem:[#allocation2] sm:$0x1] %vm16_vm0, %v84_v57 }
  0xe4   :  { %154 = shalt.err (!%p151_p4)
}
  0xe5   :  { %96 = dma.vmem_to_hbm [thread:$0]  %s94_s1, 16, %s213_s2, [#allocation3]  }
  0xe6   :  { %163 = dma.done.wait [#allocation3], 16  }
  0xe7   :  { %164 = vsyncadd [#allocation3], 4294967280 }
  0xe8   :  { %100 = vsyncpa [#allocation3], 1 }

// kernel: _lambda_.12
= control target key start
LH: loop header
LB: loop body
LE: loop exit
PB: predicated region body
PF: predicated region fallthrough
CT: control target
= control target key end

     0   :  { %s2021_s12 = smov 0   ;;  %s2023_s13 = smov 0   ;;  %s2396_s0 = inlined_call_operand.vmem [shape: bf16[4,1,10,10,128], index: 0, kind: input, shape index: {}]   ;;  %s2397_s1 = inlined_call_operand.vmem [shape: bf16[3,3,128,128], index: 1, kind: input, shape index: {}]   ;;  %s2398_s2 = inlined_call_operand.vmem [shape: f32[1,128], index: 2, kind: input, shape index: {}]   ;;  %s2399_s3 = inlined_call_operand.vmem [shape: bf16[4,1,8,8,128], index: 3, kind: output, shape index: {}]  }
   0x1   :  { %s2025_s14 = smov 0  }
   0x2 LB: > { %s25_s15 = sadd.s32 1, %s1989_s13  ;;  %p1365_p0 = scmp.ge.s32.totalorder %s1993_s14, 1  ;;  %s1993_s14 = sphi %s2025_s14, %s13_s14   ;;  %s1989_s13 = sphi %s2023_s13, %s2401_s13   ;;  %s1985_s12 = sphi %s2021_s12, %s2400_s12  }
   0x3   : > { %p27_p1 = scmp.ge.s32.totalorder %s25_s15, 4  ;;  %p157_p2 = scmp.lt.s32.totalorder %s1993_s14, 5 }
   0x5   : > { %s2403_s15 = smov (%p27_p1, %s25_s15), 0  ;;  %p158_p3 = pnand %p1365_p0, %p157_p2 }
   0x6   : > { %p189_p4 = scmp.lt.s32.totalorder (!%p158_p3), %s1985_s12, 3  ;;  %s2049_s24 = smov (!%p158_p3), 0  }
   0x7   : > { %161 = sbr.rel (%p158_p3) target bundleno = 379 (0x17b), region = 32 }
   0xc   : > { %s2405_s12 = smov (!%p189_p4, %s1985_s12), 3 }
   0xd   : > { %s1854_s16 = smul.u32 80, %s2405_s12  ;;  %s1591_s17 = sshll.u32 %s2405_s12, 5 }
   0xe   : > { %s2042_s20 = scalar_lea.vmem %s2399_s3, %s1591_s17 }
   0xf   : > { %s2047_s23 = scalar_lea.vmem %s2396_s0, %s1854_s16 }
  0x10 LB: >> { %v1889_v0 = vld [vmem:[%s2397_s1 + $0x78] sm:$0xff]   ;;  %v1999_v1 = vmov 0.0   ;;  %v1891_v3 = vld [vmem:[%s2397_s1 + $0x70] sm:$0xff]   ;;  %vm2000_vm0 = vmmov 0   ;;  %v1893_v5 = vld [vmem:[%s2397_s1 + $0x68] sm:$0xff]   ;;  %s1592_s12 = sshll.u32 %s1997_s24, 3  ;;  %s1997_s24 = sphi %s2049_s24, %s213_s24  }
  0x11   : >> { %1674 = vmatprep.subr.bf16.mxu0 %v1999_v1  ;;  %1694 = vmatprep.subr.bf16.mxu1 %v1999_v1  ;;  %v1890_v2 = vld [vmem:[%s2397_s1 + $0x38] sm:$0xff]   ;;  %v1892_v4 = vld [vmem:[%s2397_s1 + $0x30] sm:$0xff]   ;;  %v1894_v6 = vld [vmem:[%s2397_s1 + $0x28] sm:$0xff]   ;;  %s2092_s18 = scalar_lea.vmem %s2047_s23, %s1592_s12  ;;  %s1588_s4 = sshll.u32 %s1997_s24, 2 }
  0x12   : >> { %1675 = vmatpush3.bf16.msra.mxu0 %v1889_v0  ;;  %1690 = vmatprep.mubr.msk.bf16.mxu0 %vm2000_vm0, %v1999_v1  ;;  %v1895_v7 = vld [vmem:[%s2397_s1 + $0x60] sm:$0xff]   ;;  %v1897_v9 = vld [vmem:[%s2397_s1 + $0x58] sm:$0xff]   ;;  %v1899_v14 = vld [vmem:[%s2397_s1 + $0x50] sm:$0xff]   ;;  %s1252_s5 = scalar_lea.vmem %s2042_s20, %s1588_s4  ;;  %s213_s24 = sadd.s32 1, %s1997_s24  }
  0x13   : >> { %1695 = vmatpush3.bf16.msra.mxu1 %v1890_v2  ;;  %1676 = vmatprep.subr.bf16.mxu0 %v1999_v1  ;;  %v1896_v8 = vld [vmem:[%s2397_s1 + $0x20] sm:$0xff]   ;;  %v1898_v10 = vld [vmem:[%s2397_s1 + $0x18] sm:$0xff]   ;;  %v1900_v15 = vld [vmem:[%s2397_s1 + $0x10] sm:$0xff]   ;;  %p210_p5 = scmp.ge.s32.totalorder %s213_s24, 8  }
  0x14   : >> { %1696 = vmatprep.subr.bf16.mxu1 %v1999_v1  ;;  %1710 = vmatprep.mubr.msk.bf16.mxu1 %vm2000_vm0, %v1999_v1  ;;  %v217_v11 = vld [vmem:[%s2092_s18] sm:$0xf]  ;;  %v2104_v12 = vld [vmem:[%s2092_s18 + $0x4] sm:$0x1]  ;;  %v1901_v17 = vld [vmem:[%s2397_s1 + $0x48] sm:$0xff]  }
  0x15   : >> { %v1387_v13 = vcombine.low %v217_v11, %v2104_v12  ;;  %v1902_v18 = vld [vmem:[%s2397_s1 + $0x8] sm:$0xff]   ;;  %v1903_v21 = vld [vmem:[%s2397_s1 + $0x40] sm:$0xff]   ;;  %v1906_v24 = vld [vmem:[%s2397_s1 + $0xb8] sm:$0xff]  }
  0x16   : >> { %1677 = vmatpush3.bf16.msra.mxu0 %v1891_v3  ;;  %v1904_v22 = vld [vmem:[%s2397_s1] sm:$0xff]   ;;  %v1907_v25 = vld [vmem:[%s2397_s1 + $0xf8] sm:$0xff]   ;;  %v1908_v26 = vld [vmem:[%s2397_s1 + $0xb0] sm:$0xff]  }
  0x17   : >> { %1697 = vmatpush3.bf16.msra.mxu1 %v1892_v4  ;;  %1678 = vmatprep.subr.bf16.mxu0 %v1999_v1  ;;  %v260_v16 = vshll.u32 %v1387_v13, 16  ;;  %v258_v19 = vshrl.u32 %v1387_v13, 16  ;;  %v1909_v27 = vld [vmem:[%s2397_s1 + $0xf0] sm:$0xff]   ;;  %v1910_v28 = vld [vmem:[%s2397_s1 + $0xa8] sm:$0xff]   ;;  %v1912_v30 = vld [vmem:[%s2397_s1 + $0xa0] sm:$0xff]  }
  0x18   : >> { %1698 = vmatprep.subr.bf16.mxu1 %v1999_v1  ;;  %v1911_v29 = vld [vmem:[%s2397_s1 + $0xe8] sm:$0xff]   ;;  %v1913_v31 = vld [vmem:[%s2397_s1 + $0xe0] sm:$0xff]   ;;  %v1914_v32 = vld [vmem:[%s2397_s1 + $0x98] sm:$0xff]  }
  0x19   : >> { %v262_v20 = vrot.slane %v260_v16, 1  ;;  %v1915_v33 = vld [vmem:[%s2397_s1 + $0xd8] sm:$0xff]   ;;  %v1916_v34 = vld [vmem:[%s2397_s1 + $0x90] sm:$0xff]   ;;  %v1918_v36 = vld [vmem:[%s2397_s1 + $0x88] sm:$0xff]  }
  0x1a   : >> { %1679 = vmatpush3.bf16.msra.mxu0 %v1893_v5  ;;  %v1917_v35 = vld [vmem:[%s2397_s1 + $0xd0] sm:$0xff]   ;;  %v1919_v37 = vld [vmem:[%s2397_s1 + $0xc8] sm:$0xff]   ;;  %v441_v38 = vld [vmem:[%s2092_s18] sm:$0xe] }
  0x1b   : >> { %1699 = vmatpush3.bf16.msra.mxu1 %v1894_v6  ;;  %1680 = vmatprep.subr.bf16.mxu0 %v1999_v1  ;;  %v263_v23 = vor.u32 %v262_v20, %v258_v19  ;;  %v1420_v39 = vcombine.low %v441_v38, %v2104_v12  ;;  %v1920_v40 = vld [vmem:[%s2397_s1 + $0x80] sm:$0xff]   ;;  %v1923_v43 = vld [vmem:[%s2397_s1 + $0x138] sm:$0xff]   ;;  %v1430_v44 = vld [vmem:[%s2092_s18 + $0x8] sm:$0xf] }
  0x1c   : >> { %1700 = vmatprep.subr.bf16.mxu1 %v1999_v1  ;;  %v1921_v41 = vld [vmem:[%s2397_s1 + $0xc0] sm:$0xff]   ;;  %v1924_v45 = vld [vmem:[%s2397_s1 + $0x178] sm:$0xff]   ;;  %v1925_v46 = vld [vmem:[%s2397_s1 + $0x130] sm:$0xff]  }
  0x1d   : >> { %v462_v42 = vrot.slane %v1420_v39, 1  ;;  %v1926_v47 = vld [vmem:[%s2397_s1 + $0x170] sm:$0xff]   ;;  %v1927_v48 = vld [vmem:[%s2397_s1 + $0x128] sm:$0xff]   ;;  %v1929_v50 = vld [vmem:[%s2397_s1 + $0x120] sm:$0xff]  }
  0x1e   : >> { %1681 = vmatpush3.bf16.msra.mxu0 %v1895_v7  ;;  %v1928_v49 = vld [vmem:[%s2397_s1 + $0x168] sm:$0xff]   ;;  %v1930_v51 = vld [vmem:[%s2397_s1 + $0x160] sm:$0xff]   ;;  %v1931_v52 = vld [vmem:[%s2397_s1 + $0x118] sm:$0xff]  }
  0x1f   : >> { %1701 = vmatpush3.bf16.msra.mxu1 %v1896_v8  ;;  %1682 = vmatprep.subr.bf16.mxu0 %v1999_v1  ;;  %v1455_v53 = vld [vmem:[%s2092_s18 + $0x8] sm:$0xf]  ;;  %v1456_v54 = vld [vmem:[%s2092_s18 + $0xc] sm:$0x1]  ;;  %v1932_v55 = vld [vmem:[%s2397_s1 + $0x158] sm:$0xff]  }
  0x20   : >> { %1702 = vmatprep.subr.bf16.mxu1 %v1999_v1  ;;  %v1473_v56 = vcombine.low %v1455_v53, %v1456_v54  ;;  %v1933_v57 = vld [vmem:[%s2397_s1 + $0x110] sm:$0xff]   ;;  %v1935_v60 = vld [vmem:[%s2397_s1 + $0x108] sm:$0xff]   ;;  %v1937_v2 = vld [vmem:[%s2397_s1 + $0x100] sm:$0xff]  }
  0x21   : >> { %v1934_v58 = vld [vmem:[%s2397_s1 + $0x150] sm:$0xff]   ;;  %v1936_v61 = vld [vmem:[%s2397_s1 + $0x148] sm:$0xff]   ;;  %v1938_v4 = vld [vmem:[%s2397_s1 + $0x140] sm:$0xff]  }
  0x22   : >> { %1683 = vmatpush3.bf16.msra.mxu0 %v1897_v9  ;;  %v691_v59 = vshll.u32 %v1473_v56, 16  ;;  %v1482_v62 = vld [vmem:[%s2092_s18 + $0x8] sm:$0xe]  ;;  %v689_v63 = vshrl.u32 %v1473_v56, 16  ;;  %v1940_v6 = vld [vmem:[%s2397_s1 + $0x1b8] sm:$0xff]   ;;  %v1943_v9 = vld [vmem:[%s2397_s1 + $0x1b0] sm:$0xff]  }
  0x23   : >> { %1703 = vmatpush3.bf16.msra.mxu1 %v1898_v10  ;;  %1684 = vmatprep.subr.bf16.mxu0 %v1999_v1  ;;  %v1499_v3 = vcombine.low %v1482_v62, %v1456_v54  ;;  %v1942_v8 = vld [vmem:[%s2397_s1 + $0x1f8] sm:$0xff]   ;;  %v1944_v10 = vld [vmem:[%s2397_s1 + $0x1f0] sm:$0xff]   ;;  %v1946_v12 = vld [vmem:[%s2397_s1 + $0x1e8] sm:$0xff]  }
  0x24   : >> { %1704 = vmatprep.subr.bf16.mxu1 %v1999_v1  ;;  %v693_v0 = vrot.slane %v691_v59, 1  ;;  %v1947_v13 = vld [vmem:[%s2397_s1 + $0x1a0] sm:$0xff]   ;;  %v1950_v16 = vld [vmem:[%s2397_s1 + $0x1d8] sm:$0xff]   ;;  %v1951_v19 = vld [vmem:[%s2397_s1 + $0x190] sm:$0xff]  }
  0x25   : >> { %v806_v7 = vrot.slane %v1499_v3, 1  ;;  %v1561_v38 = vld [vmem:[%s2092_s18 + $0x10] sm:$0xe] }
  0x26   : >> { %1685 = vmatpush3.bf16.msra.mxu0 %v1899_v14  ;;  %v694_v5 = vor.u32 %v693_v0, %v689_v63  ;;  %v1948_v14 = vld [vmem:[%s2397_s1 + $0x1e0] sm:$0xff]  }
  0x27   : >> { %1705 = vmatpush3.bf16.msra.mxu1 %v1900_v15  ;;  %1686 = vmatprep.subr.bf16.mxu0 %v1999_v1  ;;  %v1949_v15 = vld [vmem:[%s2397_s1 + $0x198] sm:$0xff]  }
  0x28   : >> { %1706 = vmatprep.subr.bf16.mxu1 %v1999_v1 }
  0x2a   : >> { %1687 = vmatpush3.bf16.msra.mxu0 %v1901_v17  ;;  %v1534_v17 = vld [vmem:[%s2092_s18 + $0x10] sm:$0xf] }
  0x2b   : >> { %1707 = vmatpush3.bf16.msra.mxu1 %v1902_v18  ;;  %1688 = vmatprep.subr.bf16.mxu0 %v1999_v1  ;;  %v1535_v18 = vld [vmem:[%s2092_s18 + $0x14] sm:$0x1] }
  0x2c   : >> { %1708 = vmatprep.subr.bf16.mxu1 %v1999_v1  ;;  %v1552_v20 = vcombine.low %v1534_v17, %v1535_v18  ;;  %v1578_v39 = vcombine.low %v1561_v38, %v1535_v18  ;;  %v1587_v18 = vld [vmem:[%s2398_s2] ss:$0 sm:$0xff] }
  0x2e   : >> { %1689 = vmatpush3.bf16.msra.mxu0 %v1903_v21  ;;  %v1952_v21 = vld [vmem:[%s2397_s1 + $0x1d0] sm:$0xff]  }
  0x2f   : >> { %1709 = vmatpush3.bf16.msra.mxu1 %v1904_v22  ;;  %1714 = vmatprep.subr.bf16.mxu0 %v1999_v1  ;;  %v1953_v22 = vld [vmem:[%s2397_s1 + $0x188] sm:$0xff]  }
  0x30   : >> { %1734 = vmatprep.subr.bf16.mxu1 %v1999_v1 }
  0x31   : >> { %1691 = vmatmul.mubr.bf16.vlgmr.msra.gmra.mxu0 %v263_v23  ;;  %v1035_v23 = vshll.u32 %v1552_v20, 16 }
  0x32   : >> { %1711 = vmatmul.mubr.bf16.vlgmr.msra.gmra.mxu1 %v217_v11  ;;  %1715 = vmatpush3.bf16.msra.mxu0 %v1906_v24  ;;  %v1945_v11 = vld [vmem:[%s2397_s1 + $0x1a8] sm:$0xff]  }
  0x33   : >> { %1735 = vmatpush3.bf16.msra.mxu1 %v1907_v25  ;;  %1716 = vmatprep.subr.bf16.mxu0 %v1999_v1  ;;  %v1954_v24 = vld [vmem:[%s2397_s1 + $0x1c8] sm:$0xff]   ;;  %v1955_v25 = vld [vmem:[%s2397_s1 + $0x180] sm:$0xff]  }
  0x34   : >> { %1736 = vmatprep.subr.bf16.mxu1 %v1999_v1  ;;  %1730 = vmatprep.mubr.msk.bf16.mxu0 %vm2000_vm0, %v1999_v1 }
  0x35   : >> { %1750 = vmatprep.mubr.msk.bf16.mxu1 %vm2000_vm0, %v1999_v1 }
  0x36   : >> { %1717 = vmatpush3.bf16.msra.mxu0 %v1908_v26  ;;  %v1033_v26 = vshrl.u32 %v1552_v20, 16 }
  0x37   : >> { %1737 = vmatpush3.bf16.msra.mxu1 %v1909_v27  ;;  %1718 = vmatprep.subr.bf16.mxu0 %v1999_v1  ;;  %v1037_v27 = vrot.slane %v1035_v23, 1 }
  0x38   : >> { %1738 = vmatprep.subr.bf16.mxu1 %v1999_v1 }
  0x3a   : >> { %1719 = vmatpush3.bf16.msra.mxu0 %v1910_v28  ;;  %v1956_v28 = vld [vmem:[%s2397_s1 + $0x1c0] sm:$0xff]  }
  0x3b   : >> { %1739 = vmatpush3.bf16.msra.mxu1 %v1911_v29  ;;  %1720 = vmatprep.subr.bf16.mxu0 %v1999_v1  ;;  %v1509_v29 = vld [vmem:[%s2092_s18 + $0x10] sm:$0xf] }
  0x3c   : >> { %1740 = vmatprep.subr.bf16.mxu1 %v1999_v1 }
  0x3e   : >> { %1721 = vmatpush3.bf16.msra.mxu0 %v1912_v30  ;;  %v1957_v30 = vld [vmem:[%s2397_s1 + $0x238] sm:$0xff]  }
  0x3f   : >> { %1741 = vmatpush3.bf16.msra.mxu1 %v1913_v31  ;;  %1722 = vmatprep.subr.bf16.mxu0 %v1999_v1  ;;  %v1038_v31 = vor.u32 %v1037_v27, %v1033_v26 }
  0x40   : >> { %1742 = vmatprep.subr.bf16.mxu1 %v1999_v1 }
  0x42   : >> { %1723 = vmatpush3.bf16.msra.mxu0 %v1914_v32  ;;  %v1959_v32 = vld [vmem:[%s2397_s1 + $0x230] sm:$0xff]  }
  0x43   : >> { %1743 = vmatpush3.bf16.msra.mxu1 %v1915_v33  ;;  %1724 = vmatprep.subr.bf16.mxu0 %v1999_v1  ;;  %v1960_v33 = vld [vmem:[%s2397_s1 + $0x228] sm:$0xff]  }
  0x44   : >> { %1744 = vmatprep.subr.bf16.mxu1 %v1999_v1 }
  0x46   : >> { %1725 = vmatpush3.bf16.msra.mxu0 %v1916_v34  ;;  %v1961_v34 = vld [vmem:[%s2397_s1 + $0x220] sm:$0xff]  }
  0x47   : >> { %1745 = vmatpush3.bf16.msra.mxu1 %v1917_v35  ;;  %1726 = vmatprep.subr.bf16.mxu0 %v1999_v1  ;;  %v1962_v35 = vld [vmem:[%s2397_s1 + $0x218] sm:$0xff]  }
  0x48   : >> { %1746 = vmatprep.subr.bf16.mxu1 %v1999_v1 }
  0x4a   : >> { %1727 = vmatpush3.bf16.msra.mxu0 %v1918_v36  ;;  %v1963_v36 = vld [vmem:[%s2397_s1 + $0x210] sm:$0xff]  }
  0x4b   : >> { %1747 = vmatpush3.bf16.msra.mxu1 %v1919_v37  ;;  %1728 = vmatprep.subr.bf16.mxu0 %v1999_v1  ;;  %v1964_v37 = vld [vmem:[%s2397_s1 + $0x208] sm:$0xff]  }
  0x4c   : >> { %1748 = vmatprep.subr.bf16.mxu1 %v1999_v1 }
  0x4e   : >> { %1729 = vmatpush3.bf16.msra.mxu0 %v1920_v40  ;;  %v1965_v40 = vld [vmem:[%s2397_s1 + $0x200] sm:$0xff]  }
  0x4f   : >> { %1749 = vmatpush3.bf16.msra.mxu1 %v1921_v41  ;;  %1754 = vmatprep.subr.bf16.mxu0 %v1999_v1  ;;  %v1150_v41 = vrot.slane %v1578_v39, 1 }
  0x50   : >> { %1774 = vmatprep.subr.bf16.mxu1 %v1999_v1 }
  0x51   : >> { %1731 = vmatmul.mubr.bf16.vlgmr.msra.gmra.mxu0 %v462_v42 }
  0x52   : >> { %1755 = vmatpush3.bf16.msra.mxu0 %v1923_v43  ;;  %1751 = vmatmul.mubr.bf16.vlgmr.msra.gmra.mxu1 %v1430_v44 }
  0x53   : >> { %1775 = vmatpush3.bf16.msra.mxu1 %v1924_v45  ;;  %1756 = vmatprep.subr.bf16.mxu0 %v1999_v1 }
  0x54   : >> { %1776 = vmatprep.subr.bf16.mxu1 %v1999_v1  ;;  %1770 = vmatprep.mubr.msk.bf16.mxu0 %vm2000_vm0, %v1999_v1 }
  0x55   : >> { %1790 = vmatprep.mubr.msk.bf16.mxu1 %vm2000_vm0, %v1999_v1 }
  0x56   : >> { %1757 = vmatpush3.bf16.msra.mxu0 %v1925_v46 }
  0x57   : >> { %1777 = vmatpush3.bf16.msra.mxu1 %v1926_v47  ;;  %1758 = vmatprep.subr.bf16.mxu0 %v1999_v1 }
  0x58   : >> { %1778 = vmatprep.subr.bf16.mxu1 %v1999_v1 }
  0x5a   : >> { %1759 = vmatpush3.bf16.msra.mxu0 %v1927_v48 }
  0x5b   : >> { %1779 = vmatpush3.bf16.msra.mxu1 %v1928_v49  ;;  %1760 = vmatprep.subr.bf16.mxu0 %v1999_v1 }
  0x5c   : >> { %1780 = vmatprep.subr.bf16.mxu1 %v1999_v1 }
  0x5e   : >> { %1761 = vmatpush3.bf16.msra.mxu0 %v1929_v50 }
  0x5f   : >> { %1781 = vmatpush3.bf16.msra.mxu1 %v1930_v51  ;;  %1762 = vmatprep.subr.bf16.mxu0 %v1999_v1 }
  0x60   : >> { %1782 = vmatprep.subr.bf16.mxu1 %v1999_v1 }
  0x62   : >> { %1763 = vmatpush3.bf16.msra.mxu0 %v1931_v52 }
  0x63   : >> { %1783 = vmatpush3.bf16.msra.mxu1 %v1932_v55  ;;  %1764 = vmatprep.subr.bf16.mxu0 %v1999_v1 }
  0x64   : >> { %1784 = vmatprep.subr.bf16.mxu1 %v1999_v1 }
  0x66   : >> { %1765 = vmatpush3.bf16.msra.mxu0 %v1933_v57 }
  0x67   : >> { %1785 = vmatpush3.bf16.msra.mxu1 %v1934_v58  ;;  %1766 = vmatprep.subr.bf16.mxu0 %v1999_v1 }
  0x68   : >> { %1786 = vmatprep.subr.bf16.mxu1 %v1999_v1 }
  0x6a   : >> { %1767 = vmatpush3.bf16.msra.mxu0 %v1935_v60 }
  0x6b   : >> { %1787 = vmatpush3.bf16.msra.mxu1 %v1936_v61  ;;  %1768 = vmatprep.subr.bf16.mxu0 %v1999_v1 }
  0x6c   : >> { %1788 = vmatprep.subr.bf16.mxu1 %v1999_v1 }
  0x6e   : >> { %1769 = vmatpush3.bf16.msra.mxu0 %v1937_v2 }
  0x6f   : >> { %1789 = vmatpush3.bf16.msra.mxu1 %v1938_v4  ;;  %1794 = vmatprep.subr.bf16.mxu0 %v1999_v1 }
  0x70   : >> { %1814 = vmatprep.subr.bf16.mxu1 %v1999_v1 }
  0x71   : >> { %1771 = vmatmul.mubr.bf16.vlgmr.msra.gmra.mxu0 %v694_v5 }
  0x72   : >> { %1795 = vmatpush3.bf16.msra.mxu0 %v1940_v6  ;;  %1791 = vmatmul.mubr.bf16.vlgmr.msra.gmra.mxu1 %v806_v7 }
  0x73   : >> { %1815 = vmatpush3.bf16.msra.mxu1 %v1942_v8  ;;  %1796 = vmatprep.subr.bf16.mxu0 %v1999_v1 }
  0x74   : >> { %1816 = vmatprep.subr.bf16.mxu1 %v1999_v1  ;;  %1810 = vmatprep.mubr.msk.bf16.mxu0 %vm2000_vm0, %v1999_v1 }
  0x75   : >> { %1830 = vmatprep.mubr.msk.bf16.mxu1 %vm2000_vm0, %v1999_v1 }
  0x76   : >> { %1797 = vmatpush3.bf16.msra.mxu0 %v1943_v9 }
  0x77   : >> { %1817 = vmatpush3.bf16.msra.mxu1 %v1944_v10  ;;  %1798 = vmatprep.subr.bf16.mxu0 %v1999_v1 }
  0x78   : >> { %1818 = vmatprep.subr.bf16.mxu1 %v1999_v1 }
  0x7a   : >> { %1799 = vmatpush3.bf16.msra.mxu0 %v1945_v11 }
  0x7b   : >> { %1819 = vmatpush3.bf16.msra.mxu1 %v1946_v12  ;;  %1800 = vmatprep.subr.bf16.mxu0 %v1999_v1 }
  0x7c   : >> { %1820 = vmatprep.subr.bf16.mxu1 %v1999_v1 }
  0x7e   : >> { %1801 = vmatpush3.bf16.msra.mxu0 %v1947_v13 }
  0x7f   : >> { %1821 = vmatpush3.bf16.msra.mxu1 %v1948_v14  ;;  %1802 = vmatprep.subr.bf16.mxu0 %v1999_v1 }
  0x80   : >> { %1822 = vmatprep.subr.bf16.mxu1 %v1999_v1 }
  0x82   : >> { %1803 = vmatpush3.bf16.msra.mxu0 %v1949_v15 }
  0x83   : >> { %1823 = vmatpush3.bf16.msra.mxu1 %v1950_v16  ;;  %1804 = vmatprep.subr.bf16.mxu0 %v1999_v1 }
  0x84   : >> { %1824 = vmatprep.subr.bf16.mxu1 %v1999_v1 }
  0x86   : >> { %1805 = vmatpush3.bf16.msra.mxu0 %v1951_v19 }
  0x87   : >> { %1825 = vmatpush3.bf16.msra.mxu1 %v1952_v21  ;;  %1806 = vmatprep.subr.bf16.mxu0 %v1999_v1 }
  0x88   : >> { %1826 = vmatprep.subr.bf16.mxu1 %v1999_v1 }
  0x8a   : >> { %1807 = vmatpush3.bf16.msra.mxu0 %v1953_v22 }
  0x8b   : >> { %1827 = vmatpush3.bf16.msra.mxu1 %v1954_v24  ;;  %1808 = vmatprep.subr.bf16.mxu0 %v1999_v1 }
  0x8c   : >> { %1828 = vmatprep.subr.bf16.mxu1 %v1999_v1 }
  0x8e   : >> { %1809 = vmatpush3.bf16.msra.mxu0 %v1955_v25 }
  0x8f   : >> { %1829 = vmatpush3.bf16.msra.mxu1 %v1956_v28  ;;  %1834 = vmatprep.subr.bf16.mxu0 %v1999_v1 }
  0x91   : >> { %1811 = vmatmul.mubr.bf16.vlgmr.msra.gmra.mxu0 %v1509_v29 }
  0x92   : >> { %1835 = vmatpush3.bf16.msra.mxu0 %v1957_v30  ;;  %1831 = vmatmul.mubr.bf16.vlgmr.msra.gmra.mxu1 %v1038_v31 }
  0x93   : >> { %1836 = vmatprep.subr.bf16.mxu0 %v1999_v1  ;;  %1850 = vmatprep.mubr.msk.bf16.mxu0 %vm2000_vm0, %v1999_v1 }
  0x96   : >> { %1837 = vmatpush3.bf16.msra.mxu0 %v1959_v32 }
  0x97   : >> { %1838 = vmatprep.subr.bf16.mxu0 %v1999_v1 }
  0x9a   : >> { %1839 = vmatpush3.bf16.msra.mxu0 %v1960_v33 }
  0x9b   : >> { %1840 = vmatprep.subr.bf16.mxu0 %v1999_v1 }
  0x9e   : >> { %1841 = vmatpush3.bf16.msra.mxu0 %v1961_v34 }
  0x9f   : >> { %1842 = vmatprep.subr.bf16.mxu0 %v1999_v1 }
  0xa2   : >> { %1843 = vmatpush3.bf16.msra.mxu0 %v1962_v35 }
  0xa3   : >> { %1844 = vmatprep.subr.bf16.mxu0 %v1999_v1 }
  0xa6   : >> { %1845 = vmatpush3.bf16.msra.mxu0 %v1963_v36 }
  0xa7   : >> { %1846 = vmatprep.subr.bf16.mxu0 %v1999_v1 }
  0xaa   : >> { %1847 = vmatpush3.bf16.msra.mxu0 %v1964_v37 }
  0xab   : >> { %1848 = vmatprep.subr.bf16.mxu0 %v1999_v1 }
  0xae   : >> { %1849 = vmatpush3.bf16.msra.mxu0 %v1965_v40 }
  0xb1   : >> { %1851 = vmatmul.mubr.bf16.vlgmr.msra.gmra.mxu0 %v1150_v41 }
  0xf1   : >> { %v347_v42 = vpop.f32.mrf.mxu0 }
  0xf2   : >> { %v435_v43 = vpop.f32.mrf.mxu1 }
  0xf3   : >> { %v436_v44 = vadd.f32 %v435_v43, %v347_v42  ;;  %v1692_v45 = vpop.f32.mrf.mxu0 }
  0xf4   : >> { %v1712_v46 = vpop.f32.mrf.mxu1 }
  0xf5   : >> { %v350_v47 = vpop.f32.mrf.mxu0 }
  0xf6   : >> { %v438_v48 = vpop.f32.mrf.mxu1 }
  0xf7   : >> { %v1693_v49 = vpop.f32.mrf.mxu0 }
  0xf8   : >> { %v1713_v50 = vpop.f32.mrf.mxu1 }
 0x111   : >> { %v546_v51 = vpop.f32.mrf.mxu0 }
 0x112   : >> { %v552_v52 = vadd.f32 %v546_v51, %v436_v44  ;;  %v657_v53 = vpop.f32.mrf.mxu1 }
 0x113   : >> { %v1732_v54 = vpop.f32.mrf.mxu0 }
 0x114   : >> { %v663_v55 = vadd.f32 %v657_v53, %v552_v52  ;;  %v1752_v56 = vpop.f32.mrf.mxu1 }
 0x115   : >> { %v549_v57 = vpop.f32.mrf.mxu0 }
 0x116   : >> { %v660_v1 = vpop.f32.mrf.mxu1 }
 0x117   : >> { %v1733_v58 = vpop.f32.mrf.mxu0 }
 0x118   : >> { %v1753_v59 = vpop.f32.mrf.mxu1 }
 0x131   : >> { %v778_v60 = vpop.f32.mrf.mxu0 }
 0x132   : >> { %v890_v61 = vpop.f32.mrf.mxu1  ;;  %v784_v13 = vadd.f32 %v778_v60, %v663_v55 }
 0x133   : >> { %v1772_v62 = vpop.f32.mrf.mxu0 }
 0x134   : >> { %v1792_v63 = vpop.f32.mrf.mxu1  ;;  %v896_v14 = vadd.f32 %v890_v61, %v784_v13 }
 0x135   : >> { %v781_v0 = vpop.f32.mrf.mxu0 }
 0x136   : >> { %v893_v2 = vpop.f32.mrf.mxu1 }
 0x137   : >> { %v1773_v3 = vpop.f32.mrf.mxu0 }
 0x138   : >> { %v1793_v4 = vpop.f32.mrf.mxu1 }
 0x151   : >> { %v1001_v5 = vpop.f32.mrf.mxu0 }
 0x152   : >> { %v1122_v6 = vpop.f32.mrf.mxu1  ;;  %v1007_v15 = vadd.f32 %v1001_v5, %v896_v14 }
 0x153   : >> { %v1812_v7 = vpop.f32.mrf.mxu0 }
 0x154   : >> { %v1832_v8 = vpop.f32.mrf.mxu1  ;;  %v1128_v16 = vadd.f32 %v1122_v6, %v1007_v15 }
 0x155   : >> { %v1004_v9 = vpop.f32.mrf.mxu0 }
 0x156   : >> { %v1125_v10 = vpop.f32.mrf.mxu1 }
 0x157   : >> { %v1813_v11 = vpop.f32.mrf.mxu0 }
 0x158   : >> { %v1833_v12 = vpop.f32.mrf.mxu1 }
 0x171   : >> { %v1234_v17 = vpop.f32.mrf.mxu0 }
 0x172   : >> { %v1240_v19 = vadd.f32 %v1234_v17, %v1128_v16 }
 0x173   : >> { %v1852_v20 = vpop.f32.mrf.mxu0 }
 0x174   : >> { %v1248_v21 = vadd.f32 %v1587_v18, %v1240_v19 }
 0x175   : >> { %v1237_v22 = vpop.f32.mrf.mxu0 }
 0x176   : >> { %v1249_v23 = vmax.f32 %v1248_v21, 0.0  ;;  %212 = sbr.rel (!%p210_p5) target bundleno = 16 (0x10), region = 81 }
 0x177   : >> { %v1853_v24 = vpop.f32.mrf.mxu0 }
 0x178   : >> { %v1250_v25 = vpack.c.bf16 %v1249_v23, %v1249_v23 }
 0x17a   : >> { %1253 = vst [vmem:[%s1252_s5] sm:$0xf] %v1250_v25 }
 0x17b PF: > { %s13_s14 = sadd.s32 1, %s1993_s14   ;;  %s2400_s12 = smov %s1989_s13 }
 0x17c   : > { %p10_p6 = scmp.ge.s32.totalorder %s13_s14, 6   ;;  %s2401_s13 = smov %s2403_s15 }
 0x17e   :  { %12 = sbr.rel (!%p10_p6) target bundleno = 2 (0x2), region = 92 }

// kernel: _lambda_.17
= control target key start
LH: loop header
LB: loop body
LE: loop exit
PB: predicated region body
PF: predicated region fallthrough
CT: control target
= control target key end

     0   :  { %s115_s0 = inlined_call_operand.vmem [shape: f32[16,128], index: 0, kind: input, shape index: {}]   ;;  %s116_s1 = inlined_call_operand.vmem [shape: f32[16,128], index: 1, kind: input, shape index: {}]   ;;  %s117_s2 = inlined_call_operand.hbm [shape: f32[1,1], index: 2, kind: output, shape index: {}]  }
   0x1   :  { %v18_v0 = vld [vmem:[%s115_s0] sm:$0xff]  ;;  %v19_v1 = vld [vmem:[%s115_s0 + $0x8] sm:$0xff] }
   0x2   :  { %v20_v2 = vld [vmem:[%s116_s1] sm:$0xff]  ;;  %v21_v3 = vld [vmem:[%s116_s1 + $0x8] sm:$0xff] }
   0x3   :  { %v22_v4 = vsub.f32 %v18_v0, %v20_v2 }
   0x4   :  { %7 = vsyncpa [#allocation3], 0  ;;  %v23_v5 = vsub.f32 %v19_v1, %v21_v3  ;;  %vm16_vm0 = vcmask 0   ;;  %v81_v9 = vmov 0.0   ;;  %s82_s0 = smov [#allocation2]  }
   0x5   :  { %v25_v6 = vmul.f32 %v22_v4, %v22_v4  ;;  %17 = vst.msk [vmem:[#allocation2] sm:$0x1] %vm16_vm0, %v81_v9  ;;  %s47_s1 = sshll.u32 %s82_s0, 4  ;;  %s48_s1 = int_to_ptr.vmem [resolvable:$true] %s47_s1 }
   0x6   :  { %v26_v7 = vmul.f32 %v23_v5, %v23_v5  ;;  %s59_s18 = scalar_lea.vmem %s48_s1, 16  ;;  %s63_s19 = scalar_lea.vmem %s48_s1, 32 }
   0x7   :  { %p60_p0 = scmp.ne.s32.totalorder %s48_s1, %s59_s18  ;;  %p64_p1 = scmp.lt.s32.totalorder %s48_s1, %s48_s1 }
   0x8   :  { %v27_v8 = vadd.f32 %v26_v7, %v25_v6  ;;  %p65_p2 = scmp.lt.s32.totalorder %s63_s19, %s59_s18 }
   0xa   :  { %28 = vadd.xlane.f32.xlu0 %v27_v8  ;;  %p66_p3 = por %p65_p2, %p64_p1 }
   0xc   :  { %v24_v17 = vld [vmem:[#allocation2] sm:$0x1]  ;;  %p67_p4 = pnand %p66_p3, %p60_p0 }
  0x93   :  { %v29_v10 = vpop.xlane.xlu0 %28 }
  0x94   :  { %v30_v11 = vrot.slane %v29_v10, 4 }
  0x96   :  { %v31_v12 = vadd.f32 %v30_v11, %v29_v10 }
  0x98   :  { %v32_v13 = vrot.slane %v31_v12, 2 }
  0x9a   :  { %v33_v14 = vadd.f32 %v32_v13, %v31_v12 }
  0x9c   :  { %v34_v15 = vrot.slane %v33_v14, 1 }
  0x9e   :  { %v35_v16 = vadd.f32 %v34_v15, %v33_v14 }
  0xa0   :  { %55 = vpush %v35_v16 }
  0xd1   :  { %s56_s17 = spop %55 }
  0xd2   :  { %v37_v18 = vstv %s56_s17 }
  0xd3   :  { %v38_v19 = vadd.f32 %v37_v18, %v24_v17 }
  0xd5   :  { %40 = vst.msk [vmem:[#allocation2] sm:$0x1] %vm16_vm0, %v38_v19 }
  0xd6   :  { %70 = shalt.err (!%p67_p4)
}
  0xd7   :  { %50 = dma.vmem_to_hbm [thread:$0]  %s48_s1, 16, %s117_s2, [#allocation3]  }
  0xd8   :  { %79 = dma.done.wait [#allocation3], 16  }
  0xd9   :  { %80 = vsyncadd [#allocation3], 4294967280 }
  0xda   :  { %54 = vsyncpa [#allocation3], 1 }

// kernel: _lambda_.15
= control target key start
LH: loop header
LB: loop body
LE: loop exit
PB: predicated region body
PF: predicated region fallthrough
CT: control target
= control target key end

     0   :  { %s2284_s12 = smov 0   ;;  %s2286_s13 = smov 0   ;;  %s2791_s0 = inlined_call_operand.vmem [shape: bf16[4,1,6,6,128], index: 0, kind: input, shape index: {}]   ;;  %s2792_s1 = inlined_call_operand.vmem [shape: bf16[3,3,128,256], index: 1, kind: input, shape index: {}]   ;;  %s2793_s2 = inlined_call_operand.vmem [shape: f32[1,256], index: 2, kind: input, shape index: {}]   ;;  %s2794_s3 = inlined_call_operand.vmem [shape: bf16[4,1,4,4,256], index: 3, kind: output, shape index: {}]  }
   0x1   :  { %s2288_s14 = smov 0  }
   0x2 LB: > { %s25_s15 = sadd.s32 1, %s2253_s13  ;;  %p1676_p0 = scmp.ge.s32.totalorder %s2257_s14, 1  ;;  %s2257_s14 = sphi %s2288_s14, %s13_s14   ;;  %s2253_s13 = sphi %s2286_s13, %s2796_s13   ;;  %s2249_s12 = sphi %s2284_s12, %s2795_s12  }
   0x3   : > { %p27_p1 = scmp.ge.s32.totalorder %s25_s15, 4  ;;  %p157_p2 = scmp.lt.s32.totalorder %s2257_s14, 5 }
   0x5   : > { %s2798_s15 = smov (%p27_p1, %s25_s15), 0  ;;  %p158_p3 = pnand %p1676_p0, %p157_p2 }
   0x6   : > { %p189_p4 = scmp.lt.s32.totalorder (!%p158_p3), %s2249_s12, 3  ;;  %s2312_s24 = smov (!%p158_p3), 0  }
   0x7   : > { %161 = sbr.rel (%p158_p3) target bundleno = 380 (0x17c), region = 32 }
   0xc   : > { %s2800_s12 = smov (!%p189_p4, %s2249_s12), 3 }
   0xd   : > { %s1975_s16 = smul.u32 24, %s2800_s12  ;;  %s1973_s17 = sshll.u32 %s2800_s12, 4 }
   0xe   : > { %s2305_s20 = scalar_lea.vmem %s2794_s3, %s1973_s17 }
   0xf   : > { %s2310_s23 = scalar_lea.vmem %s2791_s0, %s1975_s16 }
  0x10 LB: >> { %v2009_v0 = vld [vmem:[%s2792_s1 + $0xf4] ss:$8 sps:$4 sm:$0xff]   ;;  %v2263_v2 = vmov 0   ;;  %v2013_v3 = vld [vmem:[%s2792_s1 + $0xf0] ss:$8 sps:$4 sm:$0xff]   ;;  %s1680_s25 = sshll.u32 %s2261_s24, 2  ;;  %s2261_s24 = sphi %s2312_s24, %s213_s24  }
  0x11   : >> { %v2011_v1 = vld [vmem:[%s2792_s1 + $0x74] ss:$8 sps:$4 sm:$0xff]   ;;  %374 = vmatprep.mubr.bf16.mxu0 %v2263_v2  ;;  %495 = vmatprep.mubr.bf16.mxu1 %v2263_v2  ;;  %v2014_v4 = vld [vmem:[%s2792_s1 + $0x70] ss:$8 sps:$4 sm:$0xff]   ;;  %v2015_v5 = vld [vmem:[%s2792_s1 + $0xe4] ss:$8 sps:$4 sm:$0xff]   ;;  %s2389_s28 = scalar_lea.vmem %s2310_s23, %s1680_s25  ;;  %s1563_s26 = scalar_lea.vmem %s2305_s20, %s1680_s25 }
  0x12   : >> { %342 = vmatprep.subr.bf16.mxu0 %v2009_v0  ;;  %463 = vmatprep.subr.bf16.mxu1 %v2011_v1  ;;  %v2017_v6 = vld [vmem:[%s2792_s1 + $0x64] ss:$8 sps:$4 sm:$0xff]   ;;  %v2019_v7 = vld [vmem:[%s2792_s1 + $0xe0] ss:$8 sps:$4 sm:$0xff]   ;;  %v2021_v9 = vld [vmem:[%s2792_s1 + $0xd4] ss:$8 sps:$4 sm:$0xff]  }
  0x13   : >> { %343 = vmatpush1.bf16.msra.mxu0 %v2013_v3  ;;  %464 = vmatpush1.bf16.msra.mxu1 %v2014_v4  ;;  %v2020_v8 = vld [vmem:[%s2792_s1 + $0x60] ss:$8 sps:$4 sm:$0xff]   ;;  %v2023_v10 = vld [vmem:[%s2792_s1 + $0x54] ss:$8 sps:$4 sm:$0xff]   ;;  %v2025_v11 = vld [vmem:[%s2792_s1 + $0xd0] ss:$8 sps:$4 sm:$0xff]  }
  0x14   : >> { %344 = vmatprep.subr.bf16.mxu0 %v2015_v5  ;;  %465 = vmatprep.subr.bf16.mxu1 %v2017_v6  ;;  %v2026_v12 = vld [vmem:[%s2792_s1 + $0x50] ss:$8 sps:$4 sm:$0xff]   ;;  %v2027_v13 = vld [vmem:[%s2792_s1 + $0xc4] ss:$8 sps:$4 sm:$0xff]   ;;  %v2031_v15 = vld [vmem:[%s2792_s1 + $0xc0] ss:$8 sps:$4 sm:$0xff]  }
  0x15   : >> { %v2029_v14 = vld [vmem:[%s2792_s1 + $0x44] ss:$8 sps:$4 sm:$0xff]   ;;  %v2032_v16 = vld [vmem:[%s2792_s1 + $0x40] ss:$8 sps:$4 sm:$0xff]   ;;  %v2033_v17 = vld [vmem:[%s2792_s1 + $0xb4] ss:$8 sps:$4 sm:$0xff]  }
  0x16   : >> { %v2035_v18 = vld [vmem:[%s2792_s1 + $0x34] ss:$8 sps:$4 sm:$0xff]   ;;  %v2037_v19 = vld [vmem:[%s2792_s1 + $0xb0] ss:$8 sps:$4 sm:$0xff]   ;;  %v2039_v21 = vld [vmem:[%s2792_s1 + $0xa4] ss:$8 sps:$4 sm:$0xff]  }
  0x17   : >> { %345 = vmatpush1.bf16.msra.mxu0 %v2019_v7  ;;  %466 = vmatpush1.bf16.msra.mxu1 %v2020_v8  ;;  %v2038_v20 = vld [vmem:[%s2792_s1 + $0x30] ss:$8 sps:$4 sm:$0xff]   ;;  %v2041_v22 = vld [vmem:[%s2792_s1 + $0x24] ss:$8 sps:$4 sm:$0xff]   ;;  %v2043_v23 = vld [vmem:[%s2792_s1 + $0xa0] ss:$8 sps:$4 sm:$0xff]  }
  0x18   : >> { %346 = vmatprep.subr.bf16.mxu0 %v2021_v9  ;;  %467 = vmatprep.subr.bf16.mxu1 %v2023_v10  ;;  %v2044_v24 = vld [vmem:[%s2792_s1 + $0x20] ss:$8 sps:$4 sm:$0xff]   ;;  %v2045_v25 = vld [vmem:[%s2792_s1 + $0x94] ss:$8 sps:$4 sm:$0xff]   ;;  %v2049_v28 = vld [vmem:[%s2792_s1 + $0x90] ss:$8 sps:$4 sm:$0xff]  }
  0x19   : >> { %v2047_v26 = vld [vmem:[%s2792_s1 + $0x14] ss:$8 sps:$4 sm:$0xff]   ;;  %v2057_v27 = vld [vmem:[%s2389_s28] ss:$0 sps:$4 sm:$0x77]   ;;  %s213_s24 = sadd.s32 1, %s2261_s24  }
  0x1a   : >> { %v2050_v29 = vld [vmem:[%s2792_s1 + $0x10] ss:$8 sps:$4 sm:$0xff]   ;;  %v257_v30 = vshll.u32 %v2057_v27, 16  ;;  %v2051_v31 = vld [vmem:[%s2792_s1 + $0x84] ss:$8 sps:$4 sm:$0xff]   ;;  %v255_v34 = vshrl.u32 %v2057_v27, 16 }
  0x1b   : >> { %347 = vmatpush1.bf16.msra.mxu0 %v2025_v11  ;;  %468 = vmatpush1.bf16.msra.mxu1 %v2026_v12  ;;  %v2053_v32 = vld [vmem:[%s2792_s1 + $0x4] ss:$8 sps:$4 sm:$0xff]   ;;  %v2055_v33 = vld [vmem:[%s2792_s1 + $0x80] ss:$8 sps:$4 sm:$0xff]   ;;  %v2060_v37 = vld [vmem:[%s2792_s1 + $0x174] ss:$8 sps:$4 sm:$0xff]  }
  0x1c   : >> { %348 = vmatprep.subr.bf16.mxu0 %v2027_v13  ;;  %469 = vmatprep.subr.bf16.mxu1 %v2029_v14  ;;  %v259_v35 = vrot.slane %v257_v30, 1  ;;  %v2056_v36 = vld [vmem:[%s2792_s1] ss:$8 sps:$4 sm:$0xff]   ;;  %v2063_v38 = vld [vmem:[%s2792_s1 + $0x1f4] ss:$8 sps:$4 sm:$0xff]   ;;  %p210_p5 = scmp.ge.s32.totalorder %s213_s24, 4  }
  0x1d   : >> { %v216_v40 = vld [vmem:[%s2389_s28] sm:$0x3]  ;;  %v2058_v41 = vld [vmem:[%s2792_s1 + $0x170] ss:$8 sps:$4 sm:$0xff]   ;;  %v2066_v43 = vld [vmem:[%s2792_s1 + $0x164] ss:$8 sps:$4 sm:$0xff]  }
  0x1e   : >> { %v260_v39 = vor.u32 %v259_v35, %v255_v34  ;;  %v2061_v42 = vld [vmem:[%s2792_s1 + $0x1f0] ss:$8 sps:$4 sm:$0xff]   ;;  %v2069_v44 = vld [vmem:[%s2792_s1 + $0x1e4] ss:$8 sps:$4 sm:$0xff]   ;;  %v2064_v45 = vld [vmem:[%s2792_s1 + $0x160] ss:$8 sps:$4 sm:$0xff]  }
  0x1f   : >> { %349 = vmatpush1.bf16.msra.mxu0 %v2031_v15  ;;  %470 = vmatpush1.bf16.msra.mxu1 %v2032_v16  ;;  %v2067_v46 = vld [vmem:[%s2792_s1 + $0x1e0] ss:$8 sps:$4 sm:$0xff]   ;;  %v2072_v47 = vld [vmem:[%s2792_s1 + $0x154] ss:$8 sps:$4 sm:$0xff]   ;;  %v2070_v49 = vld [vmem:[%s2792_s1 + $0x150] ss:$8 sps:$4 sm:$0xff]  }
  0x20   : >> { %350 = vmatprep.subr.bf16.mxu0 %v2033_v17  ;;  %471 = vmatprep.subr.bf16.mxu1 %v2035_v18  ;;  %v2075_v48 = vld [vmem:[%s2792_s1 + $0x1d4] ss:$8 sps:$4 sm:$0xff]   ;;  %v2073_v50 = vld [vmem:[%s2792_s1 + $0x1d0] ss:$8 sps:$4 sm:$0xff]   ;;  %v2078_v51 = vld [vmem:[%s2792_s1 + $0x144] ss:$8 sps:$4 sm:$0xff]  }
  0x21   : >> { %v2081_v52 = vld [vmem:[%s2792_s1 + $0x1c4] ss:$8 sps:$4 sm:$0xff]   ;;  %v2076_v53 = vld [vmem:[%s2792_s1 + $0x140] ss:$8 sps:$4 sm:$0xff]   ;;  %v2084_v55 = vld [vmem:[%s2792_s1 + $0x134] ss:$8 sps:$4 sm:$0xff]  }
  0x22   : >> { %v2079_v54 = vld [vmem:[%s2792_s1 + $0x1c0] ss:$8 sps:$4 sm:$0xff]   ;;  %v2087_v56 = vld [vmem:[%s2792_s1 + $0x1b4] ss:$8 sps:$4 sm:$0xff]   ;;  %v2082_v57 = vld [vmem:[%s2792_s1 + $0x130] ss:$8 sps:$4 sm:$0xff]  }
  0x23   : >> { %351 = vmatpush1.bf16.msra.mxu0 %v2037_v19  ;;  %472 = vmatpush1.bf16.msra.mxu1 %v2038_v20  ;;  %v2085_v58 = vld [vmem:[%s2792_s1 + $0x1b0] ss:$8 sps:$4 sm:$0xff]   ;;  %v2090_v59 = vld [vmem:[%s2792_s1 + $0x124] ss:$8 sps:$4 sm:$0xff]   ;;  %v2088_v61 = vld [vmem:[%s2792_s1 + $0x120] ss:$8 sps:$4 sm:$0xff]  }
  0x24   : >> { %352 = vmatprep.subr.bf16.mxu0 %v2039_v21  ;;  %473 = vmatprep.subr.bf16.mxu1 %v2041_v22  ;;  %v2093_v60 = vld [vmem:[%s2792_s1 + $0x1a4] ss:$8 sps:$4 sm:$0xff]   ;;  %v2091_v62 = vld [vmem:[%s2792_s1 + $0x1a0] ss:$8 sps:$4 sm:$0xff]   ;;  %v2096_v63 = vld [vmem:[%s2792_s1 + $0x114] ss:$8 sps:$4 sm:$0xff]  }
  0x25   : >> { %v2099_v0 = vld [vmem:[%s2792_s1 + $0x194] ss:$8 sps:$4 sm:$0xff]   ;;  %v2094_v1 = vld [vmem:[%s2792_s1 + $0x110] ss:$8 sps:$4 sm:$0xff]   ;;  %v2102_v4 = vld [vmem:[%s2792_s1 + $0x104] ss:$8 sps:$4 sm:$0xff]  }
  0x26   : >> { %v2097_v3 = vld [vmem:[%s2792_s1 + $0x190] ss:$8 sps:$4 sm:$0xff]   ;;  %v2105_v5 = vld [vmem:[%s2792_s1 + $0x184] ss:$8 sps:$4 sm:$0xff]   ;;  %v2100_v7 = vld [vmem:[%s2792_s1 + $0x100] ss:$8 sps:$4 sm:$0xff]  }
  0x27   : >> { %353 = vmatpush1.bf16.msra.mxu0 %v2043_v23  ;;  %474 = vmatpush1.bf16.msra.mxu1 %v2044_v24  ;;  %v2106_v6 = vld [vmem:[%s2389_s28] ss:$0 sps:$4 sm:$0x66]   ;;  %v2109_v9 = vld [vmem:[%s2792_s1 + $0x274] ss:$8 sps:$4 sm:$0xff]  }
  0x28   : >> { %354 = vmatprep.subr.bf16.mxu0 %v2045_v25  ;;  %475 = vmatprep.subr.bf16.mxu1 %v2047_v26  ;;  %v2103_v8 = vld [vmem:[%s2792_s1 + $0x180] ss:$8 sps:$4 sm:$0xff]   ;;  %v2112_v10 = vld [vmem:[%s2792_s1 + $0x2f4] ss:$8 sps:$4 sm:$0xff]   ;;  %v525_v11 = vrot.slane %v2106_v6, 1 }
  0x29   : >> { %v2107_v12 = vld [vmem:[%s2792_s1 + $0x270] ss:$8 sps:$4 sm:$0xff]   ;;  %v1764_v13 = vld [vmem:[%s2389_s28 + $0x4] sm:$0x3]  ;;  %v2113_v17 = vld [vmem:[%s2792_s1 + $0x260] ss:$8 sps:$4 sm:$0xff]  }
  0x2a   : >> { %v2110_v14 = vld [vmem:[%s2792_s1 + $0x2f0] ss:$8 sps:$4 sm:$0xff]   ;;  %v2115_v15 = vld [vmem:[%s2792_s1 + $0x264] ss:$8 sps:$4 sm:$0xff]   ;;  %v2116_v18 = vld [vmem:[%s2792_s1 + $0x2e0] ss:$8 sps:$4 sm:$0xff]  }
  0x2b   : >> { %355 = vmatpush1.bf16.msra.mxu0 %v2049_v28  ;;  %476 = vmatpush1.bf16.msra.mxu1 %v2050_v29  ;;  %v2118_v16 = vld [vmem:[%s2792_s1 + $0x2e4] ss:$8 sps:$4 sm:$0xff]   ;;  %v2121_v19 = vld [vmem:[%s2792_s1 + $0x254] ss:$8 sps:$4 sm:$0xff]   ;;  %v2119_v21 = vld [vmem:[%s2792_s1 + $0x250] ss:$8 sps:$4 sm:$0xff]  }
  0x2c   : >> { %356 = vmatprep.subr.bf16.mxu0 %v2051_v31  ;;  %477 = vmatprep.subr.bf16.mxu1 %v2053_v32  ;;  %v2124_v20 = vld [vmem:[%s2792_s1 + $0x2d4] ss:$8 sps:$4 sm:$0xff]   ;;  %v2122_v22 = vld [vmem:[%s2792_s1 + $0x2d0] ss:$8 sps:$4 sm:$0xff]   ;;  %v2127_v23 = vld [vmem:[%s2792_s1 + $0x244] ss:$8 sps:$4 sm:$0xff]  }
  0x2d   : >> { %v2130_v24 = vld [vmem:[%s2792_s1 + $0x2c4] ss:$8 sps:$4 sm:$0xff]   ;;  %v2125_v25 = vld [vmem:[%s2792_s1 + $0x240] ss:$8 sps:$4 sm:$0xff]   ;;  %v2133_v27 = vld [vmem:[%s2792_s1 + $0x234] ss:$8 sps:$4 sm:$0xff]  }
  0x2e   : >> { %v2128_v26 = vld [vmem:[%s2792_s1 + $0x2c0] ss:$8 sps:$4 sm:$0xff]   ;;  %v2136_v28 = vld [vmem:[%s2792_s1 + $0x2b4] ss:$8 sps:$4 sm:$0xff]   ;;  %v2131_v29 = vld [vmem:[%s2792_s1 + $0x230] ss:$8 sps:$4 sm:$0xff]  }
  0x2f   : >> { %357 = vmatpush1.bf16.msra.mxu0 %v2055_v33  ;;  %478 = vmatpush1.bf16.msra.mxu1 %v2056_v36  ;;  %v2134_v30 = vld [vmem:[%s2792_s1 + $0x2b0] ss:$8 sps:$4 sm:$0xff]   ;;  %v2139_v31 = vld [vmem:[%s2792_s1 + $0x224] ss:$8 sps:$4 sm:$0xff]   ;;  %v2137_v34 = vld [vmem:[%s2792_s1 + $0x220] ss:$8 sps:$4 sm:$0xff]  }
  0x30   : >> { %607 = vmatprep.subr.bf16.mxu0 %v2060_v37  ;;  %751 = vmatprep.subr.bf16.mxu1 %v2063_v38  ;;  %v2142_v32 = vld [vmem:[%s2792_s1 + $0x2a4] ss:$8 sps:$4 sm:$0xff]   ;;  %v2140_v35 = vld [vmem:[%s2792_s1 + $0x2a0] ss:$8 sps:$4 sm:$0xff]   ;;  %v2145_v36 = vld [vmem:[%s2792_s1 + $0x214] ss:$8 sps:$4 sm:$0xff]  }
  0x31   : >> { %v2155_v33 = vld [vmem:[%s2389_s28 + $0x4] ss:$0 sps:$4 sm:$0x77]   ;;  %v2148_v37 = vld [vmem:[%s2792_s1 + $0x294] ss:$8 sps:$4 sm:$0xff]  }
  0x32   : >> { %375 = vmatmul.mubr.bf16.vlgmr.msra.gmra.mxu0 %v260_v39  ;;  %496 = vmatmul.mubr.bf16.vlgmr.msra.gmra.mxu1 %v216_v40  ;;  %v818_v38 = vshll.u32 %v2155_v33, 16  ;;  %v2143_v39 = vld [vmem:[%s2792_s1 + $0x210] ss:$8 sps:$4 sm:$0xff]  }
  0x33   : >> { %608 = vmatpush1.bf16.msra.mxu0 %v2058_v41  ;;  %752 = vmatpush1.bf16.msra.mxu1 %v2061_v42  ;;  %v2146_v40 = vld [vmem:[%s2792_s1 + $0x290] ss:$8 sps:$4 sm:$0xff]   ;;  %v2151_v41 = vld [vmem:[%s2792_s1 + $0x204] ss:$8 sps:$4 sm:$0xff]  }
  0x34   : >> { %609 = vmatprep.subr.bf16.mxu0 %v2066_v43  ;;  %753 = vmatprep.subr.bf16.mxu1 %v2069_v44  ;;  %v2154_v42 = vld [vmem:[%s2792_s1 + $0x284] ss:$8 sps:$4 sm:$0xff]   ;;  %v2149_v43 = vld [vmem:[%s2792_s1 + $0x200] ss:$8 sps:$4 sm:$0xff]   ;;  %v816_v44 = vshrl.u32 %v2155_v33, 16 }
  0x35   : >> { %639 = vmatprep.mubr.bf16.mxu0 %v2263_v2  ;;  %783 = vmatprep.mubr.bf16.mxu1 %v2263_v2  ;;  %v2184_v6 = vld [vmem:[%s2792_s1 + $0x3b0] ss:$8 sps:$4 sm:$0xff]  }
  0x36   : >> { %v2218_v33 = vld [vmem:[%s2792_s1 + $0x430] ss:$8 sps:$4 sm:$0xff]  }
  0x37   : >> { %610 = vmatpush1.bf16.msra.mxu0 %v2064_v45  ;;  %754 = vmatpush1.bf16.msra.mxu1 %v2067_v46  ;;  %v820_v45 = vrot.slane %v818_v38, 1  ;;  %v2159_v46 = vld [vmem:[%s2389_s28 + $0x4] ss:$0 sps:$4 sm:$0x66]  }
  0x38   : >> { %611 = vmatprep.subr.bf16.mxu0 %v2072_v47  ;;  %755 = vmatprep.subr.bf16.mxu1 %v2075_v48  ;;  %v2152_v47 = vld [vmem:[%s2792_s1 + $0x280] ss:$8 sps:$4 sm:$0xff]   ;;  %v2158_v48 = vld [vmem:[%s2792_s1 + $0x374] ss:$8 sps:$4 sm:$0xff]   ;;  %v2229_v38 = vld [vmem:[%s2792_s1 + $0x404] ss:$8 sps:$4 sm:$0xff]  }
  0x3b   : >> { %612 = vmatpush1.bf16.msra.mxu0 %v2070_v49  ;;  %756 = vmatpush1.bf16.msra.mxu1 %v2073_v50  ;;  %v2162_v49 = vld [vmem:[%s2792_s1 + $0x3f4] ss:$8 sps:$4 sm:$0xff]   ;;  %v821_v50 = vor.u32 %v820_v45, %v816_v44 }
  0x3c   : >> { %613 = vmatprep.subr.bf16.mxu0 %v2078_v51  ;;  %757 = vmatprep.subr.bf16.mxu1 %v2081_v52  ;;  %v967_v51 = vrot.slane %v2159_v46, 1  ;;  %v2156_v52 = vld [vmem:[%s2792_s1 + $0x370] ss:$8 sps:$4 sm:$0xff]  }
  0x3f   : >> { %614 = vmatpush1.bf16.msra.mxu0 %v2076_v53  ;;  %758 = vmatpush1.bf16.msra.mxu1 %v2079_v54  ;;  %v2160_v53 = vld [vmem:[%s2792_s1 + $0x3f0] ss:$8 sps:$4 sm:$0xff]   ;;  %v2165_v54 = vld [vmem:[%s2792_s1 + $0x364] ss:$8 sps:$4 sm:$0xff]  }
  0x40   : >> { %615 = vmatprep.subr.bf16.mxu0 %v2084_v55  ;;  %759 = vmatprep.subr.bf16.mxu1 %v2087_v56  ;;  %v2168_v55 = vld [vmem:[%s2792_s1 + $0x3e4] ss:$8 sps:$4 sm:$0xff]   ;;  %v2163_v56 = vld [vmem:[%s2792_s1 + $0x360] ss:$8 sps:$4 sm:$0xff]  }
  0x43   : >> { %616 = vmatpush1.bf16.msra.mxu0 %v2082_v57  ;;  %760 = vmatpush1.bf16.msra.mxu1 %v2085_v58  ;;  %v2166_v57 = vld [vmem:[%s2792_s1 + $0x3e0] ss:$8 sps:$4 sm:$0xff]   ;;  %v2171_v58 = vld [vmem:[%s2792_s1 + $0x354] ss:$8 sps:$4 sm:$0xff]  }
  0x44   : >> { %617 = vmatprep.subr.bf16.mxu0 %v2090_v59  ;;  %761 = vmatprep.subr.bf16.mxu1 %v2093_v60  ;;  %v2174_v59 = vld [vmem:[%s2792_s1 + $0x3d4] ss:$8 sps:$4 sm:$0xff]   ;;  %v2169_v60 = vld [vmem:[%s2792_s1 + $0x350] ss:$8 sps:$4 sm:$0xff]  }
  0x47   : >> { %618 = vmatpush1.bf16.msra.mxu0 %v2088_v61  ;;  %762 = vmatpush1.bf16.msra.mxu1 %v2091_v62  ;;  %v2172_v61 = vld [vmem:[%s2792_s1 + $0x3d0] ss:$8 sps:$4 sm:$0xff]   ;;  %v2177_v62 = vld [vmem:[%s2792_s1 + $0x344] ss:$8 sps:$4 sm:$0xff]  }
  0x48   : >> { %619 = vmatprep.subr.bf16.mxu0 %v2096_v63  ;;  %763 = vmatprep.subr.bf16.mxu1 %v2099_v0  ;;  %v2180_v63 = vld [vmem:[%s2792_s1 + $0x3c4] ss:$8 sps:$4 sm:$0xff]   ;;  %v2175_v0 = vld [vmem:[%s2792_s1 + $0x340] ss:$8 sps:$4 sm:$0xff]  }
  0x4b   : >> { %620 = vmatpush1.bf16.msra.mxu0 %v2094_v1  ;;  %764 = vmatpush1.bf16.msra.mxu1 %v2097_v3  ;;  %v2178_v1 = vld [vmem:[%s2792_s1 + $0x3c0] ss:$8 sps:$4 sm:$0xff]   ;;  %v2183_v3 = vld [vmem:[%s2792_s1 + $0x334] ss:$8 sps:$4 sm:$0xff]  }
  0x4c   : >> { %621 = vmatprep.subr.bf16.mxu0 %v2102_v4  ;;  %765 = vmatprep.subr.bf16.mxu1 %v2105_v5  ;;  %v2186_v4 = vld [vmem:[%s2792_s1 + $0x3b4] ss:$8 sps:$4 sm:$0xff]   ;;  %v2181_v5 = vld [vmem:[%s2792_s1 + $0x330] ss:$8 sps:$4 sm:$0xff]  }
  0x4f   : >> { %622 = vmatpush1.bf16.msra.mxu0 %v2100_v7  ;;  %766 = vmatpush1.bf16.msra.mxu1 %v2103_v8  ;;  %v2189_v7 = vld [vmem:[%s2792_s1 + $0x324] ss:$8 sps:$4 sm:$0xff]  }
  0x50   : >> { %903 = vmatprep.subr.bf16.mxu0 %v2109_v9  ;;  %1049 = vmatprep.subr.bf16.mxu1 %v2112_v10  ;;  %v2192_v8 = vld [vmem:[%s2792_s1 + $0x3a4] ss:$8 sps:$4 sm:$0xff]   ;;  %v2208_v9 = vld [vmem:[%s2389_s28 + $0x8] ss:$0 sps:$4 sm:$0x77]  }
  0x51   : >> { %v2187_v10 = vld [vmem:[%s2792_s1 + $0x320] ss:$8 sps:$4 sm:$0xff]  }
  0x52   : >> { %640 = vmatmul.mubr.bf16.vlgmr.msra.gmra.mxu0 %v525_v11  ;;  %784 = vmatmul.mubr.bf16.vlgmr.msra.gmra.mxu1 %v1764_v13  ;;  %v2190_v11 = vld [vmem:[%s2792_s1 + $0x3a0] ss:$8 sps:$4 sm:$0xff]   ;;  %v2198_v13 = vld [vmem:[%s2792_s1 + $0x394] ss:$8 sps:$4 sm:$0xff]  }
  0x53   : >> { %904 = vmatpush1.bf16.msra.mxu0 %v2107_v12  ;;  %1050 = vmatpush1.bf16.msra.mxu1 %v2110_v14  ;;  %v2195_v12 = vld [vmem:[%s2792_s1 + $0x314] ss:$8 sps:$4 sm:$0xff]   ;;  %v1260_v14 = vshll.u32 %v2208_v9, 16 }
  0x54   : >> { %905 = vmatprep.subr.bf16.mxu0 %v2115_v15  ;;  %1051 = vmatprep.subr.bf16.mxu1 %v2118_v16  ;;  %v2193_v15 = vld [vmem:[%s2792_s1 + $0x310] ss:$8 sps:$4 sm:$0xff]  }
  0x55   : >> { %935 = vmatprep.mubr.bf16.mxu0 %v2263_v2  ;;  %1081 = vmatprep.mubr.bf16.mxu1 %v2263_v2  ;;  %v2196_v16 = vld [vmem:[%s2792_s1 + $0x390] ss:$8 sps:$4 sm:$0xff]  }
  0x57   : >> { %906 = vmatpush1.bf16.msra.mxu0 %v2113_v17  ;;  %1052 = vmatpush1.bf16.msra.mxu1 %v2116_v18  ;;  %v2201_v17 = vld [vmem:[%s2792_s1 + $0x304] ss:$8 sps:$4 sm:$0xff]  }
  0x58   : >> { %907 = vmatprep.subr.bf16.mxu0 %v2121_v19  ;;  %1053 = vmatprep.subr.bf16.mxu1 %v2124_v20  ;;  %v2204_v18 = vld [vmem:[%s2792_s1 + $0x384] ss:$8 sps:$4 sm:$0xff]   ;;  %v1258_v19 = vshrl.u32 %v2208_v9, 16  ;;  %v1262_v20 = vrot.slane %v1260_v14, 1 }
  0x5b   : >> { %908 = vmatpush1.bf16.msra.mxu0 %v2119_v21  ;;  %1054 = vmatpush1.bf16.msra.mxu1 %v2122_v22  ;;  %v2199_v21 = vld [vmem:[%s2792_s1 + $0x300] ss:$8 sps:$4 sm:$0xff]  }
  0x5c   : >> { %909 = vmatprep.subr.bf16.mxu0 %v2127_v23  ;;  %1055 = vmatprep.subr.bf16.mxu1 %v2130_v24  ;;  %v2202_v22 = vld [vmem:[%s2792_s1 + $0x380] ss:$8 sps:$4 sm:$0xff]   ;;  %v2207_v23 = vld [vmem:[%s2792_s1 + $0x474] ss:$8 sps:$4 sm:$0xff]   ;;  %v1263_v24 = vor.u32 %v1262_v20, %v1258_v19 }
  0x5f   : >> { %910 = vmatpush1.bf16.msra.mxu0 %v2125_v25  ;;  %1056 = vmatpush1.bf16.msra.mxu1 %v2128_v26  ;;  %v1866_v25 = vld [vmem:[%s2389_s28 + $0x8] sm:$0x3]  ;;  %v2205_v26 = vld [vmem:[%s2792_s1 + $0x470] ss:$8 sps:$4 sm:$0xff]  }
  0x60   : >> { %911 = vmatprep.subr.bf16.mxu0 %v2133_v27  ;;  %1057 = vmatprep.subr.bf16.mxu1 %v2136_v28  ;;  %v2211_v27 = vld [vmem:[%s2792_s1 + $0x464] ss:$8 sps:$4 sm:$0xff]   ;;  %v2209_v28 = vld [vmem:[%s2792_s1 + $0x460] ss:$8 sps:$4 sm:$0xff]  }
  0x63   : >> { %912 = vmatpush1.bf16.msra.mxu0 %v2131_v29  ;;  %1058 = vmatpush1.bf16.msra.mxu1 %v2134_v30  ;;  %v2214_v29 = vld [vmem:[%s2792_s1 + $0x454] ss:$8 sps:$4 sm:$0xff]   ;;  %v2212_v30 = vld [vmem:[%s2792_s1 + $0x450] ss:$8 sps:$4 sm:$0xff]  }
  0x64   : >> { %913 = vmatprep.subr.bf16.mxu0 %v2139_v31  ;;  %1059 = vmatprep.subr.bf16.mxu1 %v2142_v32  ;;  %v2217_v31 = vld [vmem:[%s2792_s1 + $0x444] ss:$8 sps:$4 sm:$0xff]   ;;  %v2220_v32 = vld [vmem:[%s2792_s1 + $0x434] ss:$8 sps:$4 sm:$0xff]  }
  0x67   : >> { %914 = vmatpush1.bf16.msra.mxu0 %v2137_v34  ;;  %1060 = vmatpush1.bf16.msra.mxu1 %v2140_v35  ;;  %v2223_v34 = vld [vmem:[%s2792_s1 + $0x424] ss:$8 sps:$4 sm:$0xff]   ;;  %v2221_v35 = vld [vmem:[%s2792_s1 + $0x420] ss:$8 sps:$4 sm:$0xff]  }
  0x68   : >> { %915 = vmatprep.subr.bf16.mxu0 %v2145_v36  ;;  %1061 = vmatprep.subr.bf16.mxu1 %v2148_v37  ;;  %v2226_v36 = vld [vmem:[%s2792_s1 + $0x414] ss:$8 sps:$4 sm:$0xff]   ;;  %v2224_v37 = vld [vmem:[%s2792_s1 + $0x410] ss:$8 sps:$4 sm:$0xff]  }
  0x6b   : >> { %916 = vmatpush1.bf16.msra.mxu0 %v2143_v39  ;;  %1062 = vmatpush1.bf16.msra.mxu1 %v2146_v40  ;;  %v2230_v39 = vld [vmem:[%s2389_s28 + $0x8] ss:$0 sps:$4 sm:$0x66]  }
  0x6c   : >> { %917 = vmatprep.subr.bf16.mxu0 %v2151_v41  ;;  %1063 = vmatprep.subr.bf16.mxu1 %v2154_v42  ;;  %v2227_v40 = vld [vmem:[%s2792_s1 + $0x400] ss:$8 sps:$4 sm:$0xff]   ;;  %v1409_v41 = vrot.slane %v2230_v39, 1 }
  0x6f   : >> { %918 = vmatpush1.bf16.msra.mxu0 %v2149_v43  ;;  %1064 = vmatpush1.bf16.msra.mxu1 %v2152_v47 }
  0x70   : >> { %1193 = vmatprep.subr.bf16.mxu0 %v2158_v48  ;;  %1345 = vmatprep.subr.bf16.mxu1 %v2162_v49 }
  0x72   : >> { %936 = vmatmul.mubr.bf16.vlgmr.msra.gmra.mxu0 %v821_v50  ;;  %1082 = vmatmul.mubr.bf16.vlgmr.msra.gmra.mxu1 %v967_v51 }
  0x73   : >> { %1194 = vmatpush1.bf16.msra.mxu0 %v2156_v52  ;;  %1346 = vmatpush1.bf16.msra.mxu1 %v2160_v53 }
  0x74   : >> { %1195 = vmatprep.subr.bf16.mxu0 %v2165_v54  ;;  %1347 = vmatprep.subr.bf16.mxu1 %v2168_v55 }
  0x75   : >> { %1225 = vmatprep.mubr.bf16.mxu0 %v2263_v2  ;;  %1377 = vmatprep.mubr.bf16.mxu1 %v2263_v2 }
  0x77   : >> { %1196 = vmatpush1.bf16.msra.mxu0 %v2163_v56  ;;  %1348 = vmatpush1.bf16.msra.mxu1 %v2166_v57 }
  0x78   : >> { %1197 = vmatprep.subr.bf16.mxu0 %v2171_v58  ;;  %1349 = vmatprep.subr.bf16.mxu1 %v2174_v59 }
  0x7b   : >> { %1198 = vmatpush1.bf16.msra.mxu0 %v2169_v60  ;;  %1350 = vmatpush1.bf16.msra.mxu1 %v2172_v61 }
  0x7c   : >> { %1199 = vmatprep.subr.bf16.mxu0 %v2177_v62  ;;  %1351 = vmatprep.subr.bf16.mxu1 %v2180_v63 }
  0x7f   : >> { %1200 = vmatpush1.bf16.msra.mxu0 %v2175_v0  ;;  %1352 = vmatpush1.bf16.msra.mxu1 %v2178_v1 }
  0x80   : >> { %1201 = vmatprep.subr.bf16.mxu0 %v2183_v3  ;;  %1353 = vmatprep.subr.bf16.mxu1 %v2186_v4 }
  0x83   : >> { %1202 = vmatpush1.bf16.msra.mxu0 %v2181_v5  ;;  %1354 = vmatpush1.bf16.msra.mxu1 %v2184_v6 }
  0x84   : >> { %1203 = vmatprep.subr.bf16.mxu0 %v2189_v7  ;;  %1355 = vmatprep.subr.bf16.mxu1 %v2192_v8 }
  0x87   : >> { %1204 = vmatpush1.bf16.msra.mxu0 %v2187_v10  ;;  %1356 = vmatpush1.bf16.msra.mxu1 %v2190_v11 }
  0x88   : >> { %1205 = vmatprep.subr.bf16.mxu0 %v2195_v12  ;;  %1357 = vmatprep.subr.bf16.mxu1 %v2198_v13 }
  0x8b   : >> { %1206 = vmatpush1.bf16.msra.mxu0 %v2193_v15  ;;  %1358 = vmatpush1.bf16.msra.mxu1 %v2196_v16 }
  0x8c   : >> { %1207 = vmatprep.subr.bf16.mxu0 %v2201_v17  ;;  %1359 = vmatprep.subr.bf16.mxu1 %v2204_v18  ;;  %v1536_v18 = vlaneseq }
  0x8f   : >> { %1208 = vmatpush1.bf16.msra.mxu0 %v2199_v21  ;;  %1360 = vmatpush1.bf16.msra.mxu1 %v2202_v22  ;;  %v1537_v21 = vshrl.u32 %v1536_v18, 7 }
  0x90   : >> { %1491 = vmatprep.subr.bf16.mxu0 %v2207_v23 }
  0x92   : >> { %1226 = vmatmul.mubr.bf16.vlgmr.msra.gmra.mxu0 %v1866_v25  ;;  %1378 = vmatmul.mubr.bf16.vlgmr.msra.gmra.mxu1 %v1263_v24  ;;  %v1538_v25 = vsub.s32 0, %v1537_v21 }
  0x93   : >> { %1492 = vmatpush1.bf16.msra.mxu0 %v2205_v26  ;;  %1523 = vmatprep.mubr.bf16.mxu0 %v2263_v2  ;;  %v2215_v2 = vld [vmem:[%s2792_s1 + $0x440] ss:$8 sps:$4 sm:$0xff]   ;;  %v1542_v26 = vsub.s32 1, %v1537_v21 }
  0x94   : >> { %1493 = vmatprep.subr.bf16.mxu0 %v2211_v27  ;;  %v1534_v27 = vld [vmem:[%s2793_s2] sm:$0x3] }
  0x97   : >> { %1494 = vmatpush1.bf16.msra.mxu0 %v2209_v28 }
  0x98   : >> { %1495 = vmatprep.subr.bf16.mxu0 %v2214_v29 }
  0x9b   : >> { %1496 = vmatpush1.bf16.msra.mxu0 %v2212_v30 }
  0x9c   : >> { %1497 = vmatprep.subr.bf16.mxu0 %v2217_v31 }
  0x9f   : >> { %1498 = vmatpush1.bf16.msra.mxu0 %v2215_v2  ;;  %v1539_v2 = vrot.slane %v1534_v27, %v1538_v25 }
  0xa0   : >> { %1499 = vmatprep.subr.bf16.mxu0 %v2220_v32  ;;  %v1543_v32 = vrot.slane %v1534_v27, %v1542_v26 }
  0xa3   : >> { %1500 = vmatpush1.bf16.msra.mxu0 %v2218_v33 }
  0xa4   : >> { %1501 = vmatprep.subr.bf16.mxu0 %v2223_v34 }
  0xa7   : >> { %1502 = vmatpush1.bf16.msra.mxu0 %v2221_v35 }
  0xa8   : >> { %1503 = vmatprep.subr.bf16.mxu0 %v2226_v36 }
  0xab   : >> { %1504 = vmatpush1.bf16.msra.mxu0 %v2224_v37 }
  0xac   : >> { %1505 = vmatprep.subr.bf16.mxu0 %v2229_v38 }
  0xaf   : >> { %1506 = vmatpush1.bf16.msra.mxu0 %v2227_v40 }
  0xb2   : >> { %1524 = vmatmul.mubr.bf16.vlgmr.msra.gmra.mxu0 %v1409_v41 }
  0xf2   : >> { %v376_v42 = vpop.f32.mrf.mxu0  ;;  %v497_v43 = vpop.f32.mrf.mxu1 }
  0xf3   : >> { %v498_v44 = vadd.f32 %v497_v43, %v376_v42 }
  0xf4   : >> { %v378_v45 = vpop.f32.mrf.mxu0  ;;  %v499_v46 = vpop.f32.mrf.mxu1 }
  0xf5   : >> { %v500_v47 = vadd.f32 %v499_v46, %v378_v45 }
  0xf6   : >> { %v380_v48 = vpop.f32.mrf.mxu0  ;;  %v501_v49 = vpop.f32.mrf.mxu1 }
  0xf8   : >> { %v381_v50 = vpop.f32.mrf.mxu0  ;;  %v502_v51 = vpop.f32.mrf.mxu1 }
 0x112   : >> { %v641_v52 = vpop.f32.mrf.mxu0  ;;  %v785_v53 = vpop.f32.mrf.mxu1 }
 0x113   : >> { %v648_v54 = vadd.f32 %v641_v52, %v498_v44 }
 0x114   : >> { %v643_v55 = vpop.f32.mrf.mxu0  ;;  %v787_v56 = vpop.f32.mrf.mxu1 }
 0x115   : >> { %v649_v57 = vadd.f32 %v643_v55, %v500_v47  ;;  %v792_v58 = vadd.f32 %v785_v53, %v648_v54 }
 0x116   : >> { %v645_v59 = vpop.f32.mrf.mxu0  ;;  %v789_v60 = vpop.f32.mrf.mxu1 }
 0x117   : >> { %v793_v61 = vadd.f32 %v787_v56, %v649_v57 }
 0x118   : >> { %v646_v62 = vpop.f32.mrf.mxu0  ;;  %v790_v63 = vpop.f32.mrf.mxu1 }
 0x132   : >> { %v937_v0 = vpop.f32.mrf.mxu0  ;;  %v1083_v1 = vpop.f32.mrf.mxu1 }
 0x133   : >> { %v944_v17 = vadd.f32 %v937_v0, %v792_v58 }
 0x134   : >> { %v939_v3 = vpop.f32.mrf.mxu0  ;;  %v1085_v4 = vpop.f32.mrf.mxu1 }
 0x135   : >> { %v945_v19 = vadd.f32 %v939_v3, %v793_v61  ;;  %v1090_v20 = vadd.f32 %v1083_v1, %v944_v17 }
 0x136   : >> { %v941_v5 = vpop.f32.mrf.mxu0  ;;  %v1087_v6 = vpop.f32.mrf.mxu1 }
 0x137   : >> { %v1091_v22 = vadd.f32 %v1085_v4, %v945_v19 }
 0x138   : >> { %v942_v7 = vpop.f32.mrf.mxu0  ;;  %v1088_v8 = vpop.f32.mrf.mxu1 }
 0x152   : >> { %v1227_v9 = vpop.f32.mrf.mxu0  ;;  %v1379_v10 = vpop.f32.mrf.mxu1 }
 0x153   : >> { %v1234_v23 = vadd.f32 %v1227_v9, %v1090_v20 }
 0x154   : >> { %v1229_v11 = vpop.f32.mrf.mxu0  ;;  %v1381_v12 = vpop.f32.mrf.mxu1 }
 0x155   : >> { %v1235_v24 = vadd.f32 %v1229_v11, %v1091_v22  ;;  %v1386_v28 = vadd.f32 %v1379_v10, %v1234_v23 }
 0x156   : >> { %v1231_v13 = vpop.f32.mrf.mxu0  ;;  %v1383_v14 = vpop.f32.mrf.mxu1 }
 0x157   : >> { %v1387_v30 = vadd.f32 %v1381_v12, %v1235_v24 }
 0x158   : >> { %v1232_v15 = vpop.f32.mrf.mxu0  ;;  %v1384_v16 = vpop.f32.mrf.mxu1 }
 0x172   : >> { %v1525_v29 = vpop.f32.mrf.mxu0 }
 0x173   : >> { %v1532_v31 = vadd.f32 %v1525_v29, %v1386_v28 }
 0x174   : >> { %v1527_v33 = vpop.f32.mrf.mxu0 }
 0x175   : >> { %v1533_v34 = vadd.f32 %v1527_v33, %v1387_v30  ;;  %v1546_v36 = vadd.f32 %v1539_v2, %v1532_v31 }
 0x176   : >> { %v1529_v35 = vpop.f32.mrf.mxu0 }
 0x177   : >> { %v1547_v37 = vadd.f32 %v1543_v32, %v1533_v34  ;;  %212 = sbr.rel (!%p210_p5) target bundleno = 16 (0x10), region = 81 }
 0x178   : >> { %v1530_v38 = vpop.f32.mrf.mxu0 }
 0x179   : >> { %v1967_v39 = vpack.c.bf16 %v1547_v37, %v1546_v36 }
 0x17b   : >> { %1970 = vst.sshfl [vmem:[%s1563_s26] sm:$0x33 pattern:$0x76325410] %v1967_v39 }
 0x17c PF: > { %s13_s14 = sadd.s32 1, %s2257_s14   ;;  %s2795_s12 = smov %s2253_s13 }
 0x17d   : > { %p10_p6 = scmp.ge.s32.totalorder %s13_s14, 6   ;;  %s2796_s13 = smov %s2798_s15 }
 0x17f   :  { %12 = sbr.rel (!%p10_p6) target bundleno = 2 (0x2), region = 92 }

</bundles_post_ra>
